<compile_context>
chip_gen: v7x
topology: tpu7x:2x2x1
jax: 0.10.0
libtpu: 0.0.40
codegen_flags: <defaults>
</compile_context>

<pallas_src>
import functools

import jax
import jax.numpy as jnp
from jax import lax
from jax.experimental import pallas as pl
from jax.experimental.pallas import tpu as pltpu


_INV_SQRT2 = 0.7071067811865476


def _erf(x):
    # A&S 7.1.26 rational approximation of erf (max abs err ~1.5e-7) -- matches torch's
    # exact (erf-based) GELU.  exp() lands on the EUP slot.
    # TODO(synk): t could use pl.reciprocal(..., approx=True) if tolerance is loosened.
    p = 0.3275911
    a1, a2, a3, a4, a5 = (0.254829592, -0.284496736, 1.421413741,
                          -1.453152027, 1.061405429)
    ax = jnp.abs(x)
    t = 1.0 / (1.0 + p * ax)
    poly = ((((a5 * t + a4) * t + a3) * t + a2) * t + a1) * t
    y = 1.0 - poly * jnp.exp(-ax * ax)
    return jnp.where(x >= 0, y, -y)


def _gelu(x):
    return 0.5 * x * (1.0 + _erf(x * _INV_SQRT2))


def _groupnorm1(acc, gamma, beta, eps):
    """GroupNorm(1, C) over a whole (HW, C) f32 sample in one traversal.

    Sublane (HW) reductions first -> (1, C); the expensive cross-lane reduce is only C wide.
    Sum and sum-of-squares are taken in the same pass (no dependent (x-mean)^2 sweep).
    """
    hw, c = acc.shape
    n = hw * c
    s1 = jnp.sum(acc, axis=0, keepdims=True)            # (1, C)
    s2 = jnp.sum(acc * acc, axis=0, keepdims=True)      # (1, C)
    tot1 = jnp.sum(s1, axis=1, keepdims=True)           # (1, 1)
    tot2 = jnp.sum(s2, axis=1, keepdims=True)           # (1, 1)
    mean = tot1 / n
    var = tot2 / n - mean * mean
    inv = lax.rsqrt(var + eps)
    return (acc - mean) * inv * gamma + beta


def _double_conv_kernel(x_ref, w1_ref, g1_ref, b1_ref, w2_ref, g2_ref, b2_ref,
                        o_ref, xpad, patch1, midpad, patch2, *, residual, eps):
    _, H, W, Cin = x_ref.shape
    Cmid = w1_ref.shape[1]
    Cout = o_ref.shape[2]
    HW = H * W
    bf16 = jnp.bfloat16

    def conv3x3(pad_ref, patch_ref, src_f32, c, w_ref):
        # In-kernel halo: zero border + interior copy (replaces the XLA jnp.pad HBM trip).
        # Padded scratch stays f32 (sublane-offset stores/reads are safest in f32);
        # the im2col patch is bf16 so the MXU sees bf16 operands and VMEM bytes are halved.
        pad_ref[...] = jnp.zeros_like(pad_ref)
        pad_ref[1:H + 1, 1:W + 1, :] = src_f32
        for dy in range(3):
            for dx in range(3):
                t = dy * 3 + dx
                patch_ref[:, :, t * c:(t + 1) * c] = (
                    pad_ref[dy:dy + H, dx:dx + W, :].astype(bf16))
        # One deep-K (K = 9*c) bf16 MXU dot, f32 accumulation.
        return jnp.dot(patch_ref[...].reshape(HW, 9 * c), w_ref[...],
                       preferred_element_type=jnp.float32)

    # ---- stage 1: conv -> GN(1, Cmid) -> GELU (f32 epilogue math) -------------------
    h = conv3x3(xpad, patch1, x_ref[0], Cin, w1_ref)                   # (HW, Cmid) f32
    h = _gelu(_groupnorm1(h, g1_ref[...], b1_ref[...], eps))

    # ---- stage 2: conv -> GN(1, Cout) (mid activation never leaves VMEM) ------------
    y = conv3x3(midpad, patch2, h.reshape(H, W, Cmid), Cmid, w2_ref)   # (HW, Cout) f32
    y = _groupnorm1(y, g2_ref[...], b2_ref[...], eps)

    # ---- epilogue ---------------------------------------------------------------------
    if residual:
        # residual == x (Cin == Cout): reuse the already-resident input block.
        y = _gelu(x_ref[0].reshape(HW, Cout) + y)
    o_ref[0] = y


def double_conv_pallas(params, x_nhwc, *, residual=False, eps=1e-5):
    """x_nhwc: (B, H, W, Cin) f32 -> (B, H, W, Cout) f32.  One pallas_call total."""
    B, H, W, Cin = x_nhwc.shape
    Cmid = params["w1"].shape[-1]
    Cout = params["w2"].shape[-1]
    if residual:
        assert Cin == Cout, "residual DoubleConv requires Cin == Cout"
    HW = H * W
    bf16 = jnp.bfloat16

    # Weights flattened to tap-major K = (kh, kw, Cin) and cast to bf16 once (tiny,
    # grid-invariant).  Activations stay f32 at the HBM boundary and are cast in-kernel
    # (casting x in XLA would add an extra HBM pass).
    w1f = params["w1"].reshape(9 * Cin, Cmid).astype(bf16)
    w2f = params["w2"].reshape(9 * Cmid, Cout).astype(bf16)
    g1 = params["g1"].reshape(1, Cmid).astype(jnp.float32)
    b1 = params["b1"].reshape(1, Cmid).astype(jnp.float32)
    g2 = params["g2"].reshape(1, Cout).astype(jnp.float32)
    b2 = params["b2"].reshape(1, Cout).astype(jnp.float32)

    kernel = functools.partial(_double_conv_kernel, residual=residual, eps=eps)

    out = pl.pallas_call(
        kernel,
        out_shape=jax.ShapeDtypeStruct((B, HW, Cout), jnp.float32),
        grid=(B,),
        in_specs=[
            pl.BlockSpec((1, H, W, Cin), lambda b: (b, 0, 0, 0)),
            # grid-invariant parameter tiles (index_map -> 0)
            pl.BlockSpec((9 * Cin, Cmid), lambda b: (0, 0)),
            pl.BlockSpec((1, Cmid), lambda b: (0, 0)),
            pl.BlockSpec((1, Cmid), lambda b: (0, 0)),
            pl.BlockSpec((9 * Cmid, Cout), lambda b: (0, 0)),
            pl.BlockSpec((1, Cout), lambda b: (0, 0)),
            pl.BlockSpec((1, Cout), lambda b: (0, 0)),
        ],
        out_specs=pl.BlockSpec((1, HW, Cout), lambda b: (b, 0, 0)),
        scratch_shapes=[
            pltpu.VMEM((H + 2, W + 2, Cin), jnp.float32),    # padded x (halo in VMEM)
            pltpu.VMEM((H, W, 9 * Cin), bf16),               # im2col patch, stage 1
            pltpu.VMEM((H + 2, W + 2, Cmid), jnp.float32),   # padded mid activation
            pltpu.VMEM((H, W, 9 * Cmid), bf16),              # im2col patch, stage 2
        ],
        compiler_params=pltpu.CompilerParams(
            dimension_semantics=("parallel",),
            vmem_limit_bytes=48 * 1024 * 1024),              # < v7x 64 MiB physical
    )(x_nhwc, w1f, g1, b1, w2f, g2, b2)
    return out.reshape(B, H, W, Cout)


# ----------------------------------------------------------------------------
# DoubleConv forward (module boundary uses PyTorch NCHW)
# ----------------------------------------------------------------------------
def double_conv_forward(params, x, residual=False):
    """x: (B, Cin, H, W) NCHW -> (B, Cout, H, W) NCHW."""
    # TODO(synk): keep the surrounding network NHWC to drop these two extra HBM passes.
    xh = jnp.transpose(x, (0, 2, 3, 1))
    out = double_conv_pallas(params, xh, residual=residual)
    return jnp.transpose(out, (0, 3, 1, 2))


def init_params(key, in_channels, out_channels, mid_channels=None):
    if mid_channels is None:
        mid_channels = out_channels
    k1, k2, k3, k4, k5, k6 = jax.random.split(key, 6)
    f32 = jnp.float32
    return {
        # conv weights in (kh, kw, Cin, Cout)
        "w1": jax.random.normal(k1, (3, 3, in_channels, mid_channels), f32) * 0.1,
        "g1": 1.0 + 0.1 * jax.random.normal(k3, (mid_channels,), f32),
        "b1": 0.1 * jax.random.normal(k4, (mid_channels,), f32),
        "w2": jax.random.normal(k2, (3, 3, mid_channels, out_channels), f32) * 0.1,
        "g2": 1.0 + 0.1 * jax.random.normal(k5, (out_channels,), f32),
        "b2": 0.1 * jax.random.normal(k6, (out_channels,), f32),
    }


# ----------------------------------------------------------------------------
# Pure-JAX reference (matches the kernel's bf16-MXU / f32-epilogue precision)
# ----------------------------------------------------------------------------
def double_conv_reference(params, x, residual=False):
    bf16 = jnp.bfloat16
    xh = jnp.transpose(x, (0, 2, 3, 1))

    def conv(h, w):
        return lax.conv_general_dilated(
            h.astype(bf16), w.astype(bf16), window_strides=(1, 1), padding="SAME",
            dimension_numbers=("NHWC", "HWIO", "NHWC"),
            preferred_element_type=jnp.float32)

    def gn(h, g, b):
        mean = jnp.mean(h, axis=(1, 2, 3), keepdims=True)
        var = jnp.mean(jnp.square(h - mean), axis=(1, 2, 3), keepdims=True)
        return (h - mean) * lax.rsqrt(var + 1e-5) * g + b

    h = gn(conv(xh, params["w1"]), params["g1"], params["b1"])
    h = jax.nn.gelu(h, approximate=False)
    h = gn(conv(h, params["w2"]), params["g2"], params["b2"])
    out = jax.nn.gelu(xh + h, approximate=False) if residual else h
    return jnp.transpose(out, (0, 3, 1, 2))


if __name__ == "__main__":
    # B=4: even and >2 grid steps, so on v7x both TensorCores get pipelined work.
    B, H, W = 4, 16, 16
    key = jax.random.PRNGKey(0)
    kx1, kx2, kp1, kp2 = jax.random.split(key, 4)

    # Tolerance note: both kernel and reference use bf16 MXU operands with f32
    # accumulation; residual differences come from summation order plus rare one-ulp
    # bf16 rounding flips of the mid activation, so 1e-2 abs (outputs are O(1)).
    TOL = 1e-2

    # 1) plain DoubleConv(in=4, out=8)   (mid defaults to out)
    x1 = jax.random.normal(kx1, (B, 4, H, W), jnp.float32)
    p1 = init_params(kp1, 4, 8)
    f1 = jax.jit(functools.partial(double_conv_forward, residual=False))
    out1 = jax.block_until_ready(f1(p1, x1))
    assert out1.shape == (B, 8, H, W), out1.shape
    assert bool(jnp.all(jnp.isfinite(out1)))
    err1 = float(jnp.max(jnp.abs(out1 - double_conv_reference(p1, x1, residual=False))))
    assert err1 < TOL, err1

    # 2) residual DoubleConv(in=8, out=8, residual=True)
    x2 = jax.random.normal(kx2, (B, 8, H, W), jnp.float32)
    p2 = init_params(kp2, 8, 8)
    f2 = jax.jit(functools.partial(double_conv_forward, residual=True))
    out2 = jax.block_until_ready(f2(p2, x2))
    assert out2.shape == (B, 8, H, W), out2.shape
    assert bool(jnp.all(jnp.isfinite(out2)))
    err2 = float(jnp.max(jnp.abs(out2 - double_conv_reference(p2, x2, residual=True))))
    assert err2 < TOL, err2

    print("KERNEL_OK")
</pallas_src>

<mosaic_0001>
module attributes {stable_mosaic.version = 11 : i64} {
  func.func @_double_conv_kernel(%arg0: i32, %arg1: memref<1x16x16x4xf32, #tpu.memory_space<vmem>>, %arg2: memref<36x8xbf16, #tpu.memory_space<vmem>>, %arg3: memref<1x8xf32, #tpu.memory_space<vmem>>, %arg4: memref<1x8xf32, #tpu.memory_space<vmem>>, %arg5: memref<72x8xbf16, #tpu.memory_space<vmem>>, %arg6: memref<1x8xf32, #tpu.memory_space<vmem>>, %arg7: memref<1x8xf32, #tpu.memory_space<vmem>>, %arg8: memref<1x256x8xf32, #tpu.memory_space<vmem>>, %arg9: memref<18x18x4xf32, #tpu.memory_space<vmem>>, %arg10: memref<16x16x36xbf16, #tpu.memory_space<vmem>>, %arg11: memref<18x18x8xf32, #tpu.memory_space<vmem>>, %arg12: memref<16x16x72xbf16, #tpu.memory_space<vmem>>) attributes {dimension_semantics = [#tpu.dimension_semantics<parallel>], iteration_bounds = array<i64: 4>, scalar_prefetch = 0 : i64, scratch_operands = 4 : i64, tpu.core_type = #tpu.core_type<tc>, window_params = [{transform_indices = @transform_0, window_bounds = array<i64: 1, 16, 16, 4>}, {pipeline_mode = #tpu.pipeline_mode<synchronous>, transform_indices = @transform_1, window_bounds = array<i64: 36, 8>}, {pipeline_mode = #tpu.pipeline_mode<synchronous>, transform_indices = @transform_2, window_bounds = array<i64: 1, 8>}, {pipeline_mode = #tpu.pipeline_mode<synchronous>, transform_indices = @transform_3, window_bounds = array<i64: 1, 8>}, {pipeline_mode = #tpu.pipeline_mode<synchronous>, transform_indices = @transform_4, window_bounds = array<i64: 72, 8>}, {pipeline_mode = #tpu.pipeline_mode<synchronous>, transform_indices = @transform_5, window_bounds = array<i64: 1, 8>}, {pipeline_mode = #tpu.pipeline_mode<synchronous>, transform_indices = @transform_6, window_bounds = array<i64: 1, 8>}, {transform_indices = @transform_7, window_bounds = array<i64: 1, 256, 8>}]} {
    %c0 = arith.constant 0 : index
    %c0_0 = arith.constant 0 : index
    %c0_1 = arith.constant 0 : index
    %c0_2 = arith.constant 0 : index
    %0 = vector.load %arg1[%c0, %c0_0, %c0_1, %c0_2] : memref<1x16x16x4xf32, #tpu.memory_space<vmem>>, vector<1x16x16x4xf32>
    %1 = vector.shape_cast %0 : vector<1x16x16x4xf32> to vector<16x16x4xf32>
    %cst = arith.constant 0.000000e+00 : f32
    %2 = vector.broadcast %cst : f32 to vector<18x18x4xf32>
    %c0_3 = arith.constant 0 : index
    %c0_4 = arith.constant 0 : index
    %c0_5 = arith.constant 0 : index
    %3 = vector.load %arg9[%c0_3, %c0_4, %c0_5] : memref<18x18x4xf32, #tpu.memory_space<vmem>>, vector<18x18x4xf32>
    tpu.vector_store %arg9[%c0_3, %c0_4, %c0_5], %2 {strides = array<i32>} : memref<18x18x4xf32, #tpu.memory_space<vmem>>, vector<18x18x4xf32>,
    %c1 = arith.constant 1 : index
    %c1_6 = arith.constant 1 : index
    %c0_7 = arith.constant 0 : index
    %4 = vector.load %arg9[%c1, %c1_6, %c0_7] : memref<18x18x4xf32, #tpu.memory_space<vmem>>, vector<16x16x4xf32>
    tpu.vector_store %arg9[%c1, %c1_6, %c0_7], %1 {strides = array<i32>} : memref<18x18x4xf32, #tpu.memory_space<vmem>>, vector<16x16x4xf32>,
    %c0_8 = arith.constant 0 : index
    %c0_9 = arith.constant 0 : index
    %c0_10 = arith.constant 0 : index
    %5 = vector.load %arg9[%c0_8, %c0_9, %c0_10] : memref<18x18x4xf32, #tpu.memory_space<vmem>>, vector<16x16x4xf32>
    %6 = arith.truncf %5 : vector<16x16x4xf32> to vector<16x16x4xbf16>
    %c0_11 = arith.constant 0 : index
    %c0_12 = arith.constant 0 : index
    %c0_13 = arith.constant 0 : index
    %7 = vector.load %arg10[%c0_11, %c0_12, %c0_13] : memref<16x16x36xbf16, #tpu.memory_space<vmem>>, vector<16x16x4xbf16>
    tpu.vector_store %arg10[%c0_11, %c0_12, %c0_13], %6 {strides = array<i32>} : memref<16x16x36xbf16, #tpu.memory_space<vmem>>, vector<16x16x4xbf16>,
    %c0_14 = arith.constant 0 : index
    %c1_15 = arith.constant 1 : index
    %c0_16 = arith.constant 0 : index
    %8 = vector.load %arg9[%c0_14, %c1_15, %c0_16] : memref<18x18x4xf32, #tpu.memory_space<vmem>>, vector<16x16x4xf32>
    %9 = arith.truncf %8 : vector<16x16x4xf32> to vector<16x16x4xbf16>
    %c0_17 = arith.constant 0 : index
    %c0_18 = arith.constant 0 : index
    %c4 = arith.constant 4 : index
    %10 = vector.load %arg10[%c0_17, %c0_18, %c4] : memref<16x16x36xbf16, #tpu.memory_space<vmem>>, vector<16x16x4xbf16>
    tpu.vector_store %arg10[%c0_17, %c0_18, %c4], %9 {strides = array<i32>} : memref<16x16x36xbf16, #tpu.memory_space<vmem>>, vector<16x16x4xbf16>,
    %c0_19 = arith.constant 0 : index
    %c2 = arith.constant 2 : index
    %c0_20 = arith.constant 0 : index
    %11 = vector.load %arg9[%c0_19, %c2, %c0_20] : memref<18x18x4xf32, #tpu.memory_space<vmem>>, vector<16x16x4xf32>
    %12 = arith.truncf %11 : vector<16x16x4xf32> to vector<16x16x4xbf16>
    %c0_21 = arith.constant 0 : index
    %c0_22 = arith.constant 0 : index
    %c8 = arith.constant 8 : index
    %13 = vector.load %arg10[%c0_21, %c0_22, %c8] : memref<16x16x36xbf16, #tpu.memory_space<vmem>>, vector<16x16x4xbf16>
    tpu.vector_store %arg10[%c0_21, %c0_22, %c8], %12 {strides = array<i32>} : memref<16x16x36xbf16, #tpu.memory_space<vmem>>, vector<16x16x4xbf16>,
    %c1_23 = arith.constant 1 : index
    %c0_24 = arith.constant 0 : index
    %c0_25 = arith.constant 0 : index
    %14 = vector.load %arg9[%c1_23, %c0_24, %c0_25] : memref<18x18x4xf32, #tpu.memory_space<vmem>>, vector<16x16x4xf32>
    %15 = arith.truncf %14 : vector<16x16x4xf32> to vector<16x16x4xbf16>
    %c0_26 = arith.constant 0 : index
    %c0_27 = arith.constant 0 : index
    %c12 = arith.constant 12 : index
    %16 = vector.load %arg10[%c0_26, %c0_27, %c12] : memref<16x16x36xbf16, #tpu.memory_space<vmem>>, vector<16x16x4xbf16>
    tpu.vector_store %arg10[%c0_26, %c0_27, %c12], %15 {strides = array<i32>} : memref<16x16x36xbf16, #tpu.memory_space<vmem>>, vector<16x16x4xbf16>,
    %c1_28 = arith.constant 1 : index
    %c1_29 = arith.constant 1 : index
    %c0_30 = arith.constant 0 : index
    %17 = vector.load %arg9[%c1_28, %c1_29, %c0_30] : memref<18x18x4xf32, #tpu.memory_space<vmem>>, vector<16x16x4xf32>
    %18 = arith.truncf %17 : vector<16x16x4xf32> to vector<16x16x4xbf16>
    %c0_31 = arith.constant 0 : index
    %c0_32 = arith.constant 0 : index
    %c16 = arith.constant 16 : index
    %19 = vector.load %arg10[%c0_31, %c0_32, %c16] : memref<16x16x36xbf16, #tpu.memory_space<vmem>>, vector<16x16x4xbf16>
    tpu.vector_store %arg10[%c0_31, %c0_32, %c16], %18 {strides = array<i32>} : memref<16x16x36xbf16, #tpu.memory_space<vmem>>, vector<16x16x4xbf16>,
    %c1_33 = arith.constant 1 : index
    %c2_34 = arith.constant 2 : index
    %c0_35 = arith.constant 0 : index
    %20 = vector.load %arg9[%c1_33, %c2_34, %c0_35] : memref<18x18x4xf32, #tpu.memory_space<vmem>>, vector<16x16x4xf32>
    %21 = arith.truncf %20 : vector<16x16x4xf32> to vector<16x16x4xbf16>
    %c0_36 = arith.constant 0 : index
    %c0_37 = arith.constant 0 : index
    %c20 = arith.constant 20 : index
    %22 = vector.load %arg10[%c0_36, %c0_37, %c20] : memref<16x16x36xbf16, #tpu.memory_space<vmem>>, vector<16x16x4xbf16>
    tpu.vector_store %arg10[%c0_36, %c0_37, %c20], %21 {strides = array<i32>} : memref<16x16x36xbf16, #tpu.memory_space<vmem>>, vector<16x16x4xbf16>,
    %c2_38 = arith.constant 2 : index
    %c0_39 = arith.constant 0 : index
    %c0_40 = arith.constant 0 : index
    %23 = vector.load %arg9[%c2_38, %c0_39, %c0_40] : memref<18x18x4xf32, #tpu.memory_space<vmem>>, vector<16x16x4xf32>
    %24 = arith.truncf %23 : vector<16x16x4xf32> to vector<16x16x4xbf16>
    %c0_41 = arith.constant 0 : index
    %c0_42 = arith.constant 0 : index
    %c24 = arith.constant 24 : index
    %25 = vector.load %arg10[%c0_41, %c0_42, %c24] : memref<16x16x36xbf16, #tpu.memory_space<vmem>>, vector<16x16x4xbf16>
    tpu.vector_store %arg10[%c0_41, %c0_42, %c24], %24 {strides = array<i32>} : memref<16x16x36xbf16, #tpu.memory_space<vmem>>, vector<16x16x4xbf16>,
    %c2_43 = arith.constant 2 : index
    %c1_44 = arith.constant 1 : index
    %c0_45 = arith.constant 0 : index
    %26 = vector.load %arg9[%c2_43, %c1_44, %c0_45] : memref<18x18x4xf32, #tpu.memory_space<vmem>>, vector<16x16x4xf32>
    %27 = arith.truncf %26 : vector<16x16x4xf32> to vector<16x16x4xbf16>
    %c0_46 = arith.constant 0 : index
    %c0_47 = arith.constant 0 : index
    %c28 = arith.constant 28 : index
    %28 = vector.load %arg10[%c0_46, %c0_47, %c28] : memref<16x16x36xbf16, #tpu.memory_space<vmem>>, vector<16x16x4xbf16>
    tpu.vector_store %arg10[%c0_46, %c0_47, %c28], %27 {strides = array<i32>} : memref<16x16x36xbf16, #tpu.memory_space<vmem>>, vector<16x16x4xbf16>,
    %c2_48 = arith.constant 2 : index
    %c2_49 = arith.constant 2 : index
    %c0_50 = arith.constant 0 : index
    %29 = vector.load %arg9[%c2_48, %c2_49, %c0_50] : memref<18x18x4xf32, #tpu.memory_space<vmem>>, vector<16x16x4xf32>
    %30 = arith.truncf %29 : vector<16x16x4xf32> to vector<16x16x4xbf16>
    %c0_51 = arith.constant 0 : index
    %c0_52 = arith.constant 0 : index
    %c32 = arith.constant 32 : index
    %31 = vector.load %arg10[%c0_51, %c0_52, %c32] : memref<16x16x36xbf16, #tpu.memory_space<vmem>>, vector<16x16x4xbf16>
    tpu.vector_store %arg10[%c0_51, %c0_52, %c32], %30 {strides = array<i32>} : memref<16x16x36xbf16, #tpu.memory_space<vmem>>, vector<16x16x4xbf16>,
    %c0_53 = arith.constant 0 : index
    %c0_54 = arith.constant 0 : index
    %c0_55 = arith.constant 0 : index
    %32 = vector.load %arg10[%c0_53, %c0_54, %c0_55] : memref<16x16x36xbf16, #tpu.memory_space<vmem>>, vector<16x16x36xbf16>
    %33 = vector.shape_cast %32 : vector<16x16x36xbf16> to vector<256x36xbf16>
    %c0_56 = arith.constant 0 : index
    %c0_57 = arith.constant 0 : index
    %34 = vector.load %arg2[%c0_56, %c0_57] : memref<36x8xbf16, #tpu.memory_space<vmem>>, vector<36x8xbf16>
    %cst_58 = arith.constant dense<0.000000e+00> : vector<256x8xf32>
    %35 = tpu.matmul %33, %34, %cst_58 {dimension_numbers = #tpu.dot_dimension_numbers<[1], [0], [0], [1], [0, 0, 1, 1], [], []>} : vector<256x36xbf16>, vector<36x8xbf16>, vector<256x8xf32> -> vector<256x8xf32>
    %c0_59 = arith.constant 0 : index
    %c0_60 = arith.constant 0 : index
    %36 = vector.load %arg3[%c0_59, %c0_60] : memref<1x8xf32, #tpu.memory_space<vmem>>, vector<1x8xf32>
    %c0_61 = arith.constant 0 : index
    %c0_62 = arith.constant 0 : index
    %37 = vector.load %arg4[%c0_61, %c0_62] : memref<1x8xf32, #tpu.memory_space<vmem>>, vector<1x8xf32>
    %cst_63 = arith.constant dense<0.000000e+00> : vector<8xf32>
    %38 = vector.multi_reduction <add>, %35, %cst_63 [0] : vector<256x8xf32> to vector<8xf32>
    %39 = vector.shape_cast %38 : vector<8xf32> to vector<1x8xf32>
    %40 = arith.mulf %35, %35 : vector<256x8xf32>
    %cst_64 = arith.constant dense<0.000000e+00> : vector<8xf32>
    %41 = vector.multi_reduction <add>, %40, %cst_64 [0] : vector<256x8xf32> to vector<8xf32>
    %42 = vector.shape_cast %41 : vector<8xf32> to vector<1x8xf32>
    %cst_65 = arith.constant dense<0.000000e+00> : vector<1xf32>
    %43 = vector.multi_reduction <add>, %39, %cst_65 [1] : vector<1x8xf32> to vector<1xf32>
    %44 = vector.shape_cast %43 : vector<1xf32> to vector<1x1xf32>
    %cst_66 = arith.constant dense<0.000000e+00> : vector<1xf32>
    %45 = vector.multi_reduction <add>, %42, %cst_66 [1] : vector<1x8xf32> to vector<1xf32>
    %46 = vector.shape_cast %45 : vector<1xf32> to vector<1x1xf32>
    %cst_67 = arith.constant 2.048000e+03 : f32
    %47 = vector.broadcast %cst_67 : f32 to vector<1x1xf32>
    %48 = arith.divf %44, %47 : vector<1x1xf32>
    %cst_68 = arith.constant 2.048000e+03 : f32
    %49 = vector.broadcast %cst_68 : f32 to vector<1x1xf32>
    %50 = arith.divf %46, %49 : vector<1x1xf32>
    %51 = arith.mulf %48, %48 : vector<1x1xf32>
    %52 = arith.subf %50, %51 : vector<1x1xf32>
    %cst_69 = arith.constant 9.99999974E-6 : f32
    %53 = vector.broadcast %cst_69 : f32 to vector<1x1xf32>
    %54 = arith.addf %52, %53 : vector<1x1xf32>
    %55 = math.rsqrt %54 : vector<1x1xf32>
    %56 = vector.broadcast %48 : vector<1x1xf32> to vector<256x8xf32>
    %57 = arith.subf %35, %56 : vector<256x8xf32>
    %58 = vector.broadcast %55 : vector<1x1xf32> to vector<256x8xf32>
    %59 = arith.mulf %57, %58 : vector<256x8xf32>
    %60 = vector.broadcast %36 : vector<1x8xf32> to vector<256x8xf32>
    %61 = arith.mulf %59, %60 : vector<256x8xf32>
    %62 = vector.broadcast %37 : vector<1x8xf32> to vector<256x8xf32>
    %63 = arith.addf %61, %62 : vector<256x8xf32>
    %cst_70 = arith.constant 5.000000e-01 : f32
    %64 = vector.broadcast %cst_70 : f32 to vector<256x8xf32>
    %65 = arith.mulf %64, %63 : vector<256x8xf32>
    %cst_71 = arith.constant 0.707106769 : f32
    %66 = vector.broadcast %cst_71 : f32 to vector<256x8xf32>
    %67 = arith.mulf %63, %66 : vector<256x8xf32>
    %68 = math.absf %67 : vector<256x8xf32>
    %cst_72 = arith.constant 0.327591091 : f32
    %69 = vector.broadcast %cst_72 : f32 to vector<256x8xf32>
    %70 = arith.mulf %69, %68 : vector<256x8xf32>
    %cst_73 = arith.constant 1.000000e+00 : f32
    %71 = vector.broadcast %cst_73 : f32 to vector<256x8xf32>
    %72 = arith.addf %71, %70 : vector<256x8xf32>
    %cst_74 = arith.constant 1.000000e+00 : f32
    %73 = vector.broadcast %cst_74 : f32 to vector<256x8xf32>
    %74 = arith.divf %73, %72 : vector<256x8xf32>
    %cst_75 = arith.constant 1.06140542 : f32
    %75 = vector.broadcast %cst_75 : f32 to vector<256x8xf32>
    %76 = arith.mulf %75, %74 : vector<256x8xf32>
    %cst_76 = arith.constant -1.45315206 : f32
    %77 = vector.broadcast %cst_76 : f32 to vector<256x8xf32>
    %78 = arith.addf %76, %77 : vector<256x8xf32>
    %79 = arith.mulf %78, %74 : vector<256x8xf32>
    %cst_77 = arith.constant 1.42141378 : f32
    %80 = vector.broadcast %cst_77 : f32 to vector<256x8xf32>
    %81 = arith.addf %79, %80 : vector<256x8xf32>
    %82 = arith.mulf %81, %74 : vector<256x8xf32>
    %cst_78 = arith.constant -0.284496725 : f32
    %83 = vector.broadcast %cst_78 : f32 to vector<256x8xf32>
    %84 = arith.addf %82, %83 : vector<256x8xf32>
    %85 = arith.mulf %84, %74 : vector<256x8xf32>
    %cst_79 = arith.constant 0.254829586 : f32
    %86 = vector.broadcast %cst_79 : f32 to vector<256x8xf32>
    %87 = arith.addf %85, %86 : vector<256x8xf32>
    %88 = arith.mulf %87, %74 : vector<256x8xf32>
    %cst_80 = arith.constant 0.000000e+00 : f32
    %89 = vector.broadcast %cst_80 : f32 to vector<256x8xf32>
    %90 = arith.subf %89, %68 : vector<256x8xf32>
    %91 = arith.mulf %90, %68 : vector<256x8xf32>
    %92 = math.exp %91 : vector<256x8xf32>
    %93 = arith.mulf %88, %92 : vector<256x8xf32>
    %cst_81 = arith.constant 1.000000e+00 : f32
    %94 = vector.broadcast %cst_81 : f32 to vector<256x8xf32>
    %95 = arith.subf %94, %93 : vector<256x8xf32>
    %cst_82 = arith.constant 0.000000e+00 : f32
    %96 = vector.broadcast %cst_82 : f32 to vector<256x8xf32>
    %97 = arith.cmpf oge, %67, %96 : vector<256x8xf32>
    %cst_83 = arith.constant 0.000000e+00 : f32
    %98 = vector.broadcast %cst_83 : f32 to vector<256x8xf32>
    %99 = arith.subf %98, %95 : vector<256x8xf32>
    %100 = arith.select %97, %95, %99 : vector<256x8xi1>, vector<256x8xf32>
    %cst_84 = arith.constant 1.000000e+00 : f32
    %101 = vector.broadcast %cst_84 : f32 to vector<256x8xf32>
    %102 = arith.addf %101, %100 : vector<256x8xf32>
    %103 = arith.mulf %65, %102 : vector<256x8xf32>
    %104 = vector.shape_cast %103 : vector<256x8xf32> to vector<16x16x8xf32>
    %cst_85 = arith.constant 0.000000e+00 : f32
    %105 = vector.broadcast %cst_85 : f32 to vector<18x18x8xf32>
    %c0_86 = arith.constant 0 : index
    %c0_87 = arith.constant 0 : index
    %c0_88 = arith.constant 0 : index
    %106 = vector.load %arg11[%c0_86, %c0_87, %c0_88] : memref<18x18x8xf32, #tpu.memory_space<vmem>>, vector<18x18x8xf32>
    tpu.vector_store %arg11[%c0_86, %c0_87, %c0_88], %105 {strides = array<i32>} : memref<18x18x8xf32, #tpu.memory_space<vmem>>, vector<18x18x8xf32>,
    %c1_89 = arith.constant 1 : index
    %c1_90 = arith.constant 1 : index
    %c0_91 = arith.constant 0 : index
    %107 = vector.load %arg11[%c1_89, %c1_90, %c0_91] : memref<18x18x8xf32, #tpu.memory_space<vmem>>, vector<16x16x8xf32>
    tpu.vector_store %arg11[%c1_89, %c1_90, %c0_91], %104 {strides = array<i32>} : memref<18x18x8xf32, #tpu.memory_space<vmem>>, vector<16x16x8xf32>,
    %c0_92 = arith.constant 0 : index
    %c0_93 = arith.constant 0 : index
    %c0_94 = arith.constant 0 : index
    %108 = vector.load %arg11[%c0_92, %c0_93, %c0_94] : memref<18x18x8xf32, #tpu.memory_space<vmem>>, vector<16x16x8xf32>
    %109 = arith.truncf %108 : vector<16x16x8xf32> to vector<16x16x8xbf16>
    %c0_95 = arith.constant 0 : index
    %c0_96 = arith.constant 0 : index
    %c0_97 = arith.constant 0 : index
    %110 = vector.load %arg12[%c0_95, %c0_96, %c0_97] : memref<16x16x72xbf16, #tpu.memory_space<vmem>>, vector<16x16x8xbf16>
    tpu.vector_store %arg12[%c0_95, %c0_96, %c0_97], %109 {strides = array<i32>} : memref<16x16x72xbf16, #tpu.memory_space<vmem>>, vector<16x16x8xbf16>,
    %c0_98 = arith.constant 0 : index
    %c1_99 = arith.constant 1 : index
    %c0_100 = arith.constant 0 : index
    %111 = vector.load %arg11[%c0_98, %c1_99, %c0_100] : memref<18x18x8xf32, #tpu.memory_space<vmem>>, vector<16x16x8xf32>
    %112 = arith.truncf %111 : vector<16x16x8xf32> to vector<16x16x8xbf16>
    %c0_101 = arith.constant 0 : index
    %c0_102 = arith.constant 0 : index
    %c8_103 = arith.constant 8 : index
    %113 = vector.load %arg12[%c0_101, %c0_102, %c8_103] : memref<16x16x72xbf16, #tpu.memory_space<vmem>>, vector<16x16x8xbf16>
    tpu.vector_store %arg12[%c0_101, %c0_102, %c8_103], %112 {strides = array<i32>} : memref<16x16x72xbf16, #tpu.memory_space<vmem>>, vector<16x16x8xbf16>,
    %c0_104 = arith.constant 0 : index
    %c2_105 = arith.constant 2 : index
    %c0_106 = arith.constant 0 : index
    %114 = vector.load %arg11[%c0_104, %c2_105, %c0_106] : memref<18x18x8xf32, #tpu.memory_space<vmem>>, vector<16x16x8xf32>
    %115 = arith.truncf %114 : vector<16x16x8xf32> to vector<16x16x8xbf16>
    %c0_107 = arith.constant 0 : index
    %c0_108 = arith.constant 0 : index
    %c16_109 = arith.constant 16 : index
    %116 = vector.load %arg12[%c0_107, %c0_108, %c16_109] : memref<16x16x72xbf16, #tpu.memory_space<vmem>>, vector<16x16x8xbf16>
    tpu.vector_store %arg12[%c0_107, %c0_108, %c16_109], %115 {strides = array<i32>} : memref<16x16x72xbf16, #tpu.memory_space<vmem>>, vector<16x16x8xbf16>,
    %c1_110 = arith.constant 1 : index
    %c0_111 = arith.constant 0 : index
    %c0_112 = arith.constant 0 : index
    %117 = vector.load %arg11[%c1_110, %c0_111, %c0_112] : memref<18x18x8xf32, #tpu.memory_space<vmem>>, vector<16x16x8xf32>
    %118 = arith.truncf %117 : vector<16x16x8xf32> to vector<16x16x8xbf16>
    %c0_113 = arith.constant 0 : index
    %c0_114 = arith.constant 0 : index
    %c24_115 = arith.constant 24 : index
    %119 = vector.load %arg12[%c0_113, %c0_114, %c24_115] : memref<16x16x72xbf16, #tpu.memory_space<vmem>>, vector<16x16x8xbf16>
    tpu.vector_store %arg12[%c0_113, %c0_114, %c24_115], %118 {strides = array<i32>} : memref<16x16x72xbf16, #tpu.memory_space<vmem>>, vector<16x16x8xbf16>,
    %c1_116 = arith.constant 1 : index
    %c1_117 = arith.constant 1 : index
    %c0_118 = arith.constant 0 : index
    %120 = vector.load %arg11[%c1_116, %c1_117, %c0_118] : memref<18x18x8xf32, #tpu.memory_space<vmem>>, vector<16x16x8xf32>
    %121 = arith.truncf %120 : vector<16x16x8xf32> to vector<16x16x8xbf16>
    %c0_119 = arith.constant 0 : index
    %c0_120 = arith.constant 0 : index
    %c32_121 = arith.constant 32 : index
    %122 = vector.load %arg12[%c0_119, %c0_120, %c32_121] : memref<16x16x72xbf16, #tpu.memory_space<vmem>>, vector<16x16x8xbf16>
    tpu.vector_store %arg12[%c0_119, %c0_120, %c32_121], %121 {strides = array<i32>} : memref<16x16x72xbf16, #tpu.memory_space<vmem>>, vector<16x16x8xbf16>,
    %c1_122 = arith.constant 1 : index
    %c2_123 = arith.constant 2 : index
    %c0_124 = arith.constant 0 : index
    %123 = vector.load %arg11[%c1_122, %c2_123, %c0_124] : memref<18x18x8xf32, #tpu.memory_space<vmem>>, vector<16x16x8xf32>
    %124 = arith.truncf %123 : vector<16x16x8xf32> to vector<16x16x8xbf16>
    %c0_125 = arith.constant 0 : index
    %c0_126 = arith.constant 0 : index
    %c40 = arith.constant 40 : index
    %125 = vector.load %arg12[%c0_125, %c0_126, %c40] : memref<16x16x72xbf16, #tpu.memory_space<vmem>>, vector<16x16x8xbf16>
    tpu.vector_store %arg12[%c0_125, %c0_126, %c40], %124 {strides = array<i32>} : memref<16x16x72xbf16, #tpu.memory_space<vmem>>, vector<16x16x8xbf16>,
    %c2_127 = arith.constant 2 : index
    %c0_128 = arith.constant 0 : index
    %c0_129 = arith.constant 0 : index
    %126 = vector.load %arg11[%c2_127, %c0_128, %c0_129] : memref<18x18x8xf32, #tpu.memory_space<vmem>>, vector<16x16x8xf32>
    %127 = arith.truncf %126 : vector<16x16x8xf32> to vector<16x16x8xbf16>
    %c0_130 = arith.constant 0 : index
    %c0_131 = arith.constant 0 : index
    %c48 = arith.constant 48 : index
    %128 = vector.load %arg12[%c0_130, %c0_131, %c48] : memref<16x16x72xbf16, #tpu.memory_space<vmem>>, vector<16x16x8xbf16>
    tpu.vector_store %arg12[%c0_130, %c0_131, %c48], %127 {strides = array<i32>} : memref<16x16x72xbf16, #tpu.memory_space<vmem>>, vector<16x16x8xbf16>,
    %c2_132 = arith.constant 2 : index
    %c1_133 = arith.constant 1 : index
    %c0_134 = arith.constant 0 : index
    %129 = vector.load %arg11[%c2_132, %c1_133, %c0_134] : memref<18x18x8xf32, #tpu.memory_space<vmem>>, vector<16x16x8xf32>
    %130 = arith.truncf %129 : vector<16x16x8xf32> to vector<16x16x8xbf16>
    %c0_135 = arith.constant 0 : index
    %c0_136 = arith.constant 0 : index
    %c56 = arith.constant 56 : index
    %131 = vector.load %arg12[%c0_135, %c0_136, %c56] : memref<16x16x72xbf16, #tpu.memory_space<vmem>>, vector<16x16x8xbf16>
    tpu.vector_store %arg12[%c0_135, %c0_136, %c56], %130 {strides = array<i32>} : memref<16x16x72xbf16, #tpu.memory_space<vmem>>, vector<16x16x8xbf16>,
    %c2_137 = arith.constant 2 : index
    %c2_138 = arith.constant 2 : index
    %c0_139 = arith.constant 0 : index
    %132 = vector.load %arg11[%c2_137, %c2_138, %c0_139] : memref<18x18x8xf32, #tpu.memory_space<vmem>>, vector<16x16x8xf32>
    %133 = arith.truncf %132 : vector<16x16x8xf32> to vector<16x16x8xbf16>
    %c0_140 = arith.constant 0 : index
    %c0_141 = arith.constant 0 : index
    %c64 = arith.constant 64 : index
    %134 = vector.load %arg12[%c0_140, %c0_141, %c64] : memref<16x16x72xbf16, #tpu.memory_space<vmem>>, vector<16x16x8xbf16>
    tpu.vector_store %arg12[%c0_140, %c0_141, %c64], %133 {strides = array<i32>} : memref<16x16x72xbf16, #tpu.memory_space<vmem>>, vector<16x16x8xbf16>,
    %c0_142 = arith.constant 0 : index
    %c0_143 = arith.constant 0 : index
    %c0_144 = arith.constant 0 : index
    %135 = vector.load %arg12[%c0_142, %c0_143, %c0_144] : memref<16x16x72xbf16, #tpu.memory_space<vmem>>, vector<16x16x72xbf16>
    %136 = vector.shape_cast %135 : vector<16x16x72xbf16> to vector<256x72xbf16>
    %c0_145 = arith.constant 0 : index
    %c0_146 = arith.constant 0 : index
    %137 = vector.load %arg5[%c0_145, %c0_146] : memref<72x8xbf16, #tpu.memory_space<vmem>>, vector<72x8xbf16>
    %cst_147 = arith.constant dense<0.000000e+00> : vector<256x8xf32>
    %138 = tpu.matmul %136, %137, %cst_147 {dimension_numbers = #tpu.dot_dimension_numbers<[1], [0], [0], [1], [0, 0, 1, 1], [], []>} : vector<256x72xbf16>, vector<72x8xbf16>, vector<256x8xf32> -> vector<256x8xf32>
    %c0_148 = arith.constant 0 : index
    %c0_149 = arith.constant 0 : index
    %139 = vector.load %arg6[%c0_148, %c0_149] : memref<1x8xf32, #tpu.memory_space<vmem>>, vector<1x8xf32>
    %c0_150 = arith.constant 0 : index
    %c0_151 = arith.constant 0 : index
    %140 = vector.load %arg7[%c0_150, %c0_151] : memref<1x8xf32, #tpu.memory_space<vmem>>, vector<1x8xf32>
    %cst_152 = arith.constant dense<0.000000e+00> : vector<8xf32>
    %141 = vector.multi_reduction <add>, %138, %cst_152 [0] : vector<256x8xf32> to vector<8xf32>
    %142 = vector.shape_cast %141 : vector<8xf32> to vector<1x8xf32>
    %143 = arith.mulf %138, %138 : vector<256x8xf32>
    %cst_153 = arith.constant dense<0.000000e+00> : vector<8xf32>
    %144 = vector.multi_reduction <add>, %143, %cst_153 [0] : vector<256x8xf32> to vector<8xf32>
    %145 = vector.shape_cast %144 : vector<8xf32> to vector<1x8xf32>
    %cst_154 = arith.constant dense<0.000000e+00> : vector<1xf32>
    %146 = vector.multi_reduction <add>, %142, %cst_154 [1] : vector<1x8xf32> to vector<1xf32>
    %147 = vector.shape_cast %146 : vector<1xf32> to vector<1x1xf32>
    %cst_155 = arith.constant dense<0.000000e+00> : vector<1xf32>
    %148 = vector.multi_reduction <add>, %145, %cst_155 [1] : vector<1x8xf32> to vector<1xf32>
    %149 = vector.shape_cast %148 : vector<1xf32> to vector<1x1xf32>
    %cst_156 = arith.constant 2.048000e+03 : f32
    %150 = vector.broadcast %cst_156 : f32 to vector<1x1xf32>
    %151 = arith.divf %147, %150 : vector<1x1xf32>
    %cst_157 = arith.constant 2.048000e+03 : f32
    %152 = vector.broadcast %cst_157 : f32 to vector<1x1xf32>
    %153 = arith.divf %149, %152 : vector<1x1xf32>
    %154 = arith.mulf %151, %151 : vector<1x1xf32>
    %155 = arith.subf %153, %154 : vector<1x1xf32>
    %cst_158 = arith.constant 9.99999974E-6 : f32
    %156 = vector.broadcast %cst_158 : f32 to vector<1x1xf32>
    %157 = arith.addf %155, %156 : vector<1x1xf32>
    %158 = math.rsqrt %157 : vector<1x1xf32>
    %159 = vector.broadcast %151 : vector<1x1xf32> to vector<256x8xf32>
    %160 = arith.subf %138, %159 : vector<256x8xf32>
    %161 = vector.broadcast %158 : vector<1x1xf32> to vector<256x8xf32>
    %162 = arith.mulf %160, %161 : vector<256x8xf32>
    %163 = vector.broadcast %139 : vector<1x8xf32> to vector<256x8xf32>
    %164 = arith.mulf %162, %163 : vector<256x8xf32>
    %165 = vector.broadcast %140 : vector<1x8xf32> to vector<256x8xf32>
    %166 = arith.addf %164, %165 : vector<256x8xf32>
    %c0_159 = arith.constant 0 : index
    %c0_160 = arith.constant 0 : index
    %c0_161 = arith.constant 0 : index
    %167 = vector.load %arg8[%c0_159, %c0_160, %c0_161] : memref<1x256x8xf32, #tpu.memory_space<vmem>>, vector<1x256x8xf32>
    %168 = vector.shape_cast %167 : vector<1x256x8xf32> to vector<256x8xf32>
    %169 = vector.shape_cast %166 : vector<256x8xf32> to vector<1x256x8xf32>
    tpu.vector_store %arg8[%c0_159, %c0_160, %c0_161], %169 {strides = array<i32>} : memref<1x256x8xf32, #tpu.memory_space<vmem>>, vector<1x256x8xf32>,
    return
  }
  func.func @transform_0(%arg0: i32) -> (i32, i32, i32, i32) {
    %c0_i32 = arith.constant 0 : i32
    %c0_i32_0 = arith.constant 0 : i32
    %c0_i32_1 = arith.constant 0 : i32
    %c0_i32_2 = arith.constant 0 : i32
    return %arg0, %c0_i32, %c0_i32_0, %c0_i32_1 : i32, i32, i32, i32
  }
  func.func @transform_1(%arg0: i32) -> (i32, i32) {
    %c0_i32 = arith.constant 0 : i32
    %c0_i32_0 = arith.constant 0 : i32
    %c0_i32_1 = arith.constant 0 : i32
    return %c0_i32, %c0_i32_0 : i32, i32
  }
  func.func @transform_2(%arg0: i32) -> (i32, i32) {
    %c0_i32 = arith.constant 0 : i32
    %c0_i32_0 = arith.constant 0 : i32
    %c0_i32_1 = arith.constant 0 : i32
    return %c0_i32, %c0_i32_0 : i32, i32
  }
  func.func @transform_3(%arg0: i32) -> (i32, i32) {
    %c0_i32 = arith.constant 0 : i32
    %c0_i32_0 = arith.constant 0 : i32
    %c0_i32_1 = arith.constant 0 : i32
    return %c0_i32, %c0_i32_0 : i32, i32
  }
  func.func @transform_4(%arg0: i32) -> (i32, i32) {
    %c0_i32 = arith.constant 0 : i32
    %c0_i32_0 = arith.constant 0 : i32
    %c0_i32_1 = arith.constant 0 : i32
    return %c0_i32, %c0_i32_0 : i32, i32
  }
  func.func @transform_5(%arg0: i32) -> (i32, i32) {
    %c0_i32 = arith.constant 0 : i32
    %c0_i32_0 = arith.constant 0 : i32
    %c0_i32_1 = arith.constant 0 : i32
    return %c0_i32, %c0_i32_0 : i32, i32
  }
  func.func @transform_6(%arg0: i32) -> (i32, i32) {
    %c0_i32 = arith.constant 0 : i32
    %c0_i32_0 = arith.constant 0 : i32
    %c0_i32_1 = arith.constant 0 : i32
    return %c0_i32, %c0_i32_0 : i32, i32
  }
  func.func @transform_7(%arg0: i32) -> (i32, i32, i32) {
    %c0_i32 = arith.constant 0 : i32
    %c0_i32_0 = arith.constant 0 : i32
    %c0_i32_1 = arith.constant 0 : i32
    return %arg0, %c0_i32, %c0_i32_0 : i32, i32, i32
  }
}

</mosaic_0001>

<bundles_post_ra>
// kernel: double_conv_forward.1
= control target key start
LH: loop header
LB: loop body
LE: loop exit
PB: predicated region body
PF: predicated region fallthrough
CT: control target
= control target key end

     0   :  { %s5201_s24 = smov 0   ;;  %s8489_s0 = inlined_call_operand.vmem [shape: f32[4,16,16,4], index: 0, kind: input, shape index: {}]   ;;  %s8490_s1 = inlined_call_operand.vmem [shape: bf16[36,8], index: 1, kind: input, shape index: {}]   ;;  %s8491_s2 = inlined_call_operand.vmem [shape: f32[1,8], index: 2, kind: input, shape index: {}]   ;;  %s8492_s3 = inlined_call_operand.vmem [shape: f32[1,8], index: 3, kind: input, shape index: {}]   ;;  %s8493_s4 = inlined_call_operand.vmem [shape: bf16[72,8], index: 4, kind: input, shape index: {}]   ;;  %s8494_s5 = inlined_call_operand.vmem [shape: f32[1,8], index: 5, kind: input, shape index: {}]   ;;  %s8495_s6 = inlined_call_operand.vmem [shape: f32[1,8], index: 6, kind: input, shape index: {}]   ;;  %s8496_s7 = inlined_call_operand.vmem [shape: f32[4,256,8], index: 7, kind: output, shape index: {}]  }
   0x1 LB: > { %s4800_s25 = sadd.s32 4294967295, %s5146_s24   ;;  %p4804_p0 = scmp.ge.s32.totalorder %s5146_s24, 1  ;;  %s5146_s24 = sphi %s5201_s24, %s17_s24  }
   0x2   : > { %p237_p1 = scmp.lt.s32.totalorder %s5146_s24, 5 }
   0x4   : > { %p238_p2 = pnand %p4804_p0, %p237_p1 }
   0x6   : > { %241 = sbr.rel (%p238_p2) target bundleno = 1882 (0x75a), region = 48 }
   0xd   : > { %vm312_vm0 = vcmask 31744   ;;  %vm315_vm1 = vcmask 25600   ;;  %v5148_v0 = vmov 0.0   ;;  %p269_p3 = scmp.lt.s32.totalorder %s4800_s25, 3  ;;  %s5149_s30 = smov 4   ;;  %vm1583_vm2 = vcmask 1041408  }
   0xe   : > { %313 = vst.msk [vmem:[#allocation2] sm:$0xff] %vm312_vm0, %v5148_v0  ;;  %314 = vst.msk [vmem:[#allocation2 + $0x8] sm:$0xff] %vm312_vm0, %v5148_v0  ;;  %s5150_s8 = smov 8   ;;  %s5151_s9 = smov 12   ;;  %vm577_vm3 = vcmask 64544   ;;  %vm706_vm4 = vcmask 97344  }
   0xf   : > { %316 = vst.msk [vmem:[#allocation2 + $0x10] sm:$0x3] %vm315_vm1, %v5148_v0  ;;  %319 = vst.msk [vmem:[#allocation2 + $0x28] sm:$0x3] %vm315_vm1, %v5148_v0  ;;  %s9180_s25 = smov (!%p269_p3, %s4800_s25), 3  ;;  %s5152_s10 = smov 16  }
  0x10   : > { %317 = vst.msk [vmem:[#allocation2 + $0x18] sm:$0xff] %vm312_vm0, %v5148_v0  ;;  %318 = vst.msk [vmem:[#allocation2 + $0x20] sm:$0xff] %vm312_vm0, %v5148_v0  ;;  %s4855_s26 = sshll.u32 %s9180_s25, 8  ;;  %s5153_s11 = smov 20   ;;  %vm835_vm5 = vcmask 130144   ;;  %vm964_vm6 = vcmask 162944  }
  0x11   : > { %320 = vst.msk [vmem:[#allocation2 + $0x30] sm:$0xff] %vm312_vm0, %v5148_v0  ;;  %321 = vst.msk [vmem:[#allocation2 + $0x38] sm:$0xff] %vm312_vm0, %v5148_v0  ;;  %s5329_s29 = scalar_lea.vmem %s8489_s0, %s4855_s26  ;;  %s5154_s14 = smov 24   ;;  %vm1093_vm7 = vcmask 195744   ;;  %vm1223_vm8 = vcmask 228544   ;;  %vm1352_vm9 = vcmask 261344  }
  0x12   : > { %322 = vst.msk [vmem:[#allocation2 + $0x40] sm:$0x3] %vm315_vm1, %v5148_v0  ;;  %325 = vst.msk [vmem:[#allocation2 + $0x58] sm:$0x3] %vm315_vm1, %v5148_v0  ;;  %v280_v1 = vld [vmem:[%s5329_s29] sm:$0xff]  ;;  %v281_v2 = vld [vmem:[%s5329_s29 + $0x8] sm:$0xff]  ;;  %s8388_s28 = scalar_lea.vmem %s8496_s7, %s4855_s26 }
  0x13   : > { %323 = vst.msk [vmem:[#allocation2 + $0x48] sm:$0xff] %vm312_vm0, %v5148_v0  ;;  %324 = vst.msk [vmem:[#allocation2 + $0x50] sm:$0xff] %vm312_vm0, %v5148_v0  ;;  %v282_v3 = vld [vmem:[%s5329_s29 + $0x10] sm:$0xff]  ;;  %v283_v9 = vld [vmem:[%s5329_s29 + $0x18] sm:$0xff]  ;;  %s5155_s19 = smov 28   ;;  %s5156_s20 = smov 32  }
  0x14   : > { %326 = vst.msk [vmem:[#allocation2 + $0x60] sm:$0xff] %vm312_vm0, %v5148_v0  ;;  %327 = vst.msk [vmem:[#allocation2 + $0x68] sm:$0xff] %vm312_vm0, %v5148_v0  ;;  %v284_v10 = vld [vmem:[%s5329_s29 + $0x20] sm:$0xff]  ;;  %v285_v12 = vld [vmem:[%s5329_s29 + $0x28] sm:$0xff]  ;;  %vm1481_vm10 = vcmask 294144   ;;  %vm1534_vm11 = vcmask 293888  }
  0x15   : > { %328 = vst.msk [vmem:[#allocation2 + $0x70] sm:$0x3] %vm315_vm1, %v5148_v0  ;;  %331 = vst.msk [vmem:[#allocation2 + $0x88] sm:$0x3] %vm315_vm1, %v5148_v0  ;;  %v465_v4 = vld [vmem:[#allocation2 + $0x1] sm:$0xff]  ;;  %v286_v13 = vld [vmem:[%s5329_s29 + $0x30] sm:$0xff] }
  0x16   : > { %329 = vst.msk [vmem:[#allocation2 + $0x78] sm:$0xff] %vm312_vm0, %v5148_v0  ;;  %330 = vst.msk [vmem:[#allocation2 + $0x80] sm:$0xff] %vm312_vm0, %v5148_v0  ;;  %v466_v5 = vld [vmem:[#allocation2 + $0x9] sm:$0xff]  ;;  %v287_v14 = vld [vmem:[%s5329_s29 + $0x38] sm:$0xff]  ;;  %vm8600_vm12 = vcmask 64512   ;;  %vm2940_vm13 = vcmask 58368  }
  0x17   : > { %332 = vst.msk [vmem:[#allocation2 + $0x90] sm:$0xff] %vm312_vm0, %v5148_v0  ;;  %333 = vst.msk [vmem:[#allocation2 + $0x98] sm:$0xff] %vm312_vm0, %v5148_v0  ;;  %v594_v6 = vld [vmem:[#allocation2 + $0x2] sm:$0xff]  ;;  %v497_v7 = vpack.c.bf16 %v466_v5, %v465_v4  ;;  %v595_v8 = vld [vmem:[#allocation2 + $0xa] sm:$0xff]  ;;  %s5157_s21 = smov 48   ;;  %s5158_s22 = smov 56  }
  0x18   : > { %334 = vst.msk [vmem:[#allocation2 + $0xa0] sm:$0x3] %vm315_vm1, %v5148_v0  ;;  %337 = vst.msk [vmem:[#allocation2 + $0xb8] sm:$0x3] %vm315_vm1, %v5148_v0  ;;  %v626_v11 = vpack.c.bf16 %v595_v8, %v594_v6  ;;  %v288_v15 = vld [vmem:[%s5329_s29 + $0x40] sm:$0xff]  ;;  %v289_v16 = vld [vmem:[%s5329_s29 + $0x48] sm:$0xff] }
  0x19   : > { %335 = vst.msk [vmem:[#allocation2 + $0xa8] sm:$0xff] %vm312_vm0, %v5148_v0  ;;  %336 = vst.msk [vmem:[#allocation2 + $0xb0] sm:$0xff] %vm312_vm0, %v5148_v0  ;;  %529 = vrot.lane.b32.xlu0 %v497_v7, %s5149_s30  ;;  %v290_v17 = vld [vmem:[%s5329_s29 + $0x50] sm:$0xff]  ;;  %v291_v18 = vld [vmem:[%s5329_s29 + $0x58] sm:$0xff]  ;;  %vm8599_vm14 = vcmask 130112   ;;  %vm8598_vm15 = vcmask 195712  }
  0x1a   : > { %338 = vst.msk [vmem:[#allocation2 + $0xc0] sm:$0xff] %vm312_vm0, %v5148_v0  ;;  %339 = vst.msk [vmem:[#allocation2 + $0xc8] sm:$0xff] %vm312_vm0, %v5148_v0  ;;  %658 = vrot.lane.b32.xlu1 %v626_v11, %s5150_s8  ;;  %v292_v19 = vld [vmem:[%s5329_s29 + $0x60] sm:$0xff]  ;;  %v293_v20 = vld [vmem:[%s5329_s29 + $0x68] sm:$0xff] }
  0x1b   : > { %340 = vst.msk [vmem:[#allocation2 + $0xd0] sm:$0x3] %vm315_vm1, %v5148_v0  ;;  %343 = vst.msk [vmem:[#allocation2 + $0xe8] sm:$0x3] %vm315_vm1, %v5148_v0  ;;  %v294_v21 = vld [vmem:[%s5329_s29 + $0x70] sm:$0xff]  ;;  %v295_v22 = vld [vmem:[%s5329_s29 + $0x78] sm:$0xff] }
  0x1c   : > { %341 = vst.msk [vmem:[#allocation2 + $0xd8] sm:$0xff] %vm312_vm0, %v5148_v0  ;;  %342 = vst.msk [vmem:[#allocation2 + $0xe0] sm:$0xff] %vm312_vm0, %v5148_v0  ;;  %v402_v23 = vld [vmem:[#allocation2 + $0x8] sm:$0xff]  ;;  %v401_v24 = vld [vmem:[#allocation2] sm:$0xff] }
  0x1d   : > { %344 = vst.msk [vmem:[#allocation2 + $0xf0] sm:$0xff] %vm312_vm0, %v5148_v0  ;;  %345 = vst.msk [vmem:[#allocation2 + $0xf8] sm:$0xff] %vm312_vm0, %v5148_v0  ;;  %v296_v25 = vld [vmem:[%s5329_s29 + $0x80] sm:$0xff]  ;;  %v297_v26 = vld [vmem:[%s5329_s29 + $0x88] sm:$0xff]  ;;  %v433_v30 = vpack.c.bf16 %v402_v23, %v401_v24 }
  0x1e   : > { %346 = vst.msk [vmem:[#allocation2 + $0x100] sm:$0x3] %vm315_vm1, %v5148_v0  ;;  %349 = vst.msk [vmem:[#allocation2 + $0x118] sm:$0x3] %vm315_vm1, %v5148_v0  ;;  %v298_v6 = vld [vmem:[%s5329_s29 + $0x90] sm:$0xff]  ;;  %v299_v7 = vld [vmem:[%s5329_s29 + $0x98] sm:$0xff] }
  0x1f   : > { %347 = vst.msk [vmem:[#allocation2 + $0x108] sm:$0xff] %vm312_vm0, %v5148_v0  ;;  %348 = vst.msk [vmem:[#allocation2 + $0x110] sm:$0xff] %vm312_vm0, %v5148_v0  ;;  %v5000_v8 = vld [vmem:[%s8490_s1] sm:$0xff]   ;;  %v301_v11 = vld [vmem:[%s5329_s29 + $0xa8] sm:$0xff] }
  0x20   : > { %350 = vst.msk [vmem:[#allocation2 + $0x120] sm:$0xff] %vm312_vm0, %v5148_v0  ;;  %351 = vst.msk [vmem:[#allocation2 + $0x128] sm:$0xff] %vm312_vm0, %v5148_v0  ;;  %4897 = vmatprep.subr.bf16.mxu0 %v5000_v8  ;;  %v302_v24 = vld [vmem:[%s5329_s29 + $0xb0] sm:$0xff] }
  0x21   : > { %352 = vst.msk [vmem:[#allocation2 + $0x130] sm:$0x3] %vm315_vm1, %v5148_v0  ;;  %355 = vst.msk [vmem:[#allocation2 + $0x148] sm:$0x3] %vm315_vm1, %v5148_v0  ;;  %4898 = vmatpush3.bf16.msra.mxu0 %v5000_v8 }
  0x22   : > { %353 = vst.msk [vmem:[#allocation2 + $0x138] sm:$0xff] %vm312_vm0, %v5148_v0  ;;  %354 = vst.msk [vmem:[#allocation2 + $0x140] sm:$0xff] %vm312_vm0, %v5148_v0 }
  0x23   : > { %356 = vst.msk [vmem:[#allocation2 + $0x150] sm:$0xff] %vm312_vm0, %v5148_v0  ;;  %357 = vst.msk [vmem:[#allocation2 + $0x158] sm:$0xff] %vm312_vm0, %v5148_v0 }
  0x24   : > { %358 = vst.msk [vmem:[#allocation2 + $0x160] sm:$0x3] %vm315_vm1, %v5148_v0  ;;  %361 = vst.msk [vmem:[#allocation2 + $0x178] sm:$0x3] %vm315_vm1, %v5148_v0 }
  0x25   : > { %359 = vst.msk [vmem:[#allocation2 + $0x168] sm:$0xff] %vm312_vm0, %v5148_v0  ;;  %360 = vst.msk [vmem:[#allocation2 + $0x170] sm:$0xff] %vm312_vm0, %v5148_v0 }
  0x26   : > { %362 = vst.msk [vmem:[#allocation2 + $0x180] sm:$0xff] %vm312_vm0, %v5148_v0  ;;  %363 = vst.msk [vmem:[#allocation2 + $0x188] sm:$0xff] %vm312_vm0, %v5148_v0 }
  0x27   : > { %364 = vst.msk [vmem:[#allocation2 + $0x190] sm:$0x3] %vm315_vm1, %v5148_v0  ;;  %367 = vst.msk [vmem:[#allocation2 + $0x1a8] sm:$0x3] %vm315_vm1, %v5148_v0 }
  0x28   : > { %365 = vst.msk [vmem:[#allocation2 + $0x198] sm:$0xff] %vm312_vm0, %v5148_v0  ;;  %366 = vst.msk [vmem:[#allocation2 + $0x1a0] sm:$0xff] %vm312_vm0, %v5148_v0 }
  0x29   : > { %369 = vst.msk [vmem:[#allocation2 + $0x19] sm:$0xff] %vm312_vm0, %v280_v1  ;;  %370 = vst.msk [vmem:[#allocation2 + $0x21] sm:$0xff] %vm312_vm0, %v281_v2 }
  0x2a   : > { %371 = vst.msk [vmem:[#allocation2 + $0x31] sm:$0xff] %vm312_vm0, %v282_v3  ;;  %372 = vst.msk [vmem:[#allocation2 + $0x39] sm:$0xff] %vm312_vm0, %v283_v9  ;;  %v5001_v9 = vld [vmem:[%s8490_s1 + $0x8] sm:$0xff]  }
  0x2b   : > { %373 = vst.msk [vmem:[#allocation2 + $0x49] sm:$0xff] %vm312_vm0, %v284_v10  ;;  %374 = vst.msk [vmem:[#allocation2 + $0x51] sm:$0xff] %vm312_vm0, %v285_v12  ;;  %v300_v10 = vld [vmem:[%s5329_s29 + $0xa0] sm:$0xff]  ;;  %4899 = vmatprep.subr.bf16.mxu0 %v5001_v9 }
  0x2c   : > { %375 = vst.msk [vmem:[#allocation2 + $0x61] sm:$0xff] %vm312_vm0, %v286_v13  ;;  %376 = vst.msk [vmem:[#allocation2 + $0x69] sm:$0xff] %vm312_vm0, %v287_v14  ;;  %v5002_v13 = vld [vmem:[%s8490_s1 + $0x10] ss:$0 sps:$4 sm:$0x33]   ;;  %4900 = vmatpush3.bf16.msra.mxu0 %v5001_v9  ;;  %v311_v9 = vld [vmem:[%s5329_s29 + $0xf8] sm:$0xff] }
  0x2d   : > { %377 = vst.msk [vmem:[#allocation2 + $0x79] sm:$0xff] %vm312_vm0, %v288_v15  ;;  %378 = vst.msk [vmem:[#allocation2 + $0x81] sm:$0xff] %vm312_vm0, %v289_v16  ;;  %4977 = vmatprep.subr.msk.bf16.mxu0 %vm1583_vm2, %v5002_v13 }
  0x2e   : > { %379 = vst.msk [vmem:[#allocation2 + $0x91] sm:$0xff] %vm312_vm0, %v290_v17  ;;  %380 = vst.msk [vmem:[#allocation2 + $0x99] sm:$0xff] %vm312_vm0, %v291_v18  ;;  %v1585_v18 = vsel %vm1583_vm2, %v5002_v13, 0 }
  0x2f   : > { %381 = vst.msk [vmem:[#allocation2 + $0xa9] sm:$0xff] %vm312_vm0, %v292_v19  ;;  %382 = vst.msk [vmem:[#allocation2 + $0xb1] sm:$0xff] %vm312_vm0, %v293_v20 }
  0x30   : > { %383 = vst.msk [vmem:[#allocation2 + $0xc1] sm:$0xff] %vm312_vm0, %v294_v21  ;;  %384 = vst.msk [vmem:[#allocation2 + $0xc9] sm:$0xff] %vm312_vm0, %v295_v22  ;;  %v467_v27 = vld [vmem:[#allocation2 + $0x19] sm:$0xff]  ;;  %v468_v28 = vld [vmem:[#allocation2 + $0x21] sm:$0xff]  ;;  %4902 = vmatpush3.bf16.msra.mxu0 %v1585_v18 }
  0x31   : > { %v596_v29 = vld [vmem:[#allocation2 + $0x1a] sm:$0xff]  ;;  %385 = vst.msk [vmem:[#allocation2 + $0xd9] sm:$0xff] %vm312_vm0, %v296_v25  ;;  %386 = vst.msk [vmem:[#allocation2 + $0xe1] sm:$0xff] %vm312_vm0, %v297_v26  ;;  %v498_v31 = vpack.c.bf16 %v468_v28, %v467_v27  ;;  %v597_v32 = vld [vmem:[#allocation2 + $0x22] sm:$0xff] }
  0x32   : > { %v723_v33 = vld [vmem:[#allocation2 + $0x18] sm:$0xff]  ;;  %v724_v34 = vld [vmem:[#allocation2 + $0x20] sm:$0xff]  ;;  %v627_v35 = vpack.c.bf16 %v597_v32, %v596_v29  ;;  %v725_v37 = vld [vmem:[#allocation2 + $0x30] sm:$0xff]  ;;  %449 = vst.msk [vmem:[#allocation3] sm:$0xff] %vm312_vm0, %v433_v30 }
  0x33   : > { %v755_v36 = vpack.c.bf16 %v724_v34, %v723_v33  ;;  %v726_v38 = vld [vmem:[#allocation2 + $0x38] sm:$0xff]  ;;  %531 = vrot.lane.b32.xlu0 %v498_v31, %s5149_s30  ;;  %v1113_v40 = vld [vmem:[#allocation2 + $0x48] sm:$0xff]  ;;  %v1114_v41 = vld [vmem:[#allocation2 + $0x50] sm:$0xff]  ;;  %387 = vst.msk [vmem:[#allocation2 + $0xf1] sm:$0xff] %vm312_vm0, %v298_v6 }
  0x34   : > { %v756_v39 = vpack.c.bf16 %v726_v38, %v725_v37  ;;  %660 = vrot.lane.b32.xlu1 %v627_v35, %s5150_s8  ;;  %v854_v42 = vld [vmem:[#allocation2 + $0x31] sm:$0xff]  ;;  %v855_v43 = vld [vmem:[#allocation2 + $0x39] sm:$0xff]  ;;  %v5373_v44 = vpack.c.bf16 %v1114_v41, %v1113_v40  ;;  %v730_v46 = vld [vmem:[#allocation2 + $0x68] sm:$0xff]  ;;  %388 = vst.msk [vmem:[#allocation2 + $0xf9] sm:$0xff] %vm312_vm0, %v299_v7 }
  0x35   : > { %450 = vst.msk [vmem:[#allocation3 + $0x8] sm:$0xff] %vm312_vm0, %v755_v36  ;;  %v729_v45 = vld [vmem:[#allocation2 + $0x60] sm:$0xff]  ;;  %v5382_v48 = vpack.c.bf16 %v855_v43, %v854_v42  ;;  %v1117_v49 = vld [vmem:[#allocation2 + $0x78] sm:$0xff]  ;;  %v733_v54 = vld [vmem:[#allocation2 + $0x90] sm:$0xff] }
  0x36   : > { %451 = vst.msk [vmem:[#allocation3 + $0x10] sm:$0xff] %vm312_vm0, %v756_v39  ;;  %v5377_v47 = vpack.c.bf16 %v730_v46, %v729_v45  ;;  %452 = vst.msk [vmem:[#allocation3 + $0x18] sm:$0xff] %vm312_vm0, %v5373_v44  ;;  %v1118_v50 = vld [vmem:[#allocation2 + $0x80] sm:$0xff]  ;;  %v983_v51 = vld [vmem:[#allocation2 + $0x32] sm:$0xff] }
  0x37   : > { %787 = vrot.lane.b32.xlu0 %v755_v36, %s5151_s9  ;;  %v984_v52 = vld [vmem:[#allocation2 + $0x3a] sm:$0xff]  ;;  %v5384_v53 = vpack.c.bf16 %v1118_v50, %v1117_v49  ;;  %v1121_v58 = vld [vmem:[#allocation2 + $0xa8] sm:$0xff]  ;;  %v1122_v59 = vld [vmem:[#allocation2 + $0xb0] sm:$0xff]  ;;  %389 = vst.msk [vmem:[#allocation2 + $0x109] sm:$0xff] %vm312_vm0, %v300_v10 }
  0x38   : > { %789 = vrot.lane.b32.xlu1 %v756_v39, %s5151_s9  ;;  %453 = vst.msk [vmem:[#allocation3 + $0x20] sm:$0xff] %vm312_vm0, %v5377_v47  ;;  %v734_v55 = vld [vmem:[#allocation2 + $0x98] sm:$0xff]  ;;  %v5395_v57 = vpack.c.bf16 %v984_v52, %v983_v51  ;;  %v5397_v60 = vpack.c.bf16 %v1122_v59, %v1121_v58  ;;  %v737_v61 = vld [vmem:[#allocation2 + $0xc0] sm:$0xff]  ;;  %v738_v62 = vld [vmem:[#allocation2 + $0xc8] sm:$0xff] }
  0x39   : > { %v5389_v56 = vpack.c.bf16 %v734_v55, %v733_v54  ;;  %454 = vst.msk [vmem:[#allocation3 + $0x28] sm:$0xff] %vm312_vm0, %v5384_v53  ;;  %v5402_v63 = vpack.c.bf16 %v738_v62, %v737_v61  ;;  %v1125_v1 = vld [vmem:[#allocation2 + $0xd8] sm:$0xff]  ;;  %v1126_v2 = vld [vmem:[#allocation2 + $0xe0] sm:$0xff]  ;;  %v1242_v3 = vld [vmem:[#allocation2 + $0x49] sm:$0xff] }
  0x3a   : > { %456 = vst.msk [vmem:[#allocation3 + $0x38] sm:$0xff] %vm312_vm0, %v5397_v60  ;;  %v1243_v4 = vld [vmem:[#allocation2 + $0x51] sm:$0xff]  ;;  %v5408_v5 = vpack.c.bf16 %v1126_v2, %v1125_v1  ;;  %390 = vst.msk [vmem:[#allocation2 + $0x111] sm:$0xff] %vm312_vm0, %v301_v11  ;;  %v858_v26 = vld [vmem:[#allocation2 + $0x61] sm:$0xff] }
  0x3b   : > { %916 = vrot.lane.b32.xlu0 %v498_v31, %s5152_s10  ;;  %455 = vst.msk [vmem:[#allocation3 + $0x30] sm:$0xff] %vm312_vm0, %v5389_v56  ;;  %457 = vst.msk [vmem:[#allocation3 + $0x40] sm:$0xff] %vm312_vm0, %v5402_v63  ;;  %v1273_v12 = vpack.c.bf16 %v1243_v4, %v1242_v3  ;;  %v1371_v14 = vld [vmem:[#allocation2 + $0x4a] sm:$0xff]  ;;  %v1372_v15 = vld [vmem:[#allocation2 + $0x52] sm:$0xff] }
  0x3c   : > { %918 = vrot.lane.b32.xlu1 %v5382_v48, %s5152_s10  ;;  %458 = vst.msk [vmem:[#allocation3 + $0x48] sm:$0xff] %vm312_vm0, %v5408_v5  ;;  %v741_v16 = vld [vmem:[#allocation2 + $0xf0] sm:$0xff]  ;;  %v742_v17 = vld [vmem:[#allocation2 + $0xf8] sm:$0xff]  ;;  %v1402_v19 = vpack.c.bf16 %v1372_v15, %v1371_v14  ;;  %391 = vst.msk [vmem:[#allocation2 + $0x121] sm:$0xff] %vm312_vm0, %v302_v24 }
  0x3d   : > { %v5439_v20 = vpack.c.bf16 %v742_v17, %v741_v16  ;;  %v303_v25 = vld [vmem:[%s5329_s29 + $0xb8] sm:$0xff]  ;;  %v859_v27 = vld [vmem:[#allocation2 + $0x69] sm:$0xff]  ;;  %v304_v34 = vld [vmem:[%s5329_s29 + $0xc0] sm:$0xff]  ;;  %400 = vst.msk [vmem:[#allocation2 + $0x189] sm:$0xff] %vm312_vm0, %v311_v9 }
  0x3e   : > { %v1129_v21 = vld [vmem:[#allocation2 + $0x108] sm:$0xff]  ;;  %392 = vst.msk [vmem:[#allocation2 + $0x129] sm:$0xff] %vm312_vm0, %v303_v25  ;;  %v887_v31 = vpack.c.bf16 %v859_v27, %v858_v26  ;;  %393 = vst.msk [vmem:[#allocation2 + $0x139] sm:$0xff] %vm312_vm0, %v304_v34  ;;  %v1246_v37 = vld [vmem:[#allocation2 + $0x79] sm:$0xff] }
  0x3f   : > { %1045 = vrot.lane.b32.xlu0 %v627_v35, %s5153_s11  ;;  %459 = vst.msk [vmem:[#allocation3 + $0x50] sm:$0xff] %vm312_vm0, %v5439_v20  ;;  %v987_v32 = vld [vmem:[#allocation2 + $0x62] sm:$0xff]  ;;  %v988_v33 = vld [vmem:[#allocation2 + $0x6a] sm:$0xff]  ;;  %v1375_v43 = vld [vmem:[#allocation2 + $0x7a] sm:$0xff] }
  0x40   : > { %1047 = vrot.lane.b32.xlu1 %v5395_v57, %s5153_s11  ;;  %v305_v35 = vld [vmem:[%s5329_s29 + $0xc8] sm:$0xff]  ;;  %v1016_v36 = vpack.c.bf16 %v988_v33, %v987_v32  ;;  %v306_v46 = vld [vmem:[%s5329_s29 + $0xd0] sm:$0xff]  ;;  %v863_v49 = vld [vmem:[#allocation2 + $0x99] sm:$0xff]  ;;  %2945 = vst.msk [vmem:[#allocation4 + $0x30] sm:$0xff] %vm8600_vm12, %v5148_v0 }
  0x41   : > { %v1130_v22 = vld [vmem:[#allocation2 + $0x110] sm:$0xff]  ;;  %394 = vst.msk [vmem:[#allocation2 + $0x141] sm:$0xff] %vm312_vm0, %v305_v35  ;;  %v1247_v38 = vld [vmem:[#allocation2 + $0x81] sm:$0xff]  ;;  %395 = vst.msk [vmem:[#allocation2 + $0x151] sm:$0xff] %vm312_vm0, %v306_v46 }
  0x42   : > { %v5443_v23 = vpack.c.bf16 %v1130_v22, %v1129_v21  ;;  %v1275_v42 = vpack.c.bf16 %v1247_v38, %v1246_v37  ;;  %v991_v55 = vld [vmem:[#allocation2 + $0x92] sm:$0xff]  ;;  %v308_v58 = vld [vmem:[%s5329_s29 + $0xe0] sm:$0xff]  ;;  %v309_v59 = vld [vmem:[%s5329_s29 + $0xe8] sm:$0xff]  ;;  %2946 = vst.msk [vmem:[#allocation4 + $0x38] sm:$0xff] %vm8600_vm12, %v5148_v0 }
  0x43   : > { %1175 = vrot.lane.b32.xlu0 %v756_v39, %s5154_s14  ;;  %v745_v28 = vld [vmem:[#allocation2 + $0x120] sm:$0xff]  ;;  %397 = vst.msk [vmem:[#allocation2 + $0x169] sm:$0xff] %vm312_vm0, %v308_v58  ;;  %398 = vst.msk [vmem:[#allocation2 + $0x171] sm:$0xff] %vm312_vm0, %v309_v59  ;;  %v1250_v61 = vld [vmem:[#allocation2 + $0xa9] sm:$0xff] }
  0x44   : > { %1177 = vrot.lane.b32.xlu1 %v5373_v44, %s5154_s14  ;;  %460 = vst.msk [vmem:[#allocation3 + $0x58] sm:$0xff] %vm312_vm0, %v5443_v23  ;;  %v1251_v62 = vld [vmem:[#allocation2 + $0xb1] sm:$0xff]  ;;  %v866_v10 = vld [vmem:[#allocation2 + $0xc1] sm:$0xff]  ;;  %v867_v11 = vld [vmem:[#allocation2 + $0xc9] sm:$0xff] }
  0x45   : > { %v746_v29 = vld [vmem:[#allocation2 + $0x128] sm:$0xff]  ;;  %v1133_v39 = vld [vmem:[#allocation2 + $0x138] sm:$0xff]  ;;  %v1277_v4 = vpack.c.bf16 %v1251_v62, %v1250_v61  ;;  %2938 = vst.msk [vmem:[#allocation4] sm:$0xff] %vm8600_vm12, %v5148_v0  ;;  %2939 = vst.msk [vmem:[#allocation4 + $0x8] sm:$0xff] %vm8600_vm12, %v5148_v0 }
  0x46   : > { %v5460_v30 = vpack.c.bf16 %v746_v29, %v745_v28  ;;  %v1379_v6 = vld [vmem:[#allocation2 + $0xaa] sm:$0xff]  ;;  %v1380_v7 = vld [vmem:[#allocation2 + $0xb2] sm:$0xff]  ;;  %v995_v13 = vld [vmem:[#allocation2 + $0xc2] sm:$0xff]  ;;  %2942 = vst.msk [vmem:[#allocation4 + $0x18] sm:$0xff] %vm8600_vm12, %v5148_v0 }
  0x47   : > { %1304 = vrot.lane.b32.xlu0 %v5382_v48, %s5155_s19  ;;  %v1406_v8 = vpack.c.bf16 %v1380_v7, %v1379_v6  ;;  %v996_v14 = vld [vmem:[#allocation2 + $0xca] sm:$0xff]  ;;  %v1255_v18 = vld [vmem:[#allocation2 + $0xe1] sm:$0xff]  ;;  %v871_v35 = vld [vmem:[#allocation2 + $0xf9] sm:$0xff]  ;;  %2943 = vst.msk [vmem:[#allocation4 + $0x20] sm:$0xff] %vm8600_vm12, %v5148_v0 }
  0x48   : > { %1306 = vrot.lane.b32.xlu1 %v1273_v12, %s5155_s19  ;;  %461 = vst.msk [vmem:[#allocation3 + $0x60] sm:$0xff] %vm312_vm0, %v5460_v30  ;;  %v1134_v40 = vld [vmem:[#allocation2 + $0x140] sm:$0xff]  ;;  %v749_v50 = vld [vmem:[#allocation2 + $0x150] sm:$0xff]  ;;  %v1020_v15 = vpack.c.bf16 %v996_v14, %v995_v13 }
  0x49   : > { %v5476_v41 = vpack.c.bf16 %v1134_v40, %v1133_v39  ;;  %v1383_v24 = vld [vmem:[#allocation2 + $0xda] sm:$0xff]  ;;  %v1384_v25 = vld [vmem:[#allocation2 + $0xe2] sm:$0xff]  ;;  %v870_v34 = vld [vmem:[#allocation2 + $0xf1] sm:$0xff]  ;;  %2948 = vst.msk [vmem:[#allocation4 + $0x48] sm:$0xff] %vm8600_vm12, %v5148_v0 }
  0x4a   : > { %v1137_v1 = vld [vmem:[#allocation2 + $0x168] sm:$0xff]  ;;  %v1138_v2 = vld [vmem:[#allocation2 + $0x170] sm:$0xff]  ;;  %v1408_v27 = vpack.c.bf16 %v1384_v25, %v1383_v24  ;;  %v893_v37 = vpack.c.bf16 %v871_v35, %v870_v34  ;;  %v1000_v40 = vld [vmem:[#allocation2 + $0xfa] sm:$0xff]  ;;  %2949 = vst.msk [vmem:[#allocation4 + $0x50] sm:$0xff] %vm8600_vm12, %v5148_v0 }
  0x4b   : > { %1433 = vrot.lane.b32.xlu0 %v5395_v57, %s5156_s20  ;;  %462 = vst.msk [vmem:[#allocation3 + $0x68] sm:$0xff] %vm312_vm0, %v5476_v41  ;;  %v5512_v3 = vpack.c.bf16 %v1138_v2, %v1137_v1  ;;  %v999_v39 = vld [vmem:[#allocation2 + $0xf2] sm:$0xff]  ;;  %v1258_v46 = vld [vmem:[#allocation2 + $0x109] sm:$0xff]  ;;  %v874_v6 = vld [vmem:[#allocation2 + $0x121] sm:$0xff] }
  0x4c   : > { %533 = vrot.lane.b32.xlu1 %v5382_v48, %s5149_s30  ;;  %v862_v48 = vld [vmem:[#allocation2 + $0x91] sm:$0xff]  ;;  %v875_v7 = vld [vmem:[#allocation2 + $0x129] sm:$0xff]  ;;  %v1391_v24 = vld [vmem:[#allocation2 + $0x13a] sm:$0xff]  ;;  %2951 = vst.msk [vmem:[#allocation4 + $0x60] sm:$0xff] %vm8600_vm12, %v5148_v0 }
  0x4d   : > { %v889_v54 = vpack.c.bf16 %v863_v49, %v862_v48  ;;  %464 = vst.msk [vmem:[#allocation3 + $0x78] sm:$0xff] %vm312_vm0, %v5512_v3  ;;  %v1392_v25 = vld [vmem:[#allocation2 + $0x142] sm:$0xff]  ;;  %v878_v34 = vld [vmem:[#allocation2 + $0x151] sm:$0xff] }
  0x4e   : > { %2952 = vst.msk [vmem:[#allocation4 + $0x68] sm:$0xff] %vm8600_vm12, %v5148_v0  ;;  %2954 = vst.msk [vmem:[#allocation4 + $0x78] sm:$0xff] %vm8600_vm12, %v5148_v0 }
  0x4f   : > { %1435 = vrot.lane.b32.xlu0 %v1402_v19, %s5156_s20  ;;  %2955 = vst.msk [vmem:[#allocation4 + $0x80] sm:$0xff] %vm8600_vm12, %v5148_v0  ;;  %2957 = vst.msk [vmem:[#allocation4 + $0x90] sm:$0xff] %vm8600_vm12, %v5148_v0 }
  0x50   : > { %535 = vrot.lane.b32.xlu1 %v1273_v12, %s5149_s30  ;;  %2958 = vst.msk [vmem:[#allocation4 + $0x98] sm:$0xff] %vm8600_vm12, %v5148_v0  ;;  %2960 = vst.msk [vmem:[#allocation4 + $0xa8] sm:$0xff] %vm8600_vm12, %v5148_v0 }
  0x51   : > { %2961 = vst.msk [vmem:[#allocation4 + $0xb0] sm:$0xff] %vm8600_vm12, %v5148_v0  ;;  %2963 = vst.msk [vmem:[#allocation4 + $0xc0] sm:$0xff] %vm8600_vm12, %v5148_v0 }
  0x52   : > { %2964 = vst.msk [vmem:[#allocation4 + $0xc8] sm:$0xff] %vm8600_vm12, %v5148_v0  ;;  %2966 = vst.msk [vmem:[#allocation4 + $0xd8] sm:$0xff] %vm8600_vm12, %v5148_v0 }
  0x53   : > { %662 = vrot.lane.b32.xlu0 %v5395_v57, %s5150_s8  ;;  %v992_v57 = vld [vmem:[#allocation2 + $0x9a] sm:$0xff]  ;;  %2967 = vst.msk [vmem:[#allocation4 + $0xe0] sm:$0xff] %vm8600_vm12, %v5148_v0  ;;  %2969 = vst.msk [vmem:[#allocation4 + $0xf0] sm:$0xff] %vm8600_vm12, %v5148_v0 }
  0x54   : > { %664 = vrot.lane.b32.xlu1 %v1402_v19, %s5150_s8  ;;  %2970 = vst.msk [vmem:[#allocation4 + $0xf8] sm:$0xff] %vm8600_vm12, %v5148_v0  ;;  %2972 = vst.msk [vmem:[#allocation4 + $0x108] sm:$0xff] %vm8600_vm12, %v5148_v0 }
  0x55   : > { %2973 = vst.msk [vmem:[#allocation4 + $0x110] sm:$0xff] %vm8600_vm12, %v5148_v0  ;;  %2975 = vst.msk [vmem:[#allocation4 + $0x120] sm:$0xff] %vm8600_vm12, %v5148_v0 }
  0x56   : > { %2976 = vst.msk [vmem:[#allocation4 + $0x128] sm:$0xff] %vm8600_vm12, %v5148_v0  ;;  %2978 = vst.msk [vmem:[#allocation4 + $0x138] sm:$0xff] %vm8600_vm12, %v5148_v0 }
  0x57   : > { %791 = vrot.lane.b32.xlu0 %v5373_v44, %s5151_s9  ;;  %v1376_v44 = vld [vmem:[#allocation2 + $0x82] sm:$0xff]  ;;  %2979 = vst.msk [vmem:[#allocation4 + $0x140] sm:$0xff] %vm8600_vm12, %v5148_v0  ;;  %2981 = vst.msk [vmem:[#allocation4 + $0x150] sm:$0xff] %vm8600_vm12, %v5148_v0 }
  0x58   : > { %793 = vrot.lane.b32.xlu1 %v5377_v47, %s5151_s9  ;;  %v1404_v45 = vpack.c.bf16 %v1376_v44, %v1375_v43  ;;  %v1022_v43 = vpack.c.bf16 %v1000_v40, %v999_v39  ;;  %2982 = vst.msk [vmem:[#allocation4 + $0x158] sm:$0xff] %vm8600_vm12, %v5148_v0  ;;  %2984 = vst.msk [vmem:[#allocation4 + $0x168] sm:$0xff] %vm8600_vm12, %v5148_v0 }
  0x59   : > { %2985 = vst.msk [vmem:[#allocation4 + $0x170] sm:$0xff] %vm8600_vm12, %v5148_v0  ;;  %2987 = vst.msk [vmem:[#allocation4 + $0x180] sm:$0xff] %vm8600_vm12, %v5148_v0 }
  0x5a   : > { %2988 = vst.msk [vmem:[#allocation4 + $0x188] sm:$0xff] %vm8600_vm12, %v5148_v0  ;;  %2990 = vst.msk [vmem:[#allocation4 + $0x198] sm:$0xff] %vm8600_vm12, %v5148_v0 }
  0x5b   : > { %920 = vrot.lane.b32.xlu0 %v1273_v12, %s5152_s10  ;;  %v891_v12 = vpack.c.bf16 %v867_v11, %v866_v10  ;;  %v1003_v10 = vld [vmem:[#allocation2 + $0x122] sm:$0xff]  ;;  %v1004_v11 = vld [vmem:[#allocation2 + $0x12a] sm:$0xff]  ;;  %2991 = vst.msk [vmem:[#allocation4 + $0x1a0] sm:$0xff] %vm8600_vm12, %v5148_v0 }
  0x5c   : > { %922 = vrot.lane.b32.xlu1 %v887_v31, %s5152_s10  ;;  %v1024_v13 = vpack.c.bf16 %v1004_v11, %v1003_v10  ;;  %2947 = vst.msk [vmem:[#allocation4 + $0x40] sm:$0x3] %vm2940_vm13, %v5148_v0  ;;  %2941 = vst.msk [vmem:[#allocation4 + $0x10] sm:$0x3] %vm2940_vm13, %v5148_v0 }
  0x5d   : > { %2944 = vst.msk [vmem:[#allocation4 + $0x28] sm:$0x3] %vm2940_vm13, %v5148_v0  ;;  %2950 = vst.msk [vmem:[#allocation4 + $0x58] sm:$0x3] %vm2940_vm13, %v5148_v0 }
  0x5e   : > { %2953 = vst.msk [vmem:[#allocation4 + $0x70] sm:$0x3] %vm2940_vm13, %v5148_v0  ;;  %2956 = vst.msk [vmem:[#allocation4 + $0x88] sm:$0x3] %vm2940_vm13, %v5148_v0 }
  0x5f   : > { %1049 = vrot.lane.b32.xlu0 %v1402_v19, %s5153_s11  ;;  %2959 = vst.msk [vmem:[#allocation4 + $0xa0] sm:$0x3] %vm2940_vm13, %v5148_v0  ;;  %2962 = vst.msk [vmem:[#allocation4 + $0xb8] sm:$0x3] %vm2940_vm13, %v5148_v0 }
  0x60   : > { %1051 = vrot.lane.b32.xlu1 %v1016_v36, %s5153_s11  ;;  %2965 = vst.msk [vmem:[#allocation4 + $0xd0] sm:$0x3] %vm2940_vm13, %v5148_v0  ;;  %2968 = vst.msk [vmem:[#allocation4 + $0xe8] sm:$0x3] %vm2940_vm13, %v5148_v0 }
  0x61   : > { %2971 = vst.msk [vmem:[#allocation4 + $0x100] sm:$0x3] %vm2940_vm13, %v5148_v0  ;;  %2974 = vst.msk [vmem:[#allocation4 + $0x118] sm:$0x3] %vm2940_vm13, %v5148_v0 }
  0x62   : > { %2977 = vst.msk [vmem:[#allocation4 + $0x130] sm:$0x3] %vm2940_vm13, %v5148_v0  ;;  %2980 = vst.msk [vmem:[#allocation4 + $0x148] sm:$0x3] %vm2940_vm13, %v5148_v0 }
  0x63   : > { %1179 = vrot.lane.b32.xlu0 %v5377_v47, %s5154_s14  ;;  %v307_v47 = vld [vmem:[%s5329_s29 + $0xd8] sm:$0xff]  ;;  %2983 = vst.msk [vmem:[#allocation4 + $0x160] sm:$0x3] %vm2940_vm13, %v5148_v0  ;;  %2986 = vst.msk [vmem:[#allocation4 + $0x178] sm:$0x3] %vm2940_vm13, %v5148_v0 }
  0x64   : > { %1181 = vrot.lane.b32.xlu1 %v5384_v53, %s5154_s14  ;;  %396 = vst.msk [vmem:[#allocation2 + $0x159] sm:$0xff] %vm312_vm0, %v307_v47  ;;  %v1259_v47 = vld [vmem:[#allocation2 + $0x111] sm:$0xff] }
  0x65   : > { %v1281_v49 = vpack.c.bf16 %v1259_v47, %v1258_v46  ;;  %v1267_v46 = vld [vmem:[#allocation2 + $0x171] sm:$0xff]  ;;  %2989 = vst.msk [vmem:[#allocation4 + $0x190] sm:$0x3] %vm2940_vm13, %v5148_v0  ;;  %2992 = vst.msk [vmem:[#allocation4 + $0x1a8] sm:$0x3] %vm2940_vm13, %v5148_v0 }
  0x67   : > { %1308 = vrot.lane.b32.xlu0 %v887_v31, %s5155_s19 }
  0x68   : > { %1310 = vrot.lane.b32.xlu1 %v1275_v42, %s5155_s19 }
  0x6b   : > { %1437 = vrot.lane.b32.xlu0 %v1016_v36, %s5156_s20  ;;  %v750_v51 = vld [vmem:[#allocation2 + $0x158] sm:$0xff] }
  0x6c   : > { %537 = vrot.lane.b32.xlu1 %v887_v31, %s5149_s30  ;;  %v5494_v52 = vpack.c.bf16 %v750_v51, %v749_v50  ;;  %v879_v35 = vld [vmem:[#allocation2 + $0x159] sm:$0xff] }
  0x6d   : > { %v1007_v39 = vld [vmem:[#allocation2 + $0x152] sm:$0xff]  ;;  %v1008_v40 = vld [vmem:[#allocation2 + $0x15a] sm:$0xff] }
  0x6e   : > { %463 = vst.msk [vmem:[#allocation3 + $0x70] sm:$0xff] %vm312_vm0, %v5494_v52 }
  0x6f   : > { %1439 = vrot.lane.b32.xlu0 %v1404_v45, %s5156_s20 }
  0x70   : > { %539 = vrot.lane.b32.xlu1 %v1275_v42, %s5149_s30 }
  0x73   : > { %666 = vrot.lane.b32.xlu0 %v1016_v36, %s5150_s8 }
  0x74   : > { %668 = vrot.lane.b32.xlu1 %v1404_v45, %s5150_s8 }
  0x77   : > { %795 = vrot.lane.b32.xlu0 %v5384_v53, %s5151_s9  ;;  %v1018_v53 = vpack.c.bf16 %v992_v57, %v991_v55  ;;  %v1387_v55 = vld [vmem:[#allocation2 + $0x10a] sm:$0xff] }
  0x78   : > { %797 = vrot.lane.b32.xlu1 %v5389_v56, %s5151_s9 }
  0x7b   : > { %924 = vrot.lane.b32.xlu0 %v1275_v42, %s5152_s10 }
  0x7c   : > { %926 = vrot.lane.b32.xlu1 %v889_v54, %s5152_s10 }
  0x7f   : > { %1053 = vrot.lane.b32.xlu0 %v1404_v45, %s5153_s11 }
  0x80   : > { %1055 = vrot.lane.b32.xlu1 %v1018_v53, %s5153_s11 }
  0x83   : > { %1183 = vrot.lane.b32.xlu0 %v5389_v56, %s5154_s14  ;;  %v310_v56 = vld [vmem:[%s5329_s29 + $0xf0] sm:$0xff] }
  0x84   : > { %1185 = vrot.lane.b32.xlu1 %v5397_v60, %s5154_s14  ;;  %399 = vst.msk [vmem:[#allocation2 + $0x181] sm:$0xff] %vm312_vm0, %v310_v56  ;;  %v895_v56 = vpack.c.bf16 %v875_v7, %v874_v6 }
  0x87   : > { %1312 = vrot.lane.b32.xlu0 %v889_v54, %s5155_s19 }
  0x88   : > { %1314 = vrot.lane.b32.xlu1 %v1277_v4, %s5155_s19 }
  0x8b   : > { %1441 = vrot.lane.b32.xlu0 %v1018_v53, %s5156_s20  ;;  %v530_v16 = vpop.permute.xlu0 %529  ;;  %v882_v7 = vld [vmem:[#allocation2 + $0x181] sm:$0xff] }
  0x8c   : > { %541 = vrot.lane.b32.xlu1 %v889_v54, %s5149_s30  ;;  %578 = vst.msk [vmem:[#allocation3] sm:$0xff] %vm577_vm3, %v530_v16  ;;  %v659_v17 = vpop.permute.xlu1 %658  ;;  %v1262_v16 = vld [vmem:[#allocation2 + $0x139] sm:$0xff]  ;;  %v1011_v11 = vld [vmem:[#allocation2 + $0x182] sm:$0xff] }
  0x8d   : > { %707 = vst.msk [vmem:[#allocation3] sm:$0xff] %vm706_vm4, %v659_v17  ;;  %v1263_v17 = vld [vmem:[#allocation2 + $0x141] sm:$0xff] }
  0x8f   : > { %1443 = vrot.lane.b32.xlu0 %v1406_v8, %s5156_s20 }
  0x90   : > { %543 = vrot.lane.b32.xlu1 %v1277_v4, %s5149_s30 }
  0x93   : > { %670 = vrot.lane.b32.xlu0 %v1018_v53, %s5150_s8 }
  0x94   : > { %672 = vrot.lane.b32.xlu1 %v1406_v8, %s5150_s8 }
  0x97   : > { %799 = vrot.lane.b32.xlu0 %v5397_v60, %s5151_s9  ;;  %v1254_v60 = vld [vmem:[#allocation2 + $0xd9] sm:$0xff] }
  0x98   : > { %801 = vrot.lane.b32.xlu1 %v5402_v63, %s5151_s9  ;;  %v1279_v19 = vpack.c.bf16 %v1255_v18, %v1254_v60  ;;  %v1283_v18 = vpack.c.bf16 %v1263_v17, %v1262_v16 }
  0x9b   : > { %928 = vrot.lane.b32.xlu0 %v1277_v4, %s5152_s10 }
  0x9c   : > { %930 = vrot.lane.b32.xlu1 %v891_v12, %s5152_s10 }
  0x9f   : > { %1057 = vrot.lane.b32.xlu0 %v1406_v8, %s5153_s11 }
  0xa0   : > { %1059 = vrot.lane.b32.xlu1 %v1020_v15, %s5153_s11 }
  0xa3   : > { %1187 = vrot.lane.b32.xlu0 %v5402_v63, %s5154_s14 }
  0xa4   : > { %1189 = vrot.lane.b32.xlu1 %v5408_v5, %s5154_s14 }
  0xa5   : > { %v532_v21 = vpop.permute.xlu0 %531 }
  0xa6   : > { %579 = vst.msk [vmem:[#allocation3 + $0x8] sm:$0xff] %vm577_vm3, %v532_v21  ;;  %v661_v22 = vpop.permute.xlu1 %660 }
  0xa7   : > { %708 = vst.msk [vmem:[#allocation3 + $0x8] sm:$0xff] %vm706_vm4, %v661_v22  ;;  %1316 = vrot.lane.b32.xlu0 %v891_v12, %s5155_s19 }
  0xa8   : > { %1318 = vrot.lane.b32.xlu1 %v1279_v19, %s5155_s19 }
  0xa9   : > { %v788_v26 = vpop.permute.xlu0 %787 }
  0xaa   : > { %836 = vst.msk [vmem:[#allocation3] sm:$0xff] %vm835_vm5, %v788_v26  ;;  %v790_v63 = vpop.permute.xlu1 %789 }
  0xab   : > { %837 = vst.msk [vmem:[#allocation3 + $0x8] sm:$0xff] %vm835_vm5, %v790_v63  ;;  %1445 = vrot.lane.b32.xlu0 %v1020_v15, %s5156_s20 }
  0xac   : > { %545 = vrot.lane.b32.xlu1 %v891_v12, %s5149_s30 }
  0xad   : > { %v917_v28 = vpop.permute.xlu0 %916 }
  0xae   : > { %965 = vst.msk [vmem:[#allocation3] sm:$0xff] %vm964_vm6, %v917_v28  ;;  %v919_v29 = vpop.permute.xlu1 %918 }
  0xaf   : > { %966 = vst.msk [vmem:[#allocation3 + $0x8] sm:$0xff] %vm964_vm6, %v919_v29  ;;  %1447 = vrot.lane.b32.xlu0 %v1408_v27, %s5156_s20 }
  0xb0   : > { %547 = vrot.lane.b32.xlu1 %v1279_v19, %s5149_s30 }
  0xb1   : > { %v1046_v31 = vpop.permute.xlu0 %1045 }
  0xb2   : > { %1094 = vst.msk [vmem:[#allocation3] sm:$0xff] %vm1093_vm7, %v1046_v31  ;;  %v1048_v32 = vpop.permute.xlu1 %1047 }
  0xb3   : > { %1095 = vst.msk [vmem:[#allocation3 + $0x8] sm:$0xff] %vm1093_vm7, %v1048_v32  ;;  %674 = vrot.lane.b32.xlu0 %v1020_v15, %s5150_s8 }
  0xb4   : > { %676 = vrot.lane.b32.xlu1 %v1408_v27, %s5150_s8 }
  0xb5   : > { %v1176_v33 = vpop.permute.xlu0 %1175 }
  0xb6   : > { %1224 = vst.msk [vmem:[#allocation3] sm:$0xff] %vm1223_vm8, %v1176_v33  ;;  %v1178_v36 = vpop.permute.xlu1 %1177 }
  0xb7   : > { %1225 = vst.msk [vmem:[#allocation3 + $0x8] sm:$0xff] %vm1223_vm8, %v1178_v36  ;;  %803 = vrot.lane.b32.xlu0 %v5408_v5, %s5151_s9 }
  0xb8   : > { %805 = vrot.lane.b32.xlu1 %v5439_v20, %s5151_s9 }
  0xb9   : > { %v1305_v38 = vpop.permute.xlu0 %1304 }
  0xba   : > { %1353 = vst.msk [vmem:[#allocation3] sm:$0xff] %vm1352_vm9, %v1305_v38  ;;  %v1307_v42 = vpop.permute.xlu1 %1306 }
  0xbb   : > { %1354 = vst.msk [vmem:[#allocation3 + $0x8] sm:$0xff] %vm1352_vm9, %v1307_v42  ;;  %932 = vrot.lane.b32.xlu0 %v1279_v19, %s5152_s10 }
  0xbc   : > { %934 = vrot.lane.b32.xlu1 %v893_v37, %s5152_s10 }
  0xbd   : > { %v1434_v5 = vpop.permute.xlu0 %1433 }
  0xbe   : > { %1482 = vst.msk [vmem:[#allocation3] sm:$0xff] %vm1481_vm10, %v1434_v5  ;;  %v534_v44 = vpop.permute.xlu1 %533 }
  0xbf   : > { %580 = vst.msk [vmem:[#allocation3 + $0x10] sm:$0xff] %vm577_vm3, %v534_v44  ;;  %1061 = vrot.lane.b32.xlu0 %v1408_v27, %s5153_s11  ;;  %v1412_v27 = vpack.c.bf16 %v1392_v25, %v1391_v24 }
  0xc0   : > { %1063 = vrot.lane.b32.xlu1 %v1022_v43, %s5153_s11 }
  0xc1   : > { %v1436_v45 = vpop.permute.xlu0 %1435 }
  0xc2   : > { %1483 = vst.msk [vmem:[#allocation3 + $0x8] sm:$0xff] %vm1481_vm10, %v1436_v45  ;;  %v536_v48 = vpop.permute.xlu1 %535  ;;  %v1266_v45 = vld [vmem:[#allocation2 + $0x169] sm:$0xff] }
  0xc3   : > { %581 = vst.msk [vmem:[#allocation3 + $0x18] sm:$0xff] %vm577_vm3, %v536_v48  ;;  %1191 = vrot.lane.b32.xlu0 %v5439_v20, %s5154_s14  ;;  %v1388_v20 = vld [vmem:[#allocation2 + $0x112] sm:$0xff]  ;;  %v1285_v48 = vpack.c.bf16 %v1267_v46, %v1266_v45 }
  0xc4   : > { %1193 = vrot.lane.b32.xlu1 %v5443_v23, %s5154_s14  ;;  %v1410_v53 = vpack.c.bf16 %v1388_v20, %v1387_v55  ;;  %v1396_v55 = vld [vmem:[#allocation2 + $0x172] sm:$0xff] }
  0xc5   : > { %v663_v50 = vpop.permute.xlu0 %662  ;;  %v1498_v51 = vld [vmem:[#allocation3] sm:$0xff] }
  0xc6   : > { %709 = vst.msk [vmem:[#allocation3 + $0x10] sm:$0xff] %vm706_vm4, %v663_v50  ;;  %v665_v54 = vpop.permute.xlu1 %664  ;;  %4903 = vmatprep.mubr.msk.bf16.mxu0 %vm1534_vm11, %v1498_v51 }
  0xc7   : > { %710 = vst.msk [vmem:[#allocation3 + $0x18] sm:$0xff] %vm706_vm4, %v665_v54  ;;  %1320 = vrot.lane.b32.xlu0 %v893_v37, %s5155_s19  ;;  %v1395_v54 = vld [vmem:[#allocation2 + $0x16a] sm:$0xff] }
  0xc8   : > { %1322 = vrot.lane.b32.xlu1 %v1281_v49, %s5155_s19 }
  0xc9   : > { %v792_v57 = vpop.permute.xlu0 %791  ;;  %v1499_v58 = vld [vmem:[#allocation3 + $0x8] sm:$0xff] }
  0xca   : > { %838 = vst.msk [vmem:[#allocation3 + $0x10] sm:$0xff] %vm835_vm5, %v792_v57  ;;  %v794_v59 = vpop.permute.xlu1 %793  ;;  %4904 = vmatmul.mubr.msk.bf16.vlgmr.msra.gmra.mrb[0].mxu0 %vm1534_vm11, %v1499_v58  ;;  %v5665_v58 = vpack.c.bf16 %v1396_v55, %v1395_v54 }
  0xcb   : > { %839 = vst.msk [vmem:[#allocation3 + $0x18] sm:$0xff] %vm835_vm5, %v794_v59  ;;  %1449 = vrot.lane.b32.xlu0 %v1022_v43, %s5156_s20 }
  0xcc   : > { %549 = vrot.lane.b32.xlu1 %v893_v37, %s5149_s30  ;;  %v897_v37 = vpack.c.bf16 %v879_v35, %v878_v34 }
  0xcd   : > { %v921_v61 = vpop.permute.xlu0 %920 }
  0xce   : > { %967 = vst.msk [vmem:[#allocation3 + $0x10] sm:$0xff] %vm964_vm6, %v921_v61  ;;  %v923_v62 = vpop.permute.xlu1 %922 }
  0xcf   : > { %968 = vst.msk [vmem:[#allocation3 + $0x18] sm:$0xff] %vm964_vm6, %v923_v62  ;;  %1451 = vrot.lane.b32.xlu0 %v1410_v53, %s5156_s20  ;;  %v753_v62 = vld [vmem:[#allocation2 + $0x180] sm:$0xff] }
  0xd0   : > { %551 = vrot.lane.b32.xlu1 %v1281_v49, %s5149_s30 }
  0xd1   : > { %v1050_v1 = vpop.permute.xlu0 %1049 }
  0xd2   : > { %1096 = vst.msk [vmem:[#allocation3 + $0x10] sm:$0xff] %vm1093_vm7, %v1050_v1  ;;  %v1052_v2 = vpop.permute.xlu1 %1051  ;;  %v754_v1 = vld [vmem:[#allocation2 + $0x188] sm:$0xff] }
  0xd3   : > { %1097 = vst.msk [vmem:[#allocation3 + $0x18] sm:$0xff] %vm1093_vm7, %v1052_v2  ;;  %678 = vrot.lane.b32.xlu0 %v1022_v43, %s5150_s8  ;;  %v1026_v43 = vpack.c.bf16 %v1008_v40, %v1007_v39 }
  0xd4   : > { %680 = vrot.lane.b32.xlu1 %v1410_v53, %s5150_s8 }
  0xd5   : > { %v1180_v4 = vpop.permute.xlu0 %1179 }
  0xd6   : > { %1226 = vst.msk [vmem:[#allocation3 + $0x10] sm:$0xff] %vm1223_vm8, %v1180_v4  ;;  %v1182_v8 = vpop.permute.xlu1 %1181  ;;  %v5678_v4 = vpack.c.bf16 %v754_v1, %v753_v62 }
  0xd7   : > { %1227 = vst.msk [vmem:[#allocation3 + $0x18] sm:$0xff] %vm1223_vm8, %v1182_v8  ;;  %807 = vrot.lane.b32.xlu0 %v5443_v23, %s5151_s9  ;;  %v883_v8 = vld [vmem:[#allocation2 + $0x189] sm:$0xff] }
  0xd8   : > { %809 = vrot.lane.b32.xlu1 %v5460_v30, %s5151_s9 }
  0xd9   : > { %v1309_v9 = vpop.permute.xlu0 %1308 }
  0xda   : > { %1355 = vst.msk [vmem:[#allocation3 + $0x10] sm:$0xff] %vm1352_vm9, %v1309_v9  ;;  %v1311_v12 = vpop.permute.xlu1 %1310  ;;  %v5686_v9 = vpack.c.bf16 %v883_v8, %v882_v7 }
  0xdb   : > { %1356 = vst.msk [vmem:[#allocation3 + $0x18] sm:$0xff] %vm1352_vm9, %v1311_v12  ;;  %936 = vrot.lane.b32.xlu0 %v1281_v49, %s5152_s10  ;;  %v1012_v12 = vld [vmem:[#allocation2 + $0x18a] sm:$0xff] }
  0xdc   : > { %938 = vrot.lane.b32.xlu1 %v895_v56, %s5152_s10 }
  0xdd   : > { %v1438_v14 = vpop.permute.xlu0 %1437 }
  0xde   : > { %1484 = vst.msk [vmem:[#allocation3 + $0x10] sm:$0xff] %vm1481_vm10, %v1438_v14  ;;  %v538_v23 = vpop.permute.xlu1 %537  ;;  %v5693_v14 = vpack.c.bf16 %v1012_v12, %v1011_v11 }
  0xdf   : > { %582 = vst.msk [vmem:[#allocation3 + $0x20] sm:$0xff] %vm577_vm3, %v538_v23  ;;  %1065 = vrot.lane.b32.xlu0 %v1410_v53, %s5153_s11  ;;  %v5695_v23 = vld [vmem:[#allocation2 + $0x198] sm:$0xff] }
  0xe0   : > { %1067 = vrot.lane.b32.xlu1 %v1024_v13, %s5153_s11 }
  0xe1   : > { %v1440_v15 = vpop.permute.xlu0 %1439 }
  0xe2   : > { %1485 = vst.msk [vmem:[#allocation3 + $0x18] sm:$0xff] %vm1481_vm10, %v1440_v15  ;;  %v540_v60 = vpop.permute.xlu1 %539  ;;  %v5697_v15 = vld [vmem:[#allocation2 + $0x1a0] sm:$0xff] }
  0xe3   : > { %583 = vst.msk [vmem:[#allocation3 + $0x28] sm:$0xff] %vm577_vm3, %v540_v60  ;;  %1195 = vrot.lane.b32.xlu0 %v5460_v30, %s5154_s14  ;;  %v1158_v17 = vpack.c.bf16 %v5697_v15, %v5695_v23 }
  0xe4   : > { %1197 = vrot.lane.b32.xlu1 %v5476_v41, %s5154_s14 }
  0xe5   : > { %v667_v19 = vpop.permute.xlu0 %666  ;;  %v1500_v21 = vld [vmem:[#allocation3 + $0x10] sm:$0xff] }
  0xe6   : > { %711 = vst.msk [vmem:[#allocation3 + $0x20] sm:$0xff] %vm706_vm4, %v667_v19  ;;  %v669_v22 = vpop.permute.xlu1 %668  ;;  %4907 = vmatprep.mubr.msk.bf16.mxu0 %vm1534_vm11, %v1500_v21  ;;  %v1271_v19 = vld [vmem:[#allocation2 + $0x1a1] sm:$0xff] }
  0xe7   : > { %712 = vst.msk [vmem:[#allocation3 + $0x28] sm:$0xff] %vm706_vm4, %v669_v22  ;;  %1324 = vrot.lane.b32.xlu0 %v895_v56, %s5155_s19 }
  0xe8   : > { %1326 = vrot.lane.b32.xlu1 %v1283_v18, %s5155_s19 }
  0xe9   : > { %v796_v30 = vpop.permute.xlu0 %795  ;;  %v1501_v26 = vld [vmem:[#allocation3 + $0x18] sm:$0xff] }
  0xea   : > { %840 = vst.msk [vmem:[#allocation3 + $0x20] sm:$0xff] %vm835_vm5, %v796_v30  ;;  %v798_v63 = vpop.permute.xlu1 %797  ;;  %4908 = vmatmul.mubr.msk.bf16.gmra.mrb[4].mxu0 %vm1534_vm11, %v1501_v26  ;;  %v1399_v30 = vld [vmem:[#allocation2 + $0x19a] sm:$0xff]  ;;  %v1400_v26 = vld [vmem:[#allocation2 + $0x1a2] sm:$0xff] }
  0xeb   : > { %841 = vst.msk [vmem:[#allocation3 + $0x28] sm:$0xff] %vm835_vm5, %v798_v63  ;;  %1453 = vrot.lane.b32.xlu0 %v1024_v13, %s5156_s20  ;;  %v1416_v0 = vpack.c.bf16 %v1400_v26, %v1399_v30 }
  0xec   : > { %553 = vrot.lane.b32.xlu1 %v895_v56, %s5149_s30 }
  0xed   : > { %v925_v28 = vpop.permute.xlu0 %924 }
  0xee   : > { %969 = vst.msk [vmem:[#allocation3 + $0x20] sm:$0xff] %vm964_vm6, %v925_v28  ;;  %v927_v29 = vpop.permute.xlu1 %926 }
  0xef   : > { %970 = vst.msk [vmem:[#allocation3 + $0x28] sm:$0xff] %vm964_vm6, %v927_v29  ;;  %1455 = vrot.lane.b32.xlu0 %v1412_v27, %s5156_s20 }
  0xf0   : > { %555 = vrot.lane.b32.xlu1 %v1283_v18, %s5149_s30 }
  0xf1   : > { %v1054_v31 = vpop.permute.xlu0 %1053 }
  0xf2   : > { %1098 = vst.msk [vmem:[#allocation3 + $0x20] sm:$0xff] %vm1093_vm7, %v1054_v31  ;;  %v1056_v32 = vpop.permute.xlu1 %1055 }
  0xf3   : > { %1099 = vst.msk [vmem:[#allocation3 + $0x28] sm:$0xff] %vm1093_vm7, %v1056_v32  ;;  %682 = vrot.lane.b32.xlu0 %v1024_v13, %s5150_s8 }
  0xf4   : > { %684 = vrot.lane.b32.xlu1 %v1412_v27, %s5150_s8 }
  0xf5   : > { %v1184_v33 = vpop.permute.xlu0 %1183 }
  0xf6   : > { %1228 = vst.msk [vmem:[#allocation3 + $0x20] sm:$0xff] %vm1223_vm8, %v1184_v33  ;;  %v1186_v36 = vpop.permute.xlu1 %1185 }
  0xf7   : > { %1229 = vst.msk [vmem:[#allocation3 + $0x28] sm:$0xff] %vm1223_vm8, %v1186_v36  ;;  %811 = vrot.lane.b32.xlu0 %v5476_v41, %s5151_s9 }
  0xf8   : > { %813 = vrot.lane.b32.xlu1 %v5494_v52, %s5151_s9 }
  0xf9   : > { %v1313_v38 = vpop.permute.xlu0 %1312 }
  0xfa   : > { %1357 = vst.msk [vmem:[#allocation3 + $0x20] sm:$0xff] %vm1352_vm9, %v1313_v38  ;;  %v1315_v42 = vpop.permute.xlu1 %1314 }
  0xfb   : > { %1358 = vst.msk [vmem:[#allocation3 + $0x28] sm:$0xff] %vm1352_vm9, %v1315_v42  ;;  %940 = vrot.lane.b32.xlu0 %v1283_v18, %s5152_s10  ;;  %v1270_v18 = vld [vmem:[#allocation2 + $0x199] sm:$0xff] }
  0xfc   : > { %942 = vrot.lane.b32.xlu1 %v897_v37, %s5152_s10  ;;  %v1287_v22 = vpack.c.bf16 %v1271_v19, %v1270_v18 }
  0xfd   : > { %v1442_v5 = vpop.permute.xlu0 %1441 }
  0xfe   : > { %1486 = vst.msk [vmem:[#allocation3 + $0x20] sm:$0xff] %vm1481_vm10, %v1442_v5  ;;  %v542_v41 = vpop.permute.xlu1 %541 }
  0xff   : > { %584 = vst.msk [vmem:[#allocation3 + $0x30] sm:$0xff] %vm577_vm3, %v542_v41  ;;  %1069 = vrot.lane.b32.xlu0 %v1412_v27, %s5153_s11 }
 0x100   : > { %1071 = vrot.lane.b32.xlu1 %v1026_v43, %s5153_s11 }
 0x101   : > { %v1444_v44 = vpop.permute.xlu0 %1443 }
 0x102   : > { %1487 = vst.msk [vmem:[#allocation3 + $0x28] sm:$0xff] %vm1481_vm10, %v1444_v44  ;;  %v544_v47 = vpop.permute.xlu1 %543 }
 0x103   : > { %585 = vst.msk [vmem:[#allocation3 + $0x38] sm:$0xff] %vm577_vm3, %v544_v47  ;;  %1199 = vrot.lane.b32.xlu0 %v5494_v52, %s5154_s14 }
 0x104   : > { %1201 = vrot.lane.b32.xlu1 %v5512_v3, %s5154_s14 }
 0x105   : > { %v671_v49 = vpop.permute.xlu0 %670  ;;  %v1502_v50 = vld [vmem:[#allocation3 + $0x20] sm:$0xff] }
 0x106   : > { %713 = vst.msk [vmem:[#allocation3 + $0x30] sm:$0xff] %vm706_vm4, %v671_v49  ;;  %v673_v51 = vpop.permute.xlu1 %672  ;;  %4911 = vmatprep.mubr.msk.bf16.mxu0 %vm1534_vm11, %v1502_v50 }
 0x107   : > { %714 = vst.msk [vmem:[#allocation3 + $0x38] sm:$0xff] %vm706_vm4, %v673_v51  ;;  %1328 = vrot.lane.b32.xlu0 %v897_v37, %s5155_s19 }
 0x108   : > { %1330 = vrot.lane.b32.xlu1 %v1285_v48, %s5155_s19 }
 0x109   : > { %v800_v52 = vpop.permute.xlu0 %799  ;;  %v1503_v20 = vld [vmem:[#allocation3 + $0x28] sm:$0xff] }
 0x10a   : > { %842 = vst.msk [vmem:[#allocation3 + $0x30] sm:$0xff] %vm835_vm5, %v800_v52  ;;  %v802_v57 = vpop.permute.xlu1 %801  ;;  %4912 = vmatmul.mubr.msk.bf16.gmra.mrb[8].mxu0 %vm1534_vm11, %v1503_v20 }
 0x10b   : > { %843 = vst.msk [vmem:[#allocation3 + $0x38] sm:$0xff] %vm835_vm5, %v802_v57  ;;  %1457 = vrot.lane.b32.xlu0 %v1026_v43, %s5156_s20 }
 0x10c   : > { %557 = vrot.lane.b32.xlu1 %v897_v37, %s5149_s30 }
 0x10d   : > { %v929_v59 = vpop.permute.xlu0 %928 }
 0x10e   : > { %971 = vst.msk [vmem:[#allocation3 + $0x30] sm:$0xff] %vm964_vm6, %v929_v59  ;;  %v931_v53 = vpop.permute.xlu1 %930 }
 0x10f   : > { %972 = vst.msk [vmem:[#allocation3 + $0x38] sm:$0xff] %vm964_vm6, %v931_v53  ;;  %1459 = vrot.lane.b32.xlu0 %v5665_v58, %s5156_s20 }
 0x110   : > { %559 = vrot.lane.b32.xlu1 %v1285_v48, %s5149_s30  ;;  %s5159_s30 = smov 40  }
 0x111   : > { %v1058_v61 = vpop.permute.xlu0 %1057 }
 0x112   : > { %1100 = vst.msk [vmem:[#allocation3 + $0x30] sm:$0xff] %vm1093_vm7, %v1058_v61  ;;  %v1060_v2 = vpop.permute.xlu1 %1059 }
 0x113   : > { %1101 = vst.msk [vmem:[#allocation3 + $0x38] sm:$0xff] %vm1093_vm7, %v1060_v2  ;;  %686 = vrot.lane.b32.xlu0 %v1026_v43, %s5150_s8 }
 0x114   : > { %688 = vrot.lane.b32.xlu1 %v5665_v58, %s5150_s8 }
 0x115   : > { %v1188_v6 = vpop.permute.xlu0 %1187 }
 0x116   : > { %1230 = vst.msk [vmem:[#allocation3 + $0x30] sm:$0xff] %vm1223_vm8, %v1188_v6  ;;  %v1190_v56 = vpop.permute.xlu1 %1189 }
 0x117   : > { %1231 = vst.msk [vmem:[#allocation3 + $0x38] sm:$0xff] %vm1223_vm8, %v1190_v56  ;;  %815 = vrot.lane.b32.xlu0 %v5512_v3, %s5151_s9 }
 0x118   : > { %817 = vrot.lane.b32.xlu1 %v5678_v4, %s5151_s9  ;;  %s5160_s9 = smov 64  }
 0x119   : > { %v1317_v10 = vpop.permute.xlu0 %1316 }
 0x11a   : > { %1359 = vst.msk [vmem:[#allocation3 + $0x30] sm:$0xff] %vm1352_vm9, %v1317_v10  ;;  %v1319_v13 = vpop.permute.xlu1 %1318 }
 0x11b   : > { %1360 = vst.msk [vmem:[#allocation3 + $0x38] sm:$0xff] %vm1352_vm9, %v1319_v13  ;;  %944 = vrot.lane.b32.xlu0 %v1285_v48, %s5152_s10 }
 0x11c   : > { %946 = vrot.lane.b32.xlu1 %v5686_v9, %s5152_s10 }
 0x11d   : > { %v1446_v3 = vpop.permute.xlu0 %1445 }
 0x11e   : > { %1488 = vst.msk [vmem:[#allocation3 + $0x30] sm:$0xff] %vm1481_vm10, %v1446_v3  ;;  %v546_v16 = vpop.permute.xlu1 %545 }
 0x11f   : > { %586 = vst.msk [vmem:[#allocation3 + $0x40] sm:$0xff] %vm577_vm3, %v546_v16  ;;  %1073 = vrot.lane.b32.xlu0 %v5665_v58, %s5153_s11 }
 0x120   : > { %1075 = vrot.lane.b32.xlu1 %v5693_v14, %s5153_s11 }
 0x121   : > { %v1448_v60 = vpop.permute.xlu0 %1447 }
 0x122   : > { %1489 = vst.msk [vmem:[#allocation3 + $0x38] sm:$0xff] %vm1481_vm10, %v1448_v60  ;;  %v548_v21 = vpop.permute.xlu1 %547 }
 0x123   : > { %587 = vst.msk [vmem:[#allocation3 + $0x48] sm:$0xff] %vm577_vm3, %v548_v21  ;;  %1203 = vrot.lane.b32.xlu0 %v5678_v4, %s5154_s14 }
 0x124   : > { %1205 = vrot.lane.b32.xlu1 %v1158_v17, %s5154_s14 }
 0x125   : > { %v675_v24 = vpop.permute.xlu0 %674  ;;  %v1504_v25 = vld [vmem:[#allocation3 + $0x30] sm:$0xff] }
 0x126   : > { %715 = vst.msk [vmem:[#allocation3 + $0x40] sm:$0xff] %vm706_vm4, %v675_v24  ;;  %v677_v63 = vpop.permute.xlu1 %676  ;;  %4915 = vmatprep.mubr.msk.bf16.mxu0 %vm1534_vm11, %v1504_v25 }
 0x127   : > { %716 = vst.msk [vmem:[#allocation3 + $0x48] sm:$0xff] %vm706_vm4, %v677_v63  ;;  %1332 = vrot.lane.b32.xlu0 %v5686_v9, %s5155_s19 }
 0x128   : > { %1334 = vrot.lane.b32.xlu1 %v1287_v22, %s5155_s19 }
 0x129   : > { %v804_v27 = vpop.permute.xlu0 %803  ;;  %v1505_v28 = vld [vmem:[#allocation3 + $0x38] sm:$0xff] }
 0x12a   : > { %844 = vst.msk [vmem:[#allocation3 + $0x40] sm:$0xff] %vm835_vm5, %v804_v27  ;;  %v806_v29 = vpop.permute.xlu1 %805  ;;  %4916 = vmatmul.mubr.msk.bf16.gmra.mrb[12].mxu0 %vm1534_vm11, %v1505_v28 }
 0x12b   : > { %845 = vst.msk [vmem:[#allocation3 + $0x48] sm:$0xff] %vm835_vm5, %v806_v29  ;;  %1461 = vrot.lane.b32.xlu0 %v5693_v14, %s5156_s20 }
 0x12c   : > { %1463 = vrot.lane.b32.xlu1 %v1416_v0, %s5156_s20 }
 0x12d   : > { %v933_v31 = vpop.permute.xlu0 %932 }
 0x12e   : > { %973 = vst.msk [vmem:[#allocation3 + $0x40] sm:$0xff] %vm964_vm6, %v933_v31  ;;  %v935_v32 = vpop.permute.xlu1 %934 }
 0x12f   : > { %974 = vst.msk [vmem:[#allocation3 + $0x48] sm:$0xff] %vm964_vm6, %v935_v32 }
 0x131   : > { %v1062_v33 = vpop.permute.xlu0 %1061 }
 0x132   : > { %1102 = vst.msk [vmem:[#allocation3 + $0x40] sm:$0xff] %vm1093_vm7, %v1062_v33  ;;  %v1064_v34 = vpop.permute.xlu1 %1063 }
 0x133   : > { %1103 = vst.msk [vmem:[#allocation3 + $0x48] sm:$0xff] %vm1093_vm7, %v1064_v34 }
 0x135   : > { %v1192_v35 = vpop.permute.xlu0 %1191 }
 0x136   : > { %1232 = vst.msk [vmem:[#allocation3 + $0x40] sm:$0xff] %vm1223_vm8, %v1192_v35  ;;  %v1194_v36 = vpop.permute.xlu1 %1193 }
 0x137   : > { %1233 = vst.msk [vmem:[#allocation3 + $0x48] sm:$0xff] %vm1223_vm8, %v1194_v36 }
 0x139   : > { %v1321_v37 = vpop.permute.xlu0 %1320 }
 0x13a   : > { %1361 = vst.msk [vmem:[#allocation3 + $0x40] sm:$0xff] %vm1352_vm9, %v1321_v37  ;;  %v1323_v38 = vpop.permute.xlu1 %1322 }
 0x13b   : > { %1362 = vst.msk [vmem:[#allocation3 + $0x48] sm:$0xff] %vm1352_vm9, %v1323_v38 }
 0x13d   : > { %v1450_v39 = vpop.permute.xlu0 %1449 }
 0x13e   : > { %1490 = vst.msk [vmem:[#allocation3 + $0x40] sm:$0xff] %vm1481_vm10, %v1450_v39  ;;  %v550_v40 = vpop.permute.xlu1 %549 }
 0x13f   : > { %588 = vst.msk [vmem:[#allocation3 + $0x50] sm:$0xff] %vm577_vm3, %v550_v40 }
 0x141   : > { %v1452_v42 = vpop.permute.xlu0 %1451 }
 0x142   : > { %1491 = vst.msk [vmem:[#allocation3 + $0x48] sm:$0xff] %vm1481_vm10, %v1452_v42  ;;  %v552_v43 = vpop.permute.xlu1 %551 }
 0x143   : > { %589 = vst.msk [vmem:[#allocation3 + $0x58] sm:$0xff] %vm577_vm3, %v552_v43 }
 0x145   : > { %v679_v5 = vpop.permute.xlu0 %678  ;;  %v1506_v41 = vld [vmem:[#allocation3 + $0x40] sm:$0xff] }
 0x146   : > { %717 = vst.msk [vmem:[#allocation3 + $0x50] sm:$0xff] %vm706_vm4, %v679_v5  ;;  %v681_v44 = vpop.permute.xlu1 %680  ;;  %4919 = vmatprep.mubr.msk.bf16.mxu0 %vm1534_vm11, %v1506_v41 }
 0x147   : > { %718 = vst.msk [vmem:[#allocation3 + $0x58] sm:$0xff] %vm706_vm4, %v681_v44 }
 0x149   : > { %v808_v45 = vpop.permute.xlu0 %807  ;;  %v1507_v46 = vld [vmem:[#allocation3 + $0x48] sm:$0xff] }
 0x14a   : > { %846 = vst.msk [vmem:[#allocation3 + $0x50] sm:$0xff] %vm835_vm5, %v808_v45  ;;  %v810_v47 = vpop.permute.xlu1 %809  ;;  %4920 = vmatmul.mubr.msk.bf16.gmra.mrb[16].mxu0 %vm1534_vm11, %v1507_v46 }
 0x14b   : > { %847 = vst.msk [vmem:[#allocation3 + $0x58] sm:$0xff] %vm835_vm5, %v810_v47 }
 0x14d   : > { %v937_v48 = vpop.permute.xlu0 %936 }
 0x14e   : > { %975 = vst.msk [vmem:[#allocation3 + $0x50] sm:$0xff] %vm964_vm6, %v937_v48  ;;  %v939_v49 = vpop.permute.xlu1 %938 }
 0x14f   : > { %976 = vst.msk [vmem:[#allocation3 + $0x58] sm:$0xff] %vm964_vm6, %v939_v49 }
 0x151   : > { %v1066_v50 = vpop.permute.xlu0 %1065 }
 0x152   : > { %1104 = vst.msk [vmem:[#allocation3 + $0x50] sm:$0xff] %vm1093_vm7, %v1066_v50  ;;  %v1068_v51 = vpop.permute.xlu1 %1067 }
 0x153   : > { %1105 = vst.msk [vmem:[#allocation3 + $0x58] sm:$0xff] %vm1093_vm7, %v1068_v51 }
 0x155   : > { %v1196_v54 = vpop.permute.xlu0 %1195 }
 0x156   : > { %1234 = vst.msk [vmem:[#allocation3 + $0x50] sm:$0xff] %vm1223_vm8, %v1196_v54  ;;  %v1198_v55 = vpop.permute.xlu1 %1197 }
 0x157   : > { %1235 = vst.msk [vmem:[#allocation3 + $0x58] sm:$0xff] %vm1223_vm8, %v1198_v55 }
 0x159   : > { %v1325_v52 = vpop.permute.xlu0 %1324 }
 0x15a   : > { %1363 = vst.msk [vmem:[#allocation3 + $0x50] sm:$0xff] %vm1352_vm9, %v1325_v52  ;;  %v1327_v20 = vpop.permute.xlu1 %1326 }
 0x15b   : > { %1364 = vst.msk [vmem:[#allocation3 + $0x58] sm:$0xff] %vm1352_vm9, %v1327_v20 }
 0x15d   : > { %v1454_v57 = vpop.permute.xlu0 %1453 }
 0x15e   : > { %1492 = vst.msk [vmem:[#allocation3 + $0x50] sm:$0xff] %vm1481_vm10, %v1454_v57  ;;  %v554_v58 = vpop.permute.xlu1 %553 }
 0x15f   : > { %590 = vst.msk [vmem:[#allocation3 + $0x60] sm:$0xff] %vm577_vm3, %v554_v58 }
 0x161   : > { %v1456_v59 = vpop.permute.xlu0 %1455 }
 0x162   : > { %1493 = vst.msk [vmem:[#allocation3 + $0x58] sm:$0xff] %vm1481_vm10, %v1456_v59  ;;  %v556_v53 = vpop.permute.xlu1 %555 }
 0x163   : > { %591 = vst.msk [vmem:[#allocation3 + $0x68] sm:$0xff] %vm577_vm3, %v556_v53 }
 0x165   : > { %v683_v61 = vpop.permute.xlu0 %682  ;;  %v1508_v62 = vld [vmem:[#allocation3 + $0x50] sm:$0xff] }
 0x166   : > { %719 = vst.msk [vmem:[#allocation3 + $0x60] sm:$0xff] %vm706_vm4, %v683_v61  ;;  %v685_v1 = vpop.permute.xlu1 %684  ;;  %4923 = vmatprep.mubr.msk.bf16.mxu0 %vm1534_vm11, %v1508_v62 }
 0x167   : > { %720 = vst.msk [vmem:[#allocation3 + $0x68] sm:$0xff] %vm706_vm4, %v685_v1 }
 0x169   : > { %v812_v2 = vpop.permute.xlu0 %811  ;;  %v1509_v4 = vld [vmem:[#allocation3 + $0x58] sm:$0xff] }
 0x16a   : > { %848 = vst.msk [vmem:[#allocation3 + $0x60] sm:$0xff] %vm835_vm5, %v812_v2  ;;  %v814_v6 = vpop.permute.xlu1 %813  ;;  %4924 = vmatmul.mubr.msk.bf16.gmra.mrb[20].mxu0 %vm1534_vm11, %v1509_v4 }
 0x16b   : > { %849 = vst.msk [vmem:[#allocation3 + $0x68] sm:$0xff] %vm835_vm5, %v814_v6 }
 0x16d   : > { %v941_v7 = vpop.permute.xlu0 %940 }
 0x16e   : > { %977 = vst.msk [vmem:[#allocation3 + $0x60] sm:$0xff] %vm964_vm6, %v941_v7  ;;  %v943_v8 = vpop.permute.xlu1 %942 }
 0x16f   : > { %978 = vst.msk [vmem:[#allocation3 + $0x68] sm:$0xff] %vm964_vm6, %v943_v8 }
 0x171   : > { %v1070_v56 = vpop.permute.xlu0 %1069 }
 0x172   : > { %1106 = vst.msk [vmem:[#allocation3 + $0x60] sm:$0xff] %vm1093_vm7, %v1070_v56  ;;  %v1072_v9 = vpop.permute.xlu1 %1071 }
 0x173   : > { %1107 = vst.msk [vmem:[#allocation3 + $0x68] sm:$0xff] %vm1093_vm7, %v1072_v9 }
 0x175   : > { %v1200_v10 = vpop.permute.xlu0 %1199 }
 0x176   : > { %1236 = vst.msk [vmem:[#allocation3 + $0x60] sm:$0xff] %vm1223_vm8, %v1200_v10  ;;  %v1202_v11 = vpop.permute.xlu1 %1201 }
 0x177   : > { %1237 = vst.msk [vmem:[#allocation3 + $0x68] sm:$0xff] %vm1223_vm8, %v1202_v11 }
 0x179   : > { %v1329_v12 = vpop.permute.xlu0 %1328 }
 0x17a   : > { %1365 = vst.msk [vmem:[#allocation3 + $0x60] sm:$0xff] %vm1352_vm9, %v1329_v12  ;;  %v1331_v13 = vpop.permute.xlu1 %1330 }
 0x17b   : > { %1366 = vst.msk [vmem:[#allocation3 + $0x68] sm:$0xff] %vm1352_vm9, %v1331_v13 }
 0x17d   : > { %v1458_v14 = vpop.permute.xlu0 %1457 }
 0x17e   : > { %1494 = vst.msk [vmem:[#allocation3 + $0x60] sm:$0xff] %vm1481_vm10, %v1458_v14  ;;  %v558_v3 = vpop.permute.xlu1 %557 }
 0x17f   : > { %592 = vst.msk [vmem:[#allocation3 + $0x70] sm:$0xff] %vm577_vm3, %v558_v3 }
 0x181   : > { %v1460_v23 = vpop.permute.xlu0 %1459 }
 0x182   : > { %1495 = vst.msk [vmem:[#allocation3 + $0x68] sm:$0xff] %vm1481_vm10, %v1460_v23  ;;  %v560_v15 = vpop.permute.xlu1 %559 }
 0x183   : > { %593 = vst.msk [vmem:[#allocation3 + $0x78] sm:$0xff] %vm577_vm3, %v560_v15 }
 0x185   : > { %v687_v16 = vpop.permute.xlu0 %686  ;;  %v1510_v17 = vld [vmem:[#allocation3 + $0x60] sm:$0xff] }
 0x186   : > { %721 = vst.msk [vmem:[#allocation3 + $0x70] sm:$0xff] %vm706_vm4, %v687_v16  ;;  %v689_v60 = vpop.permute.xlu1 %688  ;;  %4927 = vmatprep.mubr.msk.bf16.mxu0 %vm1534_vm11, %v1510_v17 }
 0x187   : > { %722 = vst.msk [vmem:[#allocation3 + $0x78] sm:$0xff] %vm706_vm4, %v689_v60 }
 0x189   : > { %v816_v18 = vpop.permute.xlu0 %815  ;;  %v1511_v19 = vld [vmem:[#allocation3 + $0x68] sm:$0xff] }
 0x18a   : > { %850 = vst.msk [vmem:[#allocation3 + $0x70] sm:$0xff] %vm835_vm5, %v816_v18  ;;  %v818_v21 = vpop.permute.xlu1 %817  ;;  %4928 = vmatmul.mubr.msk.bf16.gmra.mrb[24].mxu0 %vm1534_vm11, %v1511_v19 }
 0x18b   : > { %851 = vst.msk [vmem:[#allocation3 + $0x78] sm:$0xff] %vm835_vm5, %v818_v21 }
 0x18d   : > { %v945_v22 = vpop.permute.xlu0 %944 }
 0x18e   : > { %979 = vst.msk [vmem:[#allocation3 + $0x70] sm:$0xff] %vm964_vm6, %v945_v22  ;;  %v947_v24 = vpop.permute.xlu1 %946 }
 0x18f   : > { %980 = vst.msk [vmem:[#allocation3 + $0x78] sm:$0xff] %vm964_vm6, %v947_v24 }
 0x191   : > { %v1074_v25 = vpop.permute.xlu0 %1073 }
 0x192   : > { %1108 = vst.msk [vmem:[#allocation3 + $0x70] sm:$0xff] %vm1093_vm7, %v1074_v25  ;;  %v1076_v30 = vpop.permute.xlu1 %1075 }
 0x193   : > { %1109 = vst.msk [vmem:[#allocation3 + $0x78] sm:$0xff] %vm1093_vm7, %v1076_v30 }
 0x195   : > { %v1204_v26 = vpop.permute.xlu0 %1203 }
 0x196   : > { %1238 = vst.msk [vmem:[#allocation3 + $0x70] sm:$0xff] %vm1223_vm8, %v1204_v26  ;;  %v1206_v63 = vpop.permute.xlu1 %1205 }
 0x197   : > { %1239 = vst.msk [vmem:[#allocation3 + $0x78] sm:$0xff] %vm1223_vm8, %v1206_v63 }
 0x199   : > { %v1333_v0 = vpop.permute.xlu0 %1332 }
 0x19a   : > { %1367 = vst.msk [vmem:[#allocation3 + $0x70] sm:$0xff] %vm1352_vm9, %v1333_v0  ;;  %v1335_v27 = vpop.permute.xlu1 %1334 }
 0x19b   : > { %1368 = vst.msk [vmem:[#allocation3 + $0x78] sm:$0xff] %vm1352_vm9, %v1335_v27 }
 0x19d   : > { %v1462_v28 = vpop.permute.xlu0 %1461  ;;  %v5894_v29 = vpop.f32.mrb[0].mxu0 }
 0x19e   : > { %1496 = vst.msk [vmem:[#allocation3 + $0x70] sm:$0xff] %vm1481_vm10, %v1462_v28  ;;  %v1464_v31 = vpop.permute.xlu1 %1463  ;;  %v5897_v32 = vpop.f32.mrb[1].mxu0  ;;  %v1822_v36 = vmul.f32 %v5894_v29, %v5894_v29  ;;  %v1754_v42 = vsel %vm8600_vm12, %v5894_v29, 0.0 }
 0x19f   : > { %1497 = vst.msk [vmem:[#allocation3 + $0x78] sm:$0xff] %vm1481_vm10, %v1464_v31  ;;  %v1820_v33 = vmul.f32 %v5897_v32, %v5897_v32  ;;  %v5902_v34 = vpop.f32.mrb[2].mxu0  ;;  %v1751_v37 = vsel %vm8600_vm12, %v5897_v32, 0.0 }
 0x1a0   : > { %v5904_v35 = vpop.f32.mrb[3].mxu0  ;;  %v1823_v5 = vmul.f32 %v5902_v34, %v5902_v34  ;;  %v1855_v46 = vsel %vm8600_vm12, %v1822_v36, 0.0  ;;  %v1756_v47 = vsel %vm8600_vm12, %v5902_v34, 0.0 }
 0x1a1   : > { %v1752_v38 = vsel %vm8600_vm12, %v5904_v35, 0.0  ;;  %v1821_v39 = vmul.f32 %v5904_v35, %v5904_v35  ;;  %v1852_v43 = vsel %vm8600_vm12, %v1820_v33, 0.0 }
 0x1a2   : > { %v1753_v40 = vadd.f32 %v1752_v38, %v1751_v37  ;;  %v1857_v54 = vsel %vm8600_vm12, %v1823_v5, 0.0  ;;  %v3090_v5 = vld [vmem:[#allocation4 + $0x1] sm:$0xff] }
 0x1a3   : > { %v1853_v41 = vsel %vm8600_vm12, %v1821_v39, 0.0 }
 0x1a4   : > { %v1755_v44 = vadd.f32 %v1754_v42, %v1753_v40  ;;  %v1854_v45 = vadd.f32 %v1853_v41, %v1852_v43  ;;  %v3766_v42 = vld [vmem:[#allocation4 + $0x198] sm:$0xff]  ;;  %v3767_v43 = vld [vmem:[#allocation4 + $0x1a0] sm:$0xff] }
 0x1a5   : > { %v1512_v48 = vld [vmem:[#allocation3 + $0x70] sm:$0xff] }
 0x1a6   : > { %v1856_v49 = vadd.f32 %v1855_v46, %v1854_v45  ;;  %4931 = vmatprep.mubr.msk.bf16.mxu0 %vm1534_vm11, %v1512_v48  ;;  %v1513_v50 = vld [vmem:[#allocation3 + $0x78] sm:$0xff]  ;;  %v1757_v51 = vadd.f32 %v1756_v47, %v1755_v44  ;;  %v3783_v44 = vpack.c.bf16 %v3767_v43, %v3766_v42  ;;  %v3091_v45 = vld [vmem:[#allocation4 + $0x9] sm:$0xff]  ;;  %v3896_v47 = vld [vmem:[#allocation4 + $0x1a1] sm:$0xff] }
 0x1a7   : > { %4932 = vmatmul.mubr.msk.bf16.gmra.mrb[28].mxu0 %vm1534_vm11, %v1513_v50  ;;  %v3895_v46 = vld [vmem:[#allocation4 + $0x199] sm:$0xff]  ;;  %v3219_v50 = vld [vmem:[#allocation4 + $0x2] sm:$0xff] }
 0x1a8   : > { %v1858_v55 = vadd.f32 %v1857_v54, %v1856_v49  ;;  %v3122_v49 = vpack.c.bf16 %v3091_v45, %v3090_v5  ;;  %3830 = vrot.lane.b32.xlu1 %v3783_v44, %s5157_s21  ;;  %v3912_v54 = vpack.c.bf16 %v3896_v47, %v3895_v46 }
 0x1aa   : > { %3154 = vrot.lane.b32.xlu0 %v3122_v49, %s5150_s8 }
 0x1ac   : > { %3959 = vrot.lane.b32.xlu1 %v3912_v54, %s5158_s22 }
 0x1bd   : > { %v5926_v52 = vpop.f32.mrb[4].mxu0 }
 0x1be   : > { %v5928_v20 = vpop.f32.mrb[5].mxu0  ;;  %v1826_v62 = vmul.f32 %v5926_v52, %v5926_v52  ;;  %v1762_v8 = vsel %vm8600_vm12, %v5926_v52, 0.0 }
 0x1bf   : > { %v1758_v57 = vsel %vm8600_vm12, %v5928_v20, 0.0  ;;  %v1824_v58 = vmul.f32 %v5928_v20, %v5928_v20  ;;  %v5934_v59 = vpop.f32.mrb[6].mxu0 }
 0x1c0   : > { %v1759_v53 = vadd.f32 %v1758_v57, %v1757_v51  ;;  %v5936_v61 = vpop.f32.mrb[7].mxu0  ;;  %v1827_v56 = vmul.f32 %v5934_v59, %v5934_v59  ;;  %v1863_v12 = vsel %vm8600_vm12, %v1826_v62, 0.0  ;;  %v1764_v13 = vsel %vm8600_vm12, %v5934_v59, 0.0  ;;  %v3220_v51 = vld [vmem:[#allocation4 + $0xa] sm:$0xff] }
 0x1c1   : > { %v1859_v1 = vsel %vm8600_vm12, %v1824_v58, 0.0  ;;  %v1760_v2 = vsel %vm8600_vm12, %v5936_v61, 0.0  ;;  %v1825_v4 = vmul.f32 %v5936_v61, %v5936_v61 }
 0x1c2   : > { %v1860_v6 = vadd.f32 %v1859_v1, %v1858_v55  ;;  %v1761_v7 = vadd.f32 %v1760_v2, %v1759_v53  ;;  %v1865_v23 = vsel %vm8600_vm12, %v1827_v56, 0.0  ;;  %v3251_v55 = vpack.c.bf16 %v3220_v51, %v3219_v50 }
 0x1c3   : > { %v1861_v9 = vsel %vm8600_vm12, %v1825_v4, 0.0 }
 0x1c4   : > { %v1763_v10 = vadd.f32 %v1762_v8, %v1761_v7  ;;  %v1862_v11 = vadd.f32 %v1861_v9, %v1860_v6  ;;  %3283 = vrot.lane.b32.xlu0 %v3251_v55, %s5152_s10 }
 0x1c6   : > { %v1864_v14 = vadd.f32 %v1863_v12, %v1862_v11  ;;  %v1765_v3 = vadd.f32 %v1764_v13, %v1763_v10 }
 0x1c8   : > { %v1866_v15 = vadd.f32 %v1865_v23, %v1864_v14 }
 0x1dd   : > { %v5954_v16 = vpop.f32.mrb[8].mxu0 }
 0x1de   : > { %v5956_v17 = vpop.f32.mrb[9].mxu0  ;;  %v1830_v24 = vmul.f32 %v5954_v16, %v5954_v16  ;;  %v1770_v27 = vsel %vm8600_vm12, %v5954_v16, 0.0 }
 0x1df   : > { %v1766_v60 = vsel %vm8600_vm12, %v5956_v17, 0.0  ;;  %v1828_v18 = vmul.f32 %v5956_v17, %v5956_v17  ;;  %v5962_v19 = vpop.f32.mrb[10].mxu0 }
 0x1e0   : > { %v1767_v21 = vadd.f32 %v1766_v60, %v1765_v3  ;;  %v5964_v22 = vpop.f32.mrb[11].mxu0  ;;  %v1831_v28 = vmul.f32 %v5962_v19, %v5962_v19  ;;  %v1871_v37 = vsel %vm8600_vm12, %v1830_v24, 0.0  ;;  %v1772_v38 = vsel %vm8600_vm12, %v5962_v19, 0.0 }
 0x1e1   : > { %v1867_v25 = vsel %vm8600_vm12, %v1828_v18, 0.0  ;;  %v1768_v30 = vsel %vm8600_vm12, %v5964_v22, 0.0  ;;  %v1829_v26 = vmul.f32 %v5964_v22, %v5964_v22 }
 0x1e2   : > { %v1868_v63 = vadd.f32 %v1867_v25, %v1866_v15  ;;  %v1769_v0 = vadd.f32 %v1768_v30, %v1767_v21  ;;  %v1873_v41 = vsel %vm8600_vm12, %v1831_v28, 0.0  ;;  %v3026_v25 = vld [vmem:[#allocation4] sm:$0xff]  ;;  %v3027_v30 = vld [vmem:[#allocation4 + $0x8] sm:$0xff] }
 0x1e3   : > { %v1869_v31 = vsel %vm8600_vm12, %v1829_v26, 0.0  ;;  %v3058_v26 = vpack.c.bf16 %v3027_v30, %v3026_v25 }
 0x1e4   : > { %v1771_v33 = vadd.f32 %v1770_v27, %v1769_v0  ;;  %v1870_v36 = vadd.f32 %v1869_v31, %v1868_v63 }
 0x1e5   : > { %3074 = vst.msk [vmem:[#allocation5] sm:$0xff] %vm8600_vm12, %v3058_v26 }
 0x1e6   : > { %v1872_v39 = vadd.f32 %v1871_v37, %v1870_v36  ;;  %v1773_v40 = vadd.f32 %v1772_v38, %v1771_v33 }
 0x1e8   : > { %v1874_v48 = vadd.f32 %v1873_v41, %v1872_v39 }
 0x1fd   : > { %v5986_v57 = vpop.f32.mrb[12].mxu0 }
 0x1fe   : > { %v5988_v58 = vpop.f32.mrb[13].mxu0  ;;  %v1834_v6 = vmul.f32 %v5986_v57, %v5986_v57  ;;  %v1778_v11 = vsel %vm8600_vm12, %v5986_v57, 0.0 }
 0x1ff   : > { %v1774_v53 = vsel %vm8600_vm12, %v5988_v58, 0.0  ;;  %v1832_v62 = vmul.f32 %v5988_v58, %v5988_v58  ;;  %v5994_v1 = vpop.f32.mrb[14].mxu0 }
 0x200   : > { %v1775_v2 = vadd.f32 %v1774_v53, %v1773_v40  ;;  %v5996_v4 = vpop.f32.mrb[15].mxu0  ;;  %v1835_v12 = vmul.f32 %v5994_v1, %v5994_v1  ;;  %v1879_v23 = vsel %vm8600_vm12, %v1834_v6, 0.0  ;;  %v1780_v15 = vsel %vm8600_vm12, %v5994_v1, 0.0 }
 0x201   : > { %v1875_v7 = vsel %vm8600_vm12, %v1832_v62, 0.0  ;;  %v1776_v8 = vsel %vm8600_vm12, %v5996_v4, 0.0  ;;  %v1833_v56 = vmul.f32 %v5996_v4, %v5996_v4 }
 0x202   : > { %v1876_v9 = vadd.f32 %v1875_v7, %v1874_v48  ;;  %v1777_v10 = vadd.f32 %v1776_v8, %v1775_v2  ;;  %v1881_v21 = vsel %vm8600_vm12, %v1835_v12, 0.0 }
 0x203   : > { %v1877_v13 = vsel %vm8600_vm12, %v1833_v56, 0.0 }
 0x204   : > { %v1779_v14 = vadd.f32 %v1778_v11, %v1777_v10  ;;  %v1878_v3 = vadd.f32 %v1877_v13, %v1876_v9 }
 0x206   : > { %v1880_v60 = vadd.f32 %v1879_v23, %v1878_v3  ;;  %v1781_v18 = vadd.f32 %v1780_v15, %v1779_v14 }
 0x208   : > { %v1882_v24 = vadd.f32 %v1881_v21, %v1880_v60 }
 0x21d   : > { %v6015_v63 = vpop.f32.mrb[16].mxu0 }
 0x21e   : > { %v6017_v0 = vpop.f32.mrb[17].mxu0  ;;  %v1838_v37 = vmul.f32 %v6015_v63, %v6015_v63  ;;  %v1786_v5 = vsel %vm8600_vm12, %v6015_v63, 0.0 }
 0x21f   : > { %v1782_v27 = vsel %vm8600_vm12, %v6017_v0, 0.0  ;;  %v1836_v28 = vmul.f32 %v6017_v0, %v6017_v0  ;;  %v6023_v31 = vpop.f32.mrb[18].mxu0 }
 0x220   : > { %v1783_v33 = vadd.f32 %v1782_v27, %v1781_v18  ;;  %v6025_v36 = vpop.f32.mrb[19].mxu0  ;;  %v1839_v41 = vmul.f32 %v6023_v31, %v6023_v31  ;;  %v1887_v47 = vsel %vm8600_vm12, %v1838_v37, 0.0  ;;  %v1788_v48 = vsel %vm8600_vm12, %v6023_v31, 0.0  ;;  %v3155_v27 = vpop.permute.xlu0 %3154 }
 0x221   : > { %v1883_v38 = vsel %vm8600_vm12, %v1836_v28, 0.0  ;;  %v1784_v39 = vsel %vm8600_vm12, %v6025_v36, 0.0  ;;  %v1837_v40 = vmul.f32 %v6025_v36, %v6025_v36  ;;  %3203 = vst.msk [vmem:[#allocation5] sm:$0xff] %vm8599_vm14, %v3155_v27 }
 0x222   : > { %v1884_v42 = vadd.f32 %v1883_v38, %v1882_v24  ;;  %v1785_v43 = vadd.f32 %v1784_v39, %v1783_v33  ;;  %v1889_v51 = vsel %vm8600_vm12, %v1839_v41, 0.0 }
 0x223   : > { %v1885_v44 = vsel %vm8600_vm12, %v1837_v40, 0.0 }
 0x224   : > { %v1787_v45 = vadd.f32 %v1786_v5, %v1785_v43  ;;  %v1886_v46 = vadd.f32 %v1885_v44, %v1884_v42 }
 0x226   : > { %v1888_v49 = vadd.f32 %v1887_v47, %v1886_v46  ;;  %v1789_v50 = vadd.f32 %v1788_v48, %v1787_v45 }
 0x228   : > { %v1890_v54 = vadd.f32 %v1889_v51, %v1888_v49 }
 0x236   : > { %v3284_v43 = vpop.permute.xlu0 %3283 }
 0x237   : > { %3332 = vst.msk [vmem:[#allocation5] sm:$0xff] %vm8598_vm15, %v3284_v43 }
 0x23d   : > { %v6043_v55 = vpop.f32.mrb[20].mxu0 }
 0x23e   : > { %v6045_v53 = vpop.f32.mrb[21].mxu0  ;;  %v1842_v56 = vmul.f32 %v6043_v55, %v6043_v55  ;;  %v1794_v14 = vsel %vm8600_vm12, %v6043_v55, 0.0 }
 0x23f   : > { %v1790_v62 = vsel %vm8600_vm12, %v6045_v53, 0.0  ;;  %v1840_v2 = vmul.f32 %v6045_v53, %v6045_v53  ;;  %v6051_v6 = vpop.f32.mrb[22].mxu0 }
 0x240   : > { %v1791_v7 = vadd.f32 %v1790_v62, %v1789_v50  ;;  %v6053_v8 = vpop.f32.mrb[23].mxu0  ;;  %v1843_v3 = vmul.f32 %v6051_v6, %v6051_v6  ;;  %v1895_v18 = vsel %vm8600_vm12, %v1842_v56, 0.0  ;;  %v1796_v21 = vsel %vm8600_vm12, %v6051_v6, 0.0 }
 0x241   : > { %v1891_v9 = vsel %vm8600_vm12, %v1840_v2, 0.0  ;;  %v1792_v10 = vsel %vm8600_vm12, %v6053_v8, 0.0  ;;  %v1841_v11 = vmul.f32 %v6053_v8, %v6053_v8 }
 0x242   : > { %v1892_v12 = vadd.f32 %v1891_v9, %v1890_v54  ;;  %v1793_v13 = vadd.f32 %v1792_v10, %v1791_v7  ;;  %v1897_v30 = vsel %vm8600_vm12, %v1843_v3, 0.0 }
 0x243   : > { %v1893_v23 = vsel %vm8600_vm12, %v1841_v11, 0.0 }
 0x244   : > { %v1795_v15 = vadd.f32 %v1794_v14, %v1793_v13  ;;  %v1894_v60 = vadd.f32 %v1893_v23, %v1892_v12 }
 0x246   : > { %v1896_v24 = vadd.f32 %v1895_v18, %v1894_v60  ;;  %v1797_v25 = vadd.f32 %v1796_v21, %v1795_v15 }
 0x248   : > { %v1898_v26 = vadd.f32 %v1897_v30, %v1896_v24 }
 0x25d   : > { %v6071_v28 = vpop.f32.mrb[24].mxu0 }
 0x25e   : > { %v6074_v33 = vpop.f32.mrb[25].mxu0  ;;  %v1846_v5 = vmul.f32 %v6071_v28, %v6071_v28  ;;  %v1802_v48 = vsel %vm8600_vm12, %v6071_v28, 0.0 }
 0x25f   : > { %v1798_v37 = vsel %vm8600_vm12, %v6074_v33, 0.0  ;;  %v1844_v38 = vmul.f32 %v6074_v33, %v6074_v33  ;;  %v6080_v39 = vpop.f32.mrb[26].mxu0 }
 0x260   : > { %v1799_v40 = vadd.f32 %v1798_v37, %v1797_v25  ;;  %v6082_v42 = vpop.f32.mrb[27].mxu0  ;;  %v1847_v49 = vmul.f32 %v6080_v39, %v6080_v39  ;;  %v1903_v62 = vsel %vm8600_vm12, %v1846_v5, 0.0  ;;  %v1804_v2 = vsel %vm8600_vm12, %v6080_v39, 0.0 }
 0x261   : > { %v1899_v41 = vsel %vm8600_vm12, %v1844_v38, 0.0  ;;  %v1800_v44 = vsel %vm8600_vm12, %v6082_v42, 0.0  ;;  %v1845_v45 = vmul.f32 %v6082_v42, %v6082_v42 }
 0x262   : > { %v1900_v46 = vadd.f32 %v1899_v41, %v1898_v26  ;;  %v1801_v47 = vadd.f32 %v1800_v44, %v1799_v40  ;;  %v1905_v9 = vsel %vm8600_vm12, %v1847_v49, 0.0 }
 0x263   : > { %v1901_v50 = vsel %vm8600_vm12, %v1845_v45, 0.0 }
 0x264   : > { %v1803_v51 = vadd.f32 %v1802_v48, %v1801_v47  ;;  %v1902_v54 = vadd.f32 %v1901_v50, %v1900_v46 }
 0x266   : > { %v1904_v7 = vadd.f32 %v1903_v62, %v1902_v54  ;;  %v1805_v56 = vadd.f32 %v1804_v2, %v1803_v51 }
 0x268   : > { %v1906_v10 = vadd.f32 %v1905_v9, %v1904_v7 }
 0x27a   : > { %v6101_v11 = vpop.f32.mrb[28].mxu0 }
 0x27b   : > { %v6103_v12 = vpop.f32.mrb[29].mxu0  ;;  %v1850_v60 = vmul.f32 %v6101_v11, %v6101_v11  ;;  %v1810_v26 = vsel %vm8600_vm12, %v6101_v11, 0.0 }
 0x27c   : > { %v1806_v13 = vsel %vm8600_vm12, %v6103_v12, 0.0  ;;  %v1848_v14 = vmul.f32 %v6103_v12, %v6103_v12  ;;  %v6109_v3 = vpop.f32.mrb[30].mxu0 }
 0x27d   : > { %v1807_v23 = vadd.f32 %v1806_v13, %v1805_v56  ;;  %v6111_v15 = vpop.f32.mrb[31].mxu0  ;;  %v1851_v27 = vmul.f32 %v6109_v3, %v6109_v3  ;;  %v1911_v43 = vsel %vm8600_vm12, %v1850_v60, 0.0  ;;  %v1812_v5 = vsel %vm8600_vm12, %v6109_v3, 0.0 }
 0x27e   : > { %v1907_v18 = vsel %vm8600_vm12, %v1848_v14, 0.0  ;;  %v1808_v21 = vsel %vm8600_vm12, %v6111_v15, 0.0  ;;  %v1849_v24 = vmul.f32 %v6111_v15, %v6111_v15 }
 0x27f   : > { %v1908_v25 = vadd.f32 %v1907_v18, %v1906_v10  ;;  %v1809_v30 = vadd.f32 %v1808_v21, %v1807_v23  ;;  %v1913_v45 = vsel %vm8600_vm12, %v1851_v27, 0.0  ;;  %v6131_v23 = vpop.permute.xlu1 %3830 }
 0x280   : > { %v1909_v37 = vsel %vm8600_vm12, %v1849_v24, 0.0  ;;  %8619 = vst [vmem:[#allocation6_spill] sm:$0xff] %v6131_v23 }
 0x281   : > { %v1811_v38 = vadd.f32 %v1810_v26, %v1809_v30  ;;  %v1910_v40 = vadd.f32 %v1909_v37, %v1908_v25 }
 0x283   : > { %v1813_v41 = vadd.f32 %v1812_v5, %v1811_v38  ;;  %v1912_v44 = vadd.f32 %v1911_v43, %v1910_v40  ;;  %v6139_v25 = vpop.permute.xlu1 %3959 }
 0x284   : > { %8620 = vst [vmem:[#allocation7_spill] sm:$0xff] %v6139_v25 }
 0x285   : > { %v1814_v46 = vrot.slane %v1813_v41, 4  ;;  %v1914_v47 = vadd.f32 %v1913_v45, %v1912_v44 }
 0x287   : > { %v1815_v48 = vadd.f32 %v1814_v46, %v1813_v41  ;;  %v1915_v49 = vrot.slane %v1914_v47, 4 }
 0x289   : > { %v1816_v50 = vrot.slane %v1815_v48, 2  ;;  %v1916_v51 = vadd.f32 %v1915_v49, %v1914_v47 }
 0x28b   : > { %v1817_v54 = vadd.f32 %v1816_v50, %v1815_v48  ;;  %v1917_v62 = vrot.slane %v1916_v51, 2 }
 0x28d   : > { %v1818_v2 = vrot.slane %v1817_v54, 1  ;;  %v1918_v7 = vadd.f32 %v1917_v62, %v1916_v51 }
 0x28f   : > { %v1819_v56 = vadd.f32 %v1818_v2, %v1817_v54  ;;  %v1919_v9 = vrot.slane %v1918_v7, 1 }
 0x291   : > { %v1921_v10 = vsel %vm8600_vm12, %v1819_v56, 0.0  ;;  %v1920_v13 = vadd.f32 %v1919_v9, %v1918_v7 }
 0x292   : > { %1922 = vadd.xlane.f32.xlu0 %v1921_v10 }
 0x293   : > { %v1924_v14 = vsel %vm8600_vm12, %v1920_v13, 0.0  ;;  %v4828_v13 = vld [vmem:[%s8491_s2] ss:$0 sm:$0xff] }
 0x294   : > { %1925 = vadd.xlane.f32.xlu1 %v1924_v14 }
 0x31f   : > { %v1923_v60 = vpop.xlane.xlu0 %1922 }
 0x320   : > { %v6133_v18 = vmul.f32 0.00048828125, %v1923_v60 }
 0x321   : > { %v1926_v40 = vpop.xlane.xlu1 %1925 }
 0x322   : > { %v1936_v21 = vsub.f32 %v5894_v29, %v6133_v18  ;;  %v1937_v24 = vsub.f32 %v5902_v34, %v6133_v18  ;;  %v1938_v30 = vsub.f32 %v5928_v20, %v6133_v18  ;;  %v1939_v26 = vsub.f32 %v5936_v61, %v6133_v18 }
 0x323   : > { %v1940_v27 = vsub.f32 %v5926_v52, %v6133_v18  ;;  %v1941_v37 = vsub.f32 %v5934_v59, %v6133_v18  ;;  %v1942_v29 = vsub.f32 %v5956_v17, %v6133_v18  ;;  %v1943_v34 = vsub.f32 %v5964_v22, %v6133_v18 }
 0x324   : > { %v1944_v38 = vsub.f32 %v5954_v16, %v6133_v18  ;;  %v1945_v20 = vsub.f32 %v5962_v19, %v6133_v18  ;;  %v1946_v61 = vsub.f32 %v5988_v58, %v6133_v18  ;;  %v1947_v52 = vsub.f32 %v5996_v4, %v6133_v18 }
 0x325   : > { %v1948_v59 = vsub.f32 %v5986_v57, %v6133_v18  ;;  %v1949_v17 = vsub.f32 %v5994_v1, %v6133_v18  ;;  %v1950_v22 = vsub.f32 %v6017_v0, %v6133_v18  ;;  %v1951_v16 = vsub.f32 %v6025_v36, %v6133_v18 }
 0x326   : > { %v1952_v19 = vsub.f32 %v6015_v63, %v6133_v18  ;;  %v1953_v58 = vsub.f32 %v6023_v31, %v6133_v18  ;;  %v1954_v4 = vsub.f32 %v6045_v53, %v6133_v18  ;;  %v1955_v57 = vsub.f32 %v6053_v8, %v6133_v18 }
 0x327   : > { %v1956_v1 = vsub.f32 %v6043_v55, %v6133_v18  ;;  %v1957_v0 = vsub.f32 %v6051_v6, %v6133_v18  ;;  %v1958_v36 = vsub.f32 %v6074_v33, %v6133_v18  ;;  %v1959_v63 = vsub.f32 %v6082_v42, %v6133_v18 }
 0x328   : > { %v1960_v31 = vsub.f32 %v6071_v28, %v6133_v18  ;;  %v1961_v53 = vsub.f32 %v6080_v39, %v6133_v18  ;;  %v1962_v8 = vsub.f32 %v6103_v12, %v6133_v18  ;;  %v1963_v55 = vsub.f32 %v6111_v15, %v6133_v18 }
 0x329   : > { %v1964_v6 = vsub.f32 %v6101_v11, %v6133_v18  ;;  %v1965_v33 = vsub.f32 %v6109_v3, %v6133_v18  ;;  %v1929_v43 = vmul.f32 0.00048828125, %v1926_v40  ;;  %v1930_v42 = vmul.f32 %v6133_v18, %v6133_v18 }
 0x32a   : > { %v1934_v39 = vsub.f32 %v5897_v32, %v6133_v18  ;;  %v1935_v12 = vsub.f32 %v5904_v35, %v6133_v18 }
 0x32b   : > { %v1931_v28 = vsub.f32 %v1929_v43, %v1930_v42 }
 0x32d   : > { %v1932_v5 = vadd.f32 1e-05, %v1931_v28 }
 0x32f   : > { %5008 = vrsqrt.f32 %v1932_v5 }
 0x339   : > { %v5009_v15 = vpop.eup %5008 }
 0x33a   : > { %v1966_v41 = vmul.f32 %v5009_v15, %v1934_v39  ;;  %v1967_v44 = vmul.f32 %v5009_v15, %v1935_v12  ;;  %v1968_v11 = vmul.f32 %v5009_v15, %v1936_v21  ;;  %v1969_v45 = vmul.f32 %v5009_v15, %v1937_v24 }
 0x33b   : > { %v1970_v46 = vmul.f32 %v5009_v15, %v1938_v30  ;;  %v1971_v3 = vmul.f32 %v5009_v15, %v1939_v26  ;;  %v1972_v47 = vmul.f32 %v5009_v15, %v1940_v27  ;;  %v1973_v48 = vmul.f32 %v5009_v15, %v1941_v37  ;;  %v6209_v37 = vld [vmem:[%s8492_s3] ss:$0 sm:$0xff] }
 0x33c   : > { %v1974_v49 = vmul.f32 %v5009_v15, %v1942_v29  ;;  %v1975_v50 = vmul.f32 %v5009_v15, %v1943_v34  ;;  %v1976_v51 = vmul.f32 %v5009_v15, %v1944_v38  ;;  %v1977_v54 = vmul.f32 %v5009_v15, %v1945_v20 }
 0x33d   : > { %v1978_v62 = vmul.f32 %v5009_v15, %v1946_v61  ;;  %v1979_v2 = vmul.f32 %v5009_v15, %v1947_v52  ;;  %v1980_v7 = vmul.f32 %v5009_v15, %v1948_v59  ;;  %v1981_v32 = vmul.f32 %v5009_v15, %v1949_v17 }
 0x33e   : > { %v1982_v56 = vmul.f32 %v5009_v15, %v1950_v22  ;;  %v1983_v9 = vmul.f32 %v5009_v15, %v1951_v16  ;;  %v1984_v35 = vmul.f32 %v5009_v15, %v1952_v19  ;;  %v1985_v10 = vmul.f32 %v5009_v15, %v1953_v58 }
 0x33f   : > { %v1986_v14 = vmul.f32 %v5009_v15, %v1954_v4  ;;  %v1987_v60 = vmul.f32 %v5009_v15, %v1955_v57  ;;  %v1988_v18 = vmul.f32 %v5009_v15, %v1956_v1  ;;  %v1989_v21 = vmul.f32 %v5009_v15, %v1957_v0 }
 0x340   : > { %v1990_v24 = vmul.f32 %v5009_v15, %v1958_v36  ;;  %v1991_v30 = vmul.f32 %v5009_v15, %v1959_v63  ;;  %v1992_v26 = vmul.f32 %v5009_v15, %v1960_v31  ;;  %v1993_v27 = vmul.f32 %v5009_v15, %v1961_v53 }
 0x341   : > { %v1994_v29 = vmul.f32 %v5009_v15, %v1962_v8  ;;  %v1995_v34 = vmul.f32 %v5009_v15, %v1963_v55  ;;  %v1996_v38 = vmul.f32 %v5009_v15, %v1964_v6  ;;  %v1997_v20 = vmul.f32 %v5009_v15, %v1965_v33 }
 0x342   : > { %v2004_v61 = vmul.f32 %v4828_v13, %v1966_v41  ;;  %v2005_v52 = vmul.f32 %v4828_v13, %v1967_v44  ;;  %v2006_v59 = vmul.f32 %v4828_v13, %v1968_v11  ;;  %v2007_v17 = vmul.f32 %v4828_v13, %v1969_v45 }
 0x343   : > { %v2008_v22 = vmul.f32 %v4828_v13, %v1970_v46  ;;  %v2009_v16 = vmul.f32 %v4828_v13, %v1971_v3  ;;  %v2010_v19 = vmul.f32 %v4828_v13, %v1972_v47  ;;  %v2011_v58 = vmul.f32 %v4828_v13, %v1973_v48 }
 0x344   : > { %v6212_v4 = vadd.f32 %v6209_v37, %v2004_v61  ;;  %v6215_v57 = vadd.f32 %v6209_v37, %v2005_v52  ;;  %v2012_v1 = vmul.f32 %v4828_v13, %v1974_v49  ;;  %v2013_v0 = vmul.f32 %v4828_v13, %v1975_v50 }
 0x345   : > { %v2014_v40 = vmul.f32 %v4828_v13, %v1976_v51  ;;  %v2015_v36 = vmul.f32 %v4828_v13, %v1977_v54  ;;  %v2016_v63 = vmul.f32 %v4828_v13, %v1978_v62  ;;  %v2017_v31 = vmul.f32 %v4828_v13, %v1979_v2 }
 0x346   : > { %v6218_v53 = vmul.f32 0.70710677, %v6212_v4  ;;  %v6221_v8 = vmul.f32 0.70710677, %v6215_v57  ;;  %v2018_v55 = vmul.f32 %v4828_v13, %v1980_v7  ;;  %v2019_v6 = vmul.f32 %v4828_v13, %v1981_v32 }
 0x347   : > { %v2020_v33 = vmul.f32 %v4828_v13, %v1982_v56  ;;  %v2021_v43 = vmul.f32 %v4828_v13, %v1983_v9  ;;  %v2022_v5 = vmul.f32 %v4828_v13, %v1984_v35  ;;  %v2023_v39 = vmul.f32 %v4828_v13, %v1985_v10 }
 0x348   : > { %v2138_v42 = vand.u32 2147483647, %v6218_v53  ;;  %v2139_v28 = vand.u32 2147483647, %v6221_v8  ;;  %v2024_v12 = vmul.f32 %v4828_v13, %v1986_v14  ;;  %v2025_v15 = vmul.f32 %v4828_v13, %v1987_v60 }
 0x349   : > { %v2026_v11 = vmul.f32 %v4828_v13, %v1988_v18  ;;  %v2027_v45 = vmul.f32 %v4828_v13, %v1989_v21  ;;  %v2028_v46 = vmul.f32 %v4828_v13, %v1990_v24  ;;  %v2029_v3 = vmul.f32 %v4828_v13, %v1991_v30 }
 0x34a   : > { %v2170_v41 = vmul.f32 0.3275911, %v2138_v42  ;;  %v2171_v44 = vmul.f32 0.3275911, %v2139_v28  ;;  %v2586_v49 = vsub.f32 0.0, %v2138_v42  ;;  %v2030_v50 = vmul.f32 %v4828_v13, %v1992_v26 }
 0x34b   : > { %v2031_v51 = vmul.f32 %v4828_v13, %v1993_v27  ;;  %v2032_v54 = vmul.f32 %v4828_v13, %v1994_v29  ;;  %v2033_v62 = vmul.f32 %v4828_v13, %v1995_v34  ;;  %v2034_v2 = vmul.f32 %v4828_v13, %v1996_v38 }
 0x34c   : > { %v2202_v47 = vadd.f32 1.0, %v2170_v41  ;;  %v2203_v48 = vadd.f32 1.0, %v2171_v44  ;;  %v2035_v7 = vmul.f32 %v4828_v13, %v1997_v20  ;;  %v6226_v32 = vadd.f32 %v6209_v37, %v2006_v59 }
 0x34d   : > { %v6229_v56 = vadd.f32 %v6209_v37, %v2007_v17  ;;  %v2587_v9 = vsub.f32 0.0, %v2139_v28  ;;  %v6232_v35 = vadd.f32 %v6209_v37, %v2008_v22  ;;  %v6235_v10 = vadd.f32 %v6209_v37, %v2009_v16 }
 0x34e   : > { %5010 = vrcp.f32 %v2202_v47  ;;  %v6238_v14 = vadd.f32 %v6209_v37, %v2010_v19  ;;  %v2618_v60 = vmul.f32 %v2586_v49, %v2138_v42  ;;  %v6241_v18 = vadd.f32 %v6209_v37, %v2011_v58 }
 0x34f   : > { %5012 = vrcp.f32 %v2203_v48  ;;  %v6244_v13 = vadd.f32 %v6209_v37, %v2012_v1  ;;  %v6247_v21 = vadd.f32 %v6209_v37, %v2013_v0  ;;  %v6250_v24 = vadd.f32 %v6209_v37, %v2014_v40 }
 0x350   : > { %v6253_v30 = vadd.f32 %v6209_v37, %v2015_v36  ;;  %v6256_v26 = vadd.f32 %v6209_v37, %v2016_v63  ;;  %v6259_v27 = vadd.f32 %v6209_v37, %v2017_v31  ;;  %v6262_v29 = vadd.f32 %v6209_v37, %v2018_v55 }
 0x351   : > { %v6265_v34 = vadd.f32 %v6209_v37, %v2019_v6  ;;  %v6268_v38 = vadd.f32 %v6209_v37, %v2020_v33  ;;  %v6271_v20 = vadd.f32 %v6209_v37, %v2021_v43  ;;  %v6274_v61 = vadd.f32 %v6209_v37, %v2022_v5 }
 0x352   : > { %v6277_v52 = vadd.f32 %v6209_v37, %v2023_v39  ;;  %v6280_v59 = vadd.f32 %v6209_v37, %v2024_v12  ;;  %v6283_v17 = vadd.f32 %v6209_v37, %v2025_v15  ;;  %v6286_v22 = vadd.f32 %v6209_v37, %v2026_v11 }
 0x353   : > { %v6289_v16 = vadd.f32 %v6209_v37, %v2027_v45  ;;  %v6292_v19 = vadd.f32 %v6209_v37, %v2028_v46  ;;  %v6295_v58 = vadd.f32 %v6209_v37, %v2029_v3  ;;  %v6298_v1 = vadd.f32 %v6209_v37, %v2030_v50 }
 0x354   : > { %v6301_v0 = vadd.f32 %v6209_v37, %v2031_v51  ;;  %v6304_v40 = vadd.f32 %v6209_v37, %v2032_v54  ;;  %v6307_v36 = vadd.f32 %v6209_v37, %v2033_v62  ;;  %v2619_v63 = vmul.f32 %v2587_v9, %v2139_v28 }
 0x355   : > { %v6310_v31 = vadd.f32 %v6209_v37, %v2034_v2  ;;  %v6313_v55 = vadd.f32 %v6209_v37, %v2035_v7  ;;  %v2650_v5 = vmul.f32 1.442695, %v2618_v60  ;;  %v6316_v44 = vmul.f32 0.5, %v6212_v4 }
 0x356   : > { %v2652_v12 = vmul.f32 1.442695, %v2619_v63  ;;  %v6319_v28 = vmul.f32 0.5, %v6215_v57  ;;  %v6322_v37 = vmul.f32 0.5, %v6226_v32  ;;  %v6325_v3 = vmul.f32 0.5, %v6229_v56 }
 0x357   : > { %5014 = vpow2.f32 %v2650_v5  ;;  %v6328_v47 = vmul.f32 0.5, %v6232_v35  ;;  %v6331_v4 = vmul.f32 0.5, %v6235_v10  ;;  %v6334_v49 = vmul.f32 0.5, %v6238_v14 }
 0x358   : > { %v5011_v6 = vpop.eup %5010  ;;  %5016 = vpow2.f32 %v2652_v12  ;;  %8621 = vst [vmem:[#allocation8_spill] sm:$0xff] %v6322_v37  ;;  %8622 = vst [vmem:[#allocation9_spill] sm:$0xff] %v6325_v3  ;;  %v6337_v57 = vmul.f32 0.5, %v6241_v18  ;;  %v6340_v50 = vmul.f32 0.5, %v6244_v13  ;;  %v6343_v54 = vmul.f32 0.5, %v6247_v21 }
 0x359   : > { %v5013_v33 = vpop.eup %5012  ;;  %v2298_v43 = vmul.f32 1.0614054, %v5011_v6  ;;  %8623 = vst [vmem:[#allocation10_spill] sm:$0xff] %v6328_v47  ;;  %8624 = vst [vmem:[#allocation11_spill] sm:$0xff] %v6331_v4  ;;  %v6346_v62 = vmul.f32 0.5, %v6250_v24  ;;  %v6349_v2 = vmul.f32 0.5, %v6253_v30 }
 0x35a   : > { %v2299_v42 = vmul.f32 1.0614054, %v5013_v33  ;;  %8625 = vst [vmem:[#allocation12_spill] sm:$0xff] %v6334_v49  ;;  %8626 = vst [vmem:[#allocation13_spill] sm:$0xff] %v6337_v57  ;;  %v6352_v9 = vmul.f32 0.5, %v6256_v26  ;;  %v6355_v60 = vmul.f32 0.5, %v6259_v27 }
 0x35b   : > { %v2330_v39 = vadd.f32 -1.4531521, %v2298_v43  ;;  %8627 = vst [vmem:[#allocation14_spill] sm:$0xff] %v6340_v50  ;;  %8628 = vst [vmem:[#allocation15_spill] sm:$0xff] %v6343_v54  ;;  %v6358_v63 = vmul.f32 0.5, %v6262_v29  ;;  %v6364_v5 = vmul.f32 0.5, %v6268_v38 }
 0x35c   : > { %v2331_v15 = vadd.f32 -1.4531521, %v2299_v42  ;;  %8629 = vst [vmem:[#allocation16_spill] sm:$0xff] %v6346_v62  ;;  %8630 = vst [vmem:[#allocation17_spill] sm:$0xff] %v6349_v2  ;;  %v6361_v42 = vmul.f32 0.5, %v6265_v34  ;;  %v6388_v25 = vmul.f32 0.5, %v6292_v19 }
 0x35d   : > { %v2362_v41 = vmul.f32 %v5011_v6, %v2330_v39  ;;  %8631 = vst [vmem:[#allocation18_spill] sm:$0xff] %v6352_v9  ;;  %8632 = vst [vmem:[#allocation19_spill] sm:$0xff] %v6355_v60  ;;  %v6367_v39 = vmul.f32 0.5, %v6271_v20  ;;  %v6391_v23 = vmul.f32 0.5, %v6295_v58  ;;  %vm2778_vm0 = vcmp.ge.f32.partialorder %v6218_v53, 0.0 }
 0x35e   : > { %v2363_v11 = vmul.f32 %v5013_v33, %v2331_v15  ;;  %8633 = vst [vmem:[#allocation20_spill] sm:$0xff] %v6358_v63  ;;  %8634 = vst [vmem:[#allocation21_spill] sm:$0xff] %v6361_v42  ;;  %v6370_v15 = vmul.f32 0.5, %v6274_v61  ;;  %vm2779_vm1 = vcmp.ge.f32.partialorder %v6221_v8, 0.0 }
 0x35f   : > { %v2394_v45 = vadd.f32 1.4214138, %v2362_v41  ;;  %8635 = vst [vmem:[#allocation22_spill] sm:$0xff] %v6364_v5  ;;  %8636 = vst [vmem:[#allocation23_spill] sm:$0xff] %v6367_v39  ;;  %v6373_v41 = vmul.f32 0.5, %v6277_v52 }
 0x360   : > { %v2395_v46 = vadd.f32 1.4214138, %v2363_v11  ;;  %8637 = vst [vmem:[#allocation24_spill] sm:$0xff] %v6370_v15  ;;  %v6376_v11 = vmul.f32 0.5, %v6280_v59  ;;  %8643 = vst [vmem:[#allocation30_spill] sm:$0xff] %v6388_v25 }
 0x361   : > { %v2426_v48 = vmul.f32 %v5011_v6, %v2394_v45  ;;  %8638 = vst [vmem:[#allocation25_spill] sm:$0xff] %v6373_v41  ;;  %8644 = vst [vmem:[#allocation31_spill] sm:$0xff] %v6391_v23  ;;  %v6394_v41 = vmul.f32 0.70710677, %v6226_v32  ;;  %v6405_v25 = vmul.f32 0.70710677, %v6235_v10 }
 0x362   : > { %v2427_v51 = vmul.f32 %v5013_v33, %v2395_v46  ;;  %8639 = vst [vmem:[#allocation26_spill] sm:$0xff] %v6376_v11  ;;  %v6379_v46 = vmul.f32 0.5, %v6283_v17  ;;  %v6408_v32 = vmul.f32 0.70710677, %v6238_v14  ;;  %v6423_v10 = vmul.f32 0.70710677, %v6253_v30 }
 0x363   : > { %v2458_v7 = vadd.f32 -0.28449672, %v2426_v48  ;;  %v6382_v48 = vmul.f32 0.5, %v6286_v22  ;;  %8645 = vst [vmem:[#allocation32_spill] sm:$0xff] %v6394_v41  ;;  %8648 = vst [vmem:[#allocation35_spill] sm:$0xff] %v6405_v25  ;;  %v6441_v30 = vmul.f32 0.5, %v6298_v1 }
 0x364   : > { %v2459_v43 = vadd.f32 -0.28449672, %v2427_v51  ;;  %8640 = vst [vmem:[#allocation27_spill] sm:$0xff] %v6379_v46  ;;  %v6385_v51 = vmul.f32 0.5, %v6289_v16  ;;  %v6398_v46 = vmul.f32 0.70710677, %v6229_v56 }
 0x365   : > { %v2490_v12 = vmul.f32 %v5011_v6, %v2458_v7  ;;  %8641 = vst [vmem:[#allocation28_spill] sm:$0xff] %v6382_v48  ;;  %v6401_v48 = vmul.f32 0.70710677, %v6232_v35  ;;  %8649 = vst [vmem:[#allocation36_spill] sm:$0xff] %v6408_v32  ;;  %v6414_v56 = vmul.f32 0.70710677, %v6244_v13 }
 0x366   : > { %v2491_v45 = vmul.f32 %v5013_v33, %v2459_v43  ;;  %8642 = vst [vmem:[#allocation29_spill] sm:$0xff] %v6385_v51  ;;  %v5015_v43 = vpop.eup %5014  ;;  %8646 = vst [vmem:[#allocation33_spill] sm:$0xff] %v6398_v46  ;;  %v6417_v35 = vmul.f32 0.70710677, %v6247_v21  ;;  %v6426_v14 = vmul.f32 0.70710677, %v6256_v26 }
 0x367   : > { %v2522_v7 = vadd.f32 0.2548296, %v2490_v12  ;;  %8647 = vst [vmem:[#allocation34_spill] sm:$0xff] %v6401_v48  ;;  %v5017_v12 = vpop.eup %5016  ;;  %8651 = vst [vmem:[#allocation38_spill] sm:$0xff] %v6414_v56  ;;  %v6432_v13 = vmul.f32 0.70710677, %v6262_v29 }
 0x368   : > { %v2523_v11 = vadd.f32 0.2548296, %v2491_v45  ;;  %v6411_v45 = vmul.f32 0.70710677, %v6241_v18  ;;  %8652 = vst [vmem:[#allocation39_spill] sm:$0xff] %v6417_v35  ;;  %8654 = vst [vmem:[#allocation41_spill] sm:$0xff] %v6423_v10 }
 0x369   : > { %v2554_v51 = vmul.f32 %v5011_v6, %v2522_v7  ;;  %v6420_v6 = vmul.f32 0.70710677, %v6250_v24  ;;  %8655 = vst [vmem:[#allocation42_spill] sm:$0xff] %v6426_v14  ;;  %v6429_v18 = vmul.f32 0.70710677, %v6259_v27  ;;  %8657 = vst [vmem:[#allocation44_spill] sm:$0xff] %v6432_v13 }
 0x36a   : > { %8650 = vst [vmem:[#allocation37_spill] sm:$0xff] %v6411_v45  ;;  %v2555_v23 = vmul.f32 %v5013_v33, %v2523_v11  ;;  %v6435_v21 = vmul.f32 0.70710677, %v6265_v34  ;;  %v6438_v24 = vmul.f32 0.70710677, %v6268_v38  ;;  %8660 = vst [vmem:[#allocation47_spill] sm:$0xff] %v6441_v30 }
 0x36b   : > { %8653 = vst [vmem:[#allocation40_spill] sm:$0xff] %v6420_v6  ;;  %v2714_v7 = vmul.f32 %v5015_v43, %v2554_v51  ;;  %8656 = vst [vmem:[#allocation43_spill] sm:$0xff] %v6429_v18  ;;  %v6444_v26 = vmul.f32 0.70710677, %v6271_v20  ;;  %v6447_v27 = vmul.f32 0.70710677, %v6274_v61 }
 0x36c   : > { %v2715_v33 = vmul.f32 %v5017_v12, %v2555_v23  ;;  %8658 = vst [vmem:[#allocation45_spill] sm:$0xff] %v6435_v21  ;;  %8659 = vst [vmem:[#allocation46_spill] sm:$0xff] %v6438_v24  ;;  %v6450_v29 = vmul.f32 0.5, %v6301_v0  ;;  %v6453_v34 = vmul.f32 0.70710677, %v6277_v52  ;;  %v6459_v43 = vmul.f32 0.5, %v6304_v40 }
 0x36d   : > { %v2746_v11 = vsub.f32 1.0, %v2714_v7  ;;  %8661 = vst [vmem:[#allocation48_spill] sm:$0xff] %v6444_v26  ;;  %8662 = vst [vmem:[#allocation49_spill] sm:$0xff] %v6447_v27  ;;  %v6456_v38 = vmul.f32 0.70710677, %v6280_v59  ;;  %v6468_v7 = vmul.f32 0.5, %v6307_v36 }
 0x36e   : > { %v2747_v23 = vsub.f32 1.0, %v2715_v33  ;;  %8663 = vst [vmem:[#allocation50_spill] sm:$0xff] %v6450_v29  ;;  %8664 = vst [vmem:[#allocation51_spill] sm:$0xff] %v6453_v34  ;;  %v6462_v20 = vmul.f32 0.70710677, %v6283_v17 }
 0x36f   : > { %8665 = vst [vmem:[#allocation52_spill] sm:$0xff] %v6456_v38  ;;  %v2810_v51 = vsub.f32 0.0, %v2746_v11  ;;  %8666 = vst [vmem:[#allocation53_spill] sm:$0xff] %v6459_v43  ;;  %v6465_v61 = vmul.f32 0.70710677, %v6286_v22 }
 0x370   : > { %8667 = vst [vmem:[#allocation54_spill] sm:$0xff] %v6462_v20  ;;  %v2811_v12 = vsub.f32 0.0, %v2747_v23  ;;  %8669 = vst [vmem:[#allocation56_spill] sm:$0xff] %v6468_v7  ;;  %v6471_v52 = vmul.f32 0.70710677, %v6289_v16 }
 0x371   : > { %8668 = vst [vmem:[#allocation55_spill] sm:$0xff] %v6465_v61  ;;  %v6474_v59 = vmul.f32 0.70710677, %v6292_v19  ;;  %v2842_v33 = vsel %vm2778_vm0, %v2746_v11, %v2810_v51  ;;  %v6479_v43 = vmul.f32 0.70710677, %v6295_v58  ;;  %v6496_v58 = vmul.f32 0.5, %v6310_v31 }
 0x372   : > { %8670 = vst [vmem:[#allocation57_spill] sm:$0xff] %v6471_v52  ;;  %v6482_v17 = vmul.f32 0.70710677, %v6298_v1  ;;  %v6485_v22 = vmul.f32 0.70710677, %v6301_v0  ;;  %v2843_v7 = vsel %vm2779_vm1, %v2747_v23, %v2811_v12  ;;  %v2874_v16 = vadd.f32 1.0, %v2842_v33 }
 0x373   : > { %8671 = vst [vmem:[#allocation58_spill] sm:$0xff] %v6474_v59  ;;  %8672 = vst [vmem:[#allocation59_spill] sm:$0xff] %v6479_v43  ;;  %v6490_v29 = vmul.f32 0.70710677, %v6304_v40  ;;  %v6493_v19 = vmul.f32 0.70710677, %v6307_v36 }
 0x374   : > { %8673 = vst [vmem:[#allocation60_spill] sm:$0xff] %v6482_v17  ;;  %8674 = vst [vmem:[#allocation61_spill] sm:$0xff] %v6485_v22  ;;  %v2875_v53 = vadd.f32 1.0, %v2843_v7  ;;  %v6499_v1 = vmul.f32 0.70710677, %v6310_v31  ;;  %v2906_v8 = vmul.f32 %v2874_v16, %v6316_v44 }
 0x375   : > { %8675 = vst [vmem:[#allocation62_spill] sm:$0xff] %v6490_v29  ;;  %8676 = vst [vmem:[#allocation63_spill] sm:$0xff] %v6493_v19  ;;  %v6502_v0 = vmul.f32 0.70710677, %v6313_v55  ;;  %v6506_v11 = vand.u32 2147483647, %v6394_v41 }
 0x376   : > { %8677 = vst [vmem:[#allocation64_spill] sm:$0xff] %v6496_v58  ;;  %8678 = vst [vmem:[#allocation65_spill] sm:$0xff] %v6499_v1  ;;  %v6509_v40 = vand.u32 2147483647, %v6398_v46  ;;  %v6512_v36 = vand.u32 2147483647, %v6401_v48  ;;  %v2907_v23 = vmul.f32 %v2875_v53, %v6319_v28 }
 0x377   : > { %8679 = vst [vmem:[#allocation66_spill] sm:$0xff] %v6502_v0  ;;  %v6516_v51 = vand.u32 2147483647, %v6405_v25  ;;  %v6519_v31 = vand.u32 2147483647, %v6408_v32  ;;  %2994 = vst.msk [vmem:[#allocation4 + $0x19] sm:$0xff] %vm8600_vm12, %v2906_v8 }
 0x378   : > { %v6522_v12 = vand.u32 2147483647, %v6411_v45  ;;  %v6526_v44 = vand.u32 2147483647, %v6414_v56  ;;  %v6529_v7 = vand.u32 2147483647, %v6417_v35 }
 0x379   : > { %v6532_v33 = vand.u32 2147483647, %v6420_v6  ;;  %2995 = vst.msk [vmem:[#allocation4 + $0x21] sm:$0xff] %vm8600_vm12, %v2907_v23  ;;  %v6536_v28 = vand.u32 2147483647, %v6423_v10  ;;  %v2589_v41 = vsub.f32 0.0, %v6509_v40 }
 0x37a   : > { %v6539_v16 = vand.u32 2147483647, %v6426_v14  ;;  %v6542_v53 = vand.u32 2147483647, %v6429_v18  ;;  %v6545_v8 = vand.u32 2147483647, %v6432_v13 }
 0x37b   : > { %v6548_v58 = vand.u32 2147483647, %v6435_v21  ;;  %v6551_v30 = vand.u32 2147483647, %v6438_v24  ;;  %v6554_v23 = vand.u32 2147483647, %v6444_v26 }
 0x37c   : > { %v6557_v15 = vand.u32 2147483647, %v6447_v27  ;;  %v6560_v39 = vand.u32 2147483647, %v6453_v34  ;;  %v6563_v5 = vand.u32 2147483647, %v6456_v38 }
 0x37d   : > { %v6566_v42 = vand.u32 2147483647, %v6462_v20  ;;  %v6569_v63 = vand.u32 2147483647, %v6465_v61  ;;  %v6572_v60 = vand.u32 2147483647, %v6471_v52 }
 0x37e   : > { %v6575_v9 = vand.u32 2147483647, %v6474_v59  ;;  %v6578_v2 = vand.u32 2147483647, %v6479_v43  ;;  %v6581_v62 = vand.u32 2147483647, %v6482_v17 }
 0x37f   : > { %v6584_v54 = vand.u32 2147483647, %v6485_v22  ;;  %v6587_v50 = vand.u32 2147483647, %v6490_v29  ;;  %v3348_v57 = vld [vmem:[#allocation4 + $0x18] sm:$0xff]  ;;  %v6596_v20 = vmul.f32 0.5, %v6313_v55 }
 0x380   : > { %8680 = vst [vmem:[#allocation67_spill] sm:$0xff] %v6575_v9  ;;  %v3092_v49 = vld [vmem:[#allocation4 + $0x19] sm:$0xff]  ;;  %v6590_v52 = vand.u32 2147483647, %v6493_v19  ;;  %v6593_v59 = vand.u32 2147483647, %v6499_v1 }
 0x381   : > { %v3349_v61 = vld [vmem:[#allocation4 + $0x20] sm:$0xff]  ;;  %8681 = vst [vmem:[#allocation68_spill] sm:$0xff] %v6596_v20  ;;  %v6599_v17 = vand.u32 2147483647, %v6502_v0  ;;  %v2588_v22 = vsub.f32 0.0, %v6506_v11 }
 0x382   : > { %v3093_v43 = vld [vmem:[#allocation4 + $0x21] sm:$0xff]  ;;  %v3380_v29 = vpack.c.bf16 %v3349_v61, %v3348_v57  ;;  %v6603_v19 = vmul.f32 0.3275911, %v6506_v11  ;;  %v6606_v1 = vmul.f32 0.3275911, %v6509_v40 }
 0x383   : > { %v3123_v38 = vpack.c.bf16 %v3093_v43, %v3092_v49  ;;  %v3221_v34 = vld [vmem:[#allocation4 + $0x1a] sm:$0xff]  ;;  %v3222_v27 = vld [vmem:[#allocation4 + $0x22] sm:$0xff]  ;;  %v6609_v26 = vmul.f32 0.3275911, %v6512_v36  ;;  %v6612_v55 = vmul.f32 0.3275911, %v6516_v51  ;;  %v2620_v37 = vmul.f32 %v2588_v22, %v6506_v11 }
 0x384   : > { %v6615_v20 = vmul.f32 0.3275911, %v6519_v31  ;;  %3412 = vrot.lane.b32.xlu0 %v3380_v29, %s5154_s14  ;;  %v6620_v49 = vmul.f32 0.3275911, %v6522_v12  ;;  %v6623_v57 = vmul.f32 0.3275911, %v6526_v44  ;;  %v3252_v29 = vpack.c.bf16 %v3222_v27, %v3221_v34 }
 0x385   : > { %3156 = vrot.lane.b32.xlu1 %v3123_v38, %s5150_s8  ;;  %v6626_v43 = vmul.f32 0.3275911, %v6529_v7  ;;  %v6629_v61 = vmul.f32 0.3275911, %v6532_v33  ;;  %v6632_v0 = vmul.f32 0.3275911, %v6536_v28 }
 0x386   : > { %v6635_v24 = vmul.f32 0.3275911, %v6539_v16  ;;  %v6638_v21 = vmul.f32 0.3275911, %v6542_v53  ;;  %v6641_v13 = vmul.f32 0.3275911, %v6545_v8 }
 0x387   : > { %v6644_v18 = vmul.f32 0.3275911, %v6548_v58  ;;  %v6647_v14 = vmul.f32 0.3275911, %v6551_v30  ;;  %v6650_v10 = vmul.f32 0.3275911, %v6554_v23 }
 0x388   : > { %v6653_v6 = vmul.f32 0.3275911, %v6557_v15  ;;  %3541 = vrot.lane.b32.xlu0 %v3123_v38, %s5156_s20  ;;  %v6658_v27 = vmul.f32 0.3275911, %v6560_v39  ;;  %v6661_v34 = vmul.f32 0.3275911, %v6563_v5 }
 0x389   : > { %3285 = vrot.lane.b32.xlu1 %v3252_v29, %s5152_s10  ;;  %v6664_v35 = vmul.f32 0.3275911, %v6566_v42  ;;  %v6667_v56 = vmul.f32 0.3275911, %v6569_v63  ;;  %v6670_v45 = vmul.f32 0.3275911, %v6572_v60 }
 0x38a   : > { %v6673_v32 = vmul.f32 0.3275911, %v6575_v9  ;;  %v6676_v38 = vmul.f32 0.3275911, %v6578_v2  ;;  %v6679_v4 = vmul.f32 0.3275911, %v6581_v62 }
 0x38b   : > { %v6682_v47 = vmul.f32 0.3275911, %v6584_v54  ;;  %v6685_v25 = vmul.f32 0.3275911, %v6587_v50  ;;  %v6688_v48 = vmul.f32 0.3275911, %v6590_v52 }
 0x38c   : > { %8682 = vst [vmem:[#allocation69_spill] sm:$0xff] %v6676_v38  ;;  %8683 = vst [vmem:[#allocation70_spill] sm:$0xff] %v6679_v4  ;;  %v6691_v3 = vmul.f32 0.3275911, %v6593_v59  ;;  %3670 = vrot.lane.b32.xlu0 %v3252_v29, %s5159_s30  ;;  %v6696_v46 = vmul.f32 0.3275911, %v6599_v17 }
 0x38d   : > { %8684 = vst [vmem:[#allocation71_spill] sm:$0xff] %v6682_v47  ;;  %8685 = vst [vmem:[#allocation72_spill] sm:$0xff] %v6685_v25  ;;  %v2205_v38 = vadd.f32 1.0, %v6606_v1  ;;  %v2621_v47 = vmul.f32 %v2589_v41, %v6509_v40  ;;  %v2654_v9 = vmul.f32 1.442695, %v2620_v37  ;;  %v6731_v25 = vadd.f32 1.0, %v6609_v26 }
 0x38e   : > { %8686 = vst [vmem:[#allocation73_spill] sm:$0xff] %v6688_v48  ;;  %8687 = vst [vmem:[#allocation74_spill] sm:$0xff] %v6691_v3  ;;  %v6734_v48 = vadd.f32 1.0, %v6612_v55  ;;  %v6737_v22 = vadd.f32 1.0, %v6615_v20  ;;  %v6740_v11 = vadd.f32 1.0, %v6620_v49  ;;  %v6746_v37 = vadd.f32 1.0, %v6626_v43 }
 0x38f   : > { %8688 = vst [vmem:[#allocation75_spill] sm:$0xff] %v6696_v46  ;;  %v2204_v46 = vadd.f32 1.0, %v6603_v19  ;;  %v6743_v19 = vadd.f32 1.0, %v6623_v57  ;;  %v2656_v1 = vmul.f32 1.442695, %v2621_v47  ;;  %v6749_v41 = vadd.f32 1.0, %v6629_v61 }
 0x390   : > { %v6755_v26 = vadd.f32 1.0, %v6635_v24  ;;  %v6758_v20 = vadd.f32 1.0, %v6638_v21  ;;  %v6761_v40 = vadd.f32 1.0, %v6641_v13  ;;  %v6764_v47 = vadd.f32 1.0, %v6644_v18 }
 0x391   : > { %5018 = vrcp.f32 %v2204_v46  ;;  %v6752_v46 = vadd.f32 1.0, %v6632_v0  ;;  %v6767_v55 = vadd.f32 1.0, %v6647_v14  ;;  %v6773_v0 = vadd.f32 1.0, %v6653_v6 }
 0x392   : > { %5020 = vrcp.f32 %v2205_v38  ;;  %v6776_v24 = vadd.f32 1.0, %v6658_v27  ;;  %v6779_v21 = vadd.f32 1.0, %v6661_v34  ;;  %v6782_v13 = vadd.f32 1.0, %v6664_v35 }
 0x393   : > { %5022 = vpow2.f32 %v2654_v9  ;;  %v6770_v9 = vadd.f32 1.0, %v6650_v10  ;;  %v6785_v18 = vadd.f32 1.0, %v6667_v56  ;;  %v6788_v14 = vadd.f32 1.0, %v6670_v45  ;;  %v8692_v6 = vld [vmem:[#allocation69_spill] sm:$0xff] }
 0x394   : > { %5024 = vpow2.f32 %v2656_v1  ;;  %v6791_v10 = vadd.f32 1.0, %v6673_v32  ;;  %v6794_v49 = vadd.f32 1.0, %v8692_v6  ;;  %v8694_v57 = vmov %v6679_v4  ;;  %v8696_v61 = vld [vmem:[#allocation71_spill] sm:$0xff]  ;;  %v8698_v35 = vld [vmem:[#allocation72_spill] sm:$0xff] }
 0x395   : > { %8689 = vst [vmem:[#allocation76_spill] sm:$0xff] %v6785_v18  ;;  %8690 = vst [vmem:[#allocation77_spill] sm:$0xff] %v6788_v14  ;;  %v6797_v43 = vadd.f32 1.0, %v8694_v57  ;;  %v6800_v27 = vadd.f32 1.0, %v8696_v61  ;;  %v6803_v34 = vadd.f32 1.0, %v8698_v35  ;;  %v8700_v56 = vld [vmem:[#allocation73_spill] sm:$0xff]  ;;  %v8702_v45 = vmov %v6691_v3 }
 0x396   : > { %8691 = vst [vmem:[#allocation78_spill] sm:$0xff] %v6791_v10  ;;  %8693 = vst [vmem:[#allocation69_spill] sm:$0xff] %v6794_v49  ;;  %v6806_v38 = vadd.f32 1.0, %v8700_v56  ;;  %v6809_v1 = vadd.f32 1.0, %v8702_v45  ;;  %v8704_v32 = vld [vmem:[#allocation75_spill] sm:$0xff]  ;;  %v8706_v6 = vsub.f32 0.0, %v6512_v36  ;;  %5026 = vrcp.f32 %v6731_v25 }
 0x397   : > { %8695 = vst [vmem:[#allocation70_spill] sm:$0xff] %v6797_v43  ;;  %8697 = vst [vmem:[#allocation71_spill] sm:$0xff] %v6800_v27  ;;  %v6812_v29 = vadd.f32 1.0, %v8704_v32  ;;  %v8707_v61 = vsub.f32 0.0, %v6516_v51  ;;  %v8708_v35 = vsub.f32 0.0, %v6519_v31  ;;  %v8709_v56 = vsub.f32 0.0, %v6522_v12 }
 0x398   : > { %8699 = vst [vmem:[#allocation72_spill] sm:$0xff] %v6803_v34  ;;  %8701 = vst [vmem:[#allocation73_spill] sm:$0xff] %v6806_v38  ;;  %v2622_v57 = vmul.f32 %v8706_v6, %v6512_v36  ;;  %v8710_v32 = vsub.f32 0.0, %v6526_v44  ;;  %v8712_v6 = vsub.f32 0.0, %v6532_v33  ;;  %v8723_v27 = vsub.f32 0.0, %v6566_v42  ;;  %v8726_v49 = vld [vmem:[#allocation67_spill] sm:$0xff] }
 0x399   : > { %8703 = vst [vmem:[#allocation74_spill] sm:$0xff] %v6809_v1  ;;  %8705 = vst [vmem:[#allocation75_spill] sm:$0xff] %v6812_v29  ;;  %v2623_v3 = vmul.f32 %v8707_v61, %v6516_v51  ;;  %v2624_v4 = vmul.f32 %v8708_v35, %v6519_v31  ;;  %v2625_v45 = vmul.f32 %v8709_v56, %v6522_v12  ;;  %v8711_v1 = vsub.f32 0.0, %v6529_v7 }
 0x39a   : > { %v2626_v29 = vmul.f32 %v8710_v32, %v6526_v44  ;;  %v2628_v51 = vmul.f32 %v8712_v6, %v6532_v33  ;;  %v8713_v61 = vsub.f32 0.0, %v6536_v28  ;;  %v8714_v35 = vsub.f32 0.0, %v6539_v16 }
 0x39b   : > { %v2627_v36 = vmul.f32 %v8711_v1, %v6529_v7  ;;  %v6841_v56 = vpop.eup %5018  ;;  %v8715_v44 = vsub.f32 0.0, %v6542_v53  ;;  %v8716_v7 = vsub.f32 0.0, %v6545_v8  ;;  %v8717_v33 = vsub.f32 0.0, %v6548_v58 }
 0x39c   : > { %v2629_v31 = vmul.f32 %v8713_v61, %v6536_v28  ;;  %v2630_v12 = vmul.f32 %v8714_v35, %v6539_v16  ;;  %v8718_v28 = vsub.f32 0.0, %v6551_v30  ;;  %v6855_v38 = vpop.eup %5020  ;;  %v2300_v16 = vmul.f32 1.0614054, %v6841_v56 }
 0x39d   : > { %v2631_v32 = vmul.f32 %v8715_v44, %v6542_v53  ;;  %v2632_v1 = vmul.f32 %v8716_v7, %v6545_v8  ;;  %v2633_v6 = vmul.f32 %v8717_v33, %v6548_v58  ;;  %v8719_v35 = vsub.f32 0.0, %v6554_v23  ;;  %v6867_v33 = vpop.eup %5022 }
 0x39e   : > { %v2634_v61 = vmul.f32 %v8718_v28, %v6551_v30  ;;  %v8720_v44 = vsub.f32 0.0, %v6557_v15  ;;  %v8721_v7 = vsub.f32 0.0, %v6560_v39  ;;  %v2301_v30 = vmul.f32 1.0614054, %v6855_v38 }
 0x39f   : > { %v2635_v53 = vmul.f32 %v8719_v35, %v6554_v23  ;;  %v8722_v28 = vsub.f32 0.0, %v6563_v5  ;;  %v2639_v23 = vmul.f32 %v8723_v27, %v6566_v42  ;;  %v8724_v35 = vsub.f32 0.0, %v6569_v63 }
 0x3a0   : > { %v2636_v8 = vmul.f32 %v8720_v44, %v6557_v15  ;;  %v2637_v58 = vmul.f32 %v8721_v7, %v6560_v39  ;;  %v6879_v44 = vpop.eup %5024  ;;  %v2332_v43 = vadd.f32 -1.4531521, %v2300_v16  ;;  %v8725_v39 = vsub.f32 0.0, %v6572_v60 }
 0x3a1   : > { %v2638_v34 = vmul.f32 %v8722_v28, %v6563_v5  ;;  %v2640_v15 = vmul.f32 %v8724_v35, %v6569_v63  ;;  %v8727_v10 = vsub.f32 0.0, %v8726_v49  ;;  %v8728_v5 = vsub.f32 0.0, %v6578_v2 }
 0x3a2   : > { %v2641_v7 = vmul.f32 %v8725_v39, %v6572_v60  ;;  %v2333_v42 = vadd.f32 -1.4531521, %v2301_v30  ;;  %v8729_v27 = vsub.f32 0.0, %v6581_v62  ;;  %v8730_v16 = vsub.f32 0.0, %v6584_v54 }
 0x3a3   : > { %v2642_v14 = vmul.f32 %v8727_v10, %v8726_v49  ;;  %v2643_v28 = vmul.f32 %v8728_v5, %v6578_v2  ;;  %v8731_v60 = vsub.f32 0.0, %v6587_v50  ;;  %v2364_v18 = vmul.f32 %v6841_v56, %v2332_v43 }
 0x3a4   : > { %v2644_v63 = vmul.f32 %v8729_v27, %v6581_v62  ;;  %v2645_v35 = vmul.f32 %v8730_v16, %v6584_v54  ;;  %v8732_v10 = vsub.f32 0.0, %v6590_v52  ;;  %v8733_v2 = vsub.f32 0.0, %v6593_v59 }
 0x3a5   : > { %v2646_v39 = vmul.f32 %v8731_v60, %v6587_v50  ;;  %v8734_v62 = vsub.f32 0.0, %v6599_v17  ;;  %v2365_v54 = vmul.f32 %v6855_v38, %v2333_v42  ;;  %v6911_v27 = vmul.f32 1.442695, %v2622_v57 }
 0x3a6   : > { %v2647_v49 = vmul.f32 %v8732_v10, %v6590_v52  ;;  %v2648_v30 = vmul.f32 %v8733_v2, %v6593_v59  ;;  %v6913_v50 = vmul.f32 1.442695, %v2623_v3  ;;  %v2396_v43 = vadd.f32 1.4214138, %v2364_v18 }
 0x3a7   : > { %v2649_v5 = vmul.f32 %v8734_v62, %v6599_v17  ;;  %5028 = vrcp.f32 %v6734_v48  ;;  %v6916_v52 = vmul.f32 1.442695, %v2624_v4  ;;  %v6918_v16 = vmul.f32 1.442695, %v2625_v45 }
 0x3a8   : > { %v2397_v59 = vadd.f32 1.4214138, %v2365_v54  ;;  %5030 = vrcp.f32 %v6737_v22  ;;  %v6921_v60 = vmul.f32 1.442695, %v2626_v29  ;;  %v6923_v17 = vmul.f32 1.442695, %v2627_v36 }
 0x3a9   : > { %v2428_v25 = vmul.f32 %v6841_v56, %v2396_v43  ;;  %5032 = vrcp.f32 %v6740_v11  ;;  %v6927_v3 = vmul.f32 1.442695, %v2628_v51  ;;  %v6929_v18 = vmul.f32 1.442695, %v2629_v31 }
 0x3aa   : > { %v2429_v4 = vmul.f32 %v6855_v38, %v2397_v59  ;;  %5034 = vrcp.f32 %v6743_v19  ;;  %v6933_v48 = vmul.f32 1.442695, %v2630_v12  ;;  %v6935_v57 = vmul.f32 1.442695, %v2631_v32 }
 0x3ab   : > { %v2460_v22 = vadd.f32 -0.28449672, %v2428_v25  ;;  %5036 = vrcp.f32 %v6746_v37  ;;  %v6938_v29 = vmul.f32 1.442695, %v2632_v1  ;;  %v6940_v45 = vmul.f32 1.442695, %v2633_v6 }
 0x3ac   : > { %v2461_v11 = vadd.f32 -0.28449672, %v2429_v4  ;;  %5038 = vrcp.f32 %v6749_v41  ;;  %v6943_v36 = vmul.f32 1.442695, %v2634_v61  ;;  %v6945_v51 = vmul.f32 1.442695, %v2635_v53 }
 0x3ad   : > { %v2492_v19 = vmul.f32 %v6841_v56, %v2460_v22  ;;  %5040 = vrcp.f32 %v6752_v46  ;;  %v6949_v31 = vmul.f32 1.442695, %v2636_v8  ;;  %v6951_v12 = vmul.f32 1.442695, %v2637_v58  ;;  %v6964_v46 = vpop.eup %5026  ;;  %v8739_v53 = vld [vmem:[#allocation32_spill] sm:$0xff] }
 0x3ae   : > { %v2493_v37 = vmul.f32 %v6855_v38, %v2461_v11  ;;  %5042 = vrcp.f32 %v6755_v26  ;;  %v6955_v32 = vmul.f32 1.442695, %v2638_v34  ;;  %v6957_v1 = vmul.f32 1.442695, %v2639_v23  ;;  %8738 = vst [vmem:[#allocation81_spill] sm:$0xff] %v6964_v46  ;;  %v8743_v23 = vld [vmem:[#allocation33_spill] sm:$0xff] }
 0x3af   : > { %v2524_v41 = vadd.f32 0.2548296, %v2492_v19  ;;  %5044 = vrcp.f32 %v6758_v20  ;;  %v6960_v6 = vmul.f32 1.442695, %v2640_v15  ;;  %v6962_v61 = vmul.f32 1.442695, %v2641_v7 }
 0x3b0   : > { %8735 = vst [vmem:[#allocation67_spill] sm:$0xff] %v6957_v1  ;;  %vm2780_vm2 = vcmp.ge.f32.partialorder %v8739_v53, 0.0  ;;  %v2525_v8 = vadd.f32 0.2548296, %v2493_v37  ;;  %5046 = vrcp.f32 %v6761_v40  ;;  %v6968_v58 = vmul.f32 1.442695, %v2642_v14 }
 0x3b1   : > { %8736 = vst [vmem:[#allocation79_spill] sm:$0xff] %v6960_v6  ;;  %8737 = vst [vmem:[#allocation80_spill] sm:$0xff] %v6962_v61  ;;  %v6970_v26 = vmul.f32 1.442695, %v2643_v28  ;;  %v6972_v34 = vpop.eup %5028  ;;  %vm2781_vm3 = vcmp.ge.f32.partialorder %v8743_v23, 0.0  ;;  %v2556_v20 = vmul.f32 %v6841_v56, %v2524_v41  ;;  %5048 = vrcp.f32 %v6764_v47  ;;  %v8752_v4 = vld [vmem:[#allocation76_spill] sm:$0xff] }
 0x3b2   : > { %8740 = vst [vmem:[#allocation32_spill] sm:$0xff] %v6968_v58  ;;  %8742 = vst [vmem:[#allocation83_spill] sm:$0xff] %v6972_v34  ;;  %v6977_v15 = vmul.f32 1.442695, %v2644_v63  ;;  %v6979_v7 = vmul.f32 1.442695, %v2645_v35  ;;  %v6981_v42 = vpop.eup %5030  ;;  %v2557_v40 = vmul.f32 %v6855_v38, %v2525_v8  ;;  %5050 = vrcp.f32 %v6767_v55 }
 0x3b3   : > { %8741 = vst [vmem:[#allocation82_spill] sm:$0xff] %v6970_v26  ;;  %8746 = vst [vmem:[#allocation85_spill] sm:$0xff] %v6981_v42  ;;  %v6985_v14 = vmul.f32 1.442695, %v2646_v39  ;;  %v6987_v28 = vmul.f32 1.442695, %v2647_v49  ;;  %v6989_v10 = vpop.eup %5032  ;;  %v2716_v56 = vmul.f32 %v6867_v33, %v2556_v20  ;;  %5052 = vrcp.f32 %v6770_v9 }
 0x3b4   : > { %8744 = vst [vmem:[#allocation33_spill] sm:$0xff] %v6977_v15  ;;  %8745 = vst [vmem:[#allocation84_spill] sm:$0xff] %v6979_v7  ;;  %v6993_v47 = vmul.f32 1.442695, %v2648_v30  ;;  %v6995_v63 = vmul.f32 1.442695, %v2649_v5  ;;  %v6997_v35 = vpop.eup %5034  ;;  %v2717_v38 = vmul.f32 %v6879_v44, %v2557_v40  ;;  %5054 = vrcp.f32 %v6773_v0 }
 0x3b5   : > { %8747 = vst [vmem:[#allocation86_spill] sm:$0xff] %v6985_v14  ;;  %8748 = vst [vmem:[#allocation87_spill] sm:$0xff] %v6987_v28  ;;  %v2302_v55 = vmul.f32 1.0614054, %v6964_v46  ;;  %v2303_v39 = vmul.f32 1.0614054, %v6972_v34  ;;  %v7003_v49 = vpop.eup %5036  ;;  %5056 = vrcp.f32 %v6776_v24 }
 0x3b6   : > { %8749 = vst [vmem:[#allocation88_spill] sm:$0xff] %v6989_v10  ;;  %8750 = vst [vmem:[#allocation89_spill] sm:$0xff] %v6993_v47  ;;  %v2748_v2 = vsub.f32 1.0, %v2716_v56  ;;  %v2304_v9 = vmul.f32 1.0614054, %v6981_v42  ;;  %v7008_v30 = vpop.eup %5038  ;;  %v2749_v62 = vsub.f32 1.0, %v2717_v38  ;;  %5058 = vrcp.f32 %v6779_v21 }
 0x3b7   : > { %8751 = vst [vmem:[#allocation90_spill] sm:$0xff] %v6995_v63  ;;  %v2305_v33 = vmul.f32 1.0614054, %v6989_v10  ;;  %v2306_v0 = vmul.f32 1.0614054, %v6997_v35  ;;  %v7013_v5 = vpop.eup %5040  ;;  %5060 = vrcp.f32 %v6782_v13  ;;  %v8753_v37 = vld [vmem:[#allocation77_spill] sm:$0xff] }
 0x3b8   : > { %v2307_v44 = vmul.f32 1.0614054, %v7003_v49  ;;  %v2812_v54 = vsub.f32 0.0, %v2748_v2  ;;  %v2308_v24 = vmul.f32 1.0614054, %v7008_v30  ;;  %v7017_v59 = vpop.eup %5042  ;;  %v2813_v25 = vsub.f32 0.0, %v2749_v62 }
 0x3b9   : > { %v2334_v43 = vadd.f32 -1.4531521, %v2302_v55  ;;  %5062 = vrcp.f32 %v8752_v4  ;;  %v2309_v22 = vmul.f32 1.0614054, %v7013_v5  ;;  %v2335_v21 = vadd.f32 -1.4531521, %v2303_v39  ;;  %v7021_v11 = vpop.eup %5044 }
 0x3ba   : > { %v2844_v19 = vsel %vm2780_vm2, %v2748_v2, %v2812_v54  ;;  %5064 = vrcp.f32 %v8753_v37  ;;  %v2310_v13 = vmul.f32 1.0614054, %v7017_v59  ;;  %v7027_v41 = vadd.f32 -1.4531521, %v2304_v9  ;;  %v7029_v8 = vpop.eup %5046  ;;  %v8754_v56 = vld [vmem:[#allocation78_spill] sm:$0xff]  ;;  %v8755_v39 = vld [vmem:[#allocation69_spill] sm:$0xff] }
 0x3bb   : > { %v2845_v20 = vsel %vm2781_vm3, %v2749_v62, %v2813_v25  ;;  %v2876_v40 = vadd.f32 1.0, %v2844_v19  ;;  %5066 = vrcp.f32 %v8754_v56  ;;  %v2311_v38 = vmul.f32 1.0614054, %v7021_v11  ;;  %v7035_v55 = vpop.eup %5048  ;;  %v8756_v4 = vld [vmem:[#allocation8_spill] sm:$0xff]  ;;  %v8757_v63 = vld [vmem:[#allocation70_spill] sm:$0xff]  ;;  %v8758_v19 = vld [vmem:[#allocation9_spill] sm:$0xff] }
 0x3bc   : > { %v2877_v53 = vadd.f32 1.0, %v2845_v20  ;;  %5068 = vrcp.f32 %v8755_v39  ;;  %v2312_v2 = vmul.f32 1.0614054, %v7029_v8  ;;  %v2337_v54 = vadd.f32 -1.4531521, %v2305_v33  ;;  %v7039_v9 = vpop.eup %5050  ;;  %v8759_v20 = vld [vmem:[#allocation71_spill] sm:$0xff] }
 0x3bd   : > { %v2908_v37 = vmul.f32 %v2876_v40, %v8756_v4  ;;  %5070 = vrcp.f32 %v8757_v63  ;;  %v2313_v23 = vmul.f32 1.0614054, %v7035_v55  ;;  %v7044_v62 = vadd.f32 -1.4531521, %v2306_v0  ;;  %v7046_v25 = vpop.eup %5052  ;;  %v8761_v40 = vld [vmem:[#allocation72_spill] sm:$0xff] }
 0x3be   : > { %v2909_v56 = vmul.f32 %v2877_v53, %v8758_v19  ;;  %5072 = vrcp.f32 %v8759_v20  ;;  %v2314_v39 = vmul.f32 1.0614054, %v7039_v9  ;;  %v7051_v47 = vadd.f32 -1.4531521, %v2307_v44  ;;  %v7053_v33 = vpop.eup %5054  ;;  %v8763_v53 = vld [vmem:[#allocation73_spill] sm:$0xff] }
 0x3bf   : > { %8760 = vst [vmem:[#allocation76_spill] sm:$0xff] %v7053_v33  ;;  %2996 = vst.msk [vmem:[#allocation4 + $0x31] sm:$0xff] %vm8600_vm12, %v2908_v37  ;;  %5074 = vrcp.f32 %v8761_v40  ;;  %v2315_v63 = vmul.f32 1.0614054, %v7046_v25  ;;  %v7058_v0 = vadd.f32 -1.4531521, %v2308_v24  ;;  %v7062_v28 = vpop.eup %5056 }
 0x3c0   : > { %v7060_v4 = vadd.f32 -1.4531521, %v2309_v22  ;;  %8762 = vst [vmem:[#allocation77_spill] sm:$0xff] %v7062_v28  ;;  %2997 = vst.msk [vmem:[#allocation4 + $0x39] sm:$0xff] %vm8600_vm12, %v2909_v56  ;;  %5076 = vrcp.f32 %v8763_v53  ;;  %v2316_v44 = vmul.f32 1.0614054, %v7053_v33  ;;  %v7071_v37 = vpop.eup %5058 }
 0x3c1   : > { %v7067_v19 = vadd.f32 -1.4531521, %v2310_v13  ;;  %v7069_v20 = vadd.f32 -1.4531521, %v2311_v38  ;;  %8764 = vst [vmem:[#allocation78_spill] sm:$0xff] %v7071_v37  ;;  %v8765_v40 = vld [vmem:[#allocation74_spill] sm:$0xff]  ;;  %v7079_v7 = vpop.eup %5060 }
 0x3c2   : > { %5078 = vrcp.f32 %v8765_v40  ;;  %v2317_v24 = vmul.f32 1.0614054, %v7062_v28  ;;  %v7075_v22 = vadd.f32 -1.4531521, %v2312_v2  ;;  %v7077_v14 = vadd.f32 -1.4531521, %v2313_v23 }
 0x3c3   : > { %8766 = vst [vmem:[#allocation69_spill] sm:$0xff] %v7079_v7  ;;  %v8767_v56 = vld [vmem:[#allocation75_spill] sm:$0xff]  ;;  %v2318_v53 = vmul.f32 1.0614054, %v7071_v37  ;;  %v7083_v13 = vadd.f32 -1.4531521, %v2314_v39  ;;  %v7087_v15 = vpop.eup %5062 }
 0x3c4   : > { %5080 = vrcp.f32 %v8767_v56  ;;  %v7085_v38 = vadd.f32 -1.4531521, %v2315_v63  ;;  %8768 = vst [vmem:[#allocation8_spill] sm:$0xff] %v7087_v15  ;;  %v2319_v40 = vmul.f32 1.0614054, %v7079_v7  ;;  %v7095_v26 = vpop.eup %5064  ;;  %v7102_v63 = vmul.f32 %v6964_v46, %v2334_v43 }
 0x3c5   : > { %5082 = vpow2.f32 %v6911_v27  ;;  %v7091_v2 = vadd.f32 -1.4531521, %v2316_v44  ;;  %v7093_v23 = vadd.f32 -1.4531521, %v2317_v24  ;;  %8769 = vst [vmem:[#allocation70_spill] sm:$0xff] %v7095_v26  ;;  %v7104_v58 = vpop.eup %5066  ;;  %v7111_v44 = vmul.f32 %v6972_v34, %v2335_v21 }
 0x3c6   : > { %v2320_v56 = vmul.f32 1.0614054, %v7087_v15  ;;  %5084 = vpow2.f32 %v6913_v50  ;;  %v7099_v39 = vadd.f32 -1.4531521, %v2318_v53  ;;  %8770 = vst [vmem:[#allocation9_spill] sm:$0xff] %v7102_v63  ;;  %8771 = vst [vmem:[#allocation71_spill] sm:$0xff] %v7104_v58  ;;  %v7113_v24 = vpop.eup %5068  ;;  %v7121_v46 = vmul.f32 %v6981_v42, %v7027_v41 }
 0x3c7   : > { %v2321_v61 = vmul.f32 1.0614054, %v7095_v26  ;;  %5086 = vpow2.f32 %v6916_v52  ;;  %v7108_v27 = vadd.f32 -1.4531521, %v2319_v40  ;;  %8772 = vst [vmem:[#allocation72_spill] sm:$0xff] %v7111_v44  ;;  %8773 = vst [vmem:[#allocation73_spill] sm:$0xff] %v7113_v24  ;;  %v7123_v52 = vpop.eup %5070  ;;  %v7130_v44 = vmul.f32 %v6989_v10, %v2337_v54 }
 0x3c8   : > { %v3350_v6 = vld [vmem:[#allocation4 + $0x30] sm:$0xff]  ;;  %v2322_v53 = vmul.f32 1.0614054, %v7104_v58  ;;  %5088 = vpow2.f32 %v6918_v16  ;;  %v7117_v43 = vadd.f32 -1.4531521, %v2320_v56  ;;  %8774 = vst [vmem:[#allocation74_spill] sm:$0xff] %v7121_v46  ;;  %v7132_v16 = vpop.eup %5072 }
 0x3c9   : > { %v3479_v50 = vld [vmem:[#allocation4 + $0x31] sm:$0xff]  ;;  %8775 = vst [vmem:[#allocation75_spill] sm:$0xff] %v7123_v52  ;;  %v3480_v63 = vld [vmem:[#allocation4 + $0x39] sm:$0xff]  ;;  %v2323_v21 = vmul.f32 1.0614054, %v7113_v24  ;;  %5090 = vpow2.f32 %v6921_v60  ;;  %8776 = vst [vmem:[#allocation91_spill] sm:$0xff] %v7132_v16  ;;  %v7138_v58 = vpop.eup %5074 }
 0x3ca   : > { %v3351_v40 = vld [vmem:[#allocation4 + $0x38] sm:$0xff]  ;;  %v7127_v34 = vadd.f32 -1.4531521, %v2321_v61  ;;  %v7134_v1 = vpack.c.bf16 %v3480_v63, %v3479_v50  ;;  %v2324_v41 = vmul.f32 1.0614054, %v7123_v52  ;;  %5092 = vpow2.f32 %v6923_v17  ;;  %8778 = vst [vmem:[#allocation93_spill] sm:$0xff] %v7138_v58  ;;  %v7142_v10 = vpop.eup %5076 }
 0x3cb   : > { %v3381_v56 = vpack.c.bf16 %v3351_v40, %v3350_v6  ;;  %v3608_v42 = vld [vmem:[#allocation4 + $0x32] sm:$0xff]  ;;  %v3609_v46 = vld [vmem:[#allocation4 + $0x3a] sm:$0xff]  ;;  %v2325_v60 = vmul.f32 1.0614054, %v7132_v16  ;;  %5094 = vpow2.f32 %v6927_v3  ;;  %v2354_v61 = vadd.f32 -1.4531521, %v2322_v53 }
 0x3cc   : > { %8777 = vst [vmem:[#allocation92_spill] sm:$0xff] %v7134_v1  ;;  %v2355_v54 = vadd.f32 -1.4531521, %v2323_v21  ;;  %8779 = vst [vmem:[#allocation94_spill] sm:$0xff] %v7142_v10  ;;  %v2326_v6 = vmul.f32 1.0614054, %v7138_v58  ;;  %5096 = vpow2.f32 %v6929_v18  ;;  %v7148_v63 = vpack.c.bf16 %v3609_v46, %v3608_v42  ;;  %v7150_v50 = vpop.eup %5078 }
 0x3cd   : > { %3414 = vrot.lane.b32.xlu1 %v3381_v56, %s5154_s14  ;;  %3800 = vrot.lane.b32.xlu0 %v3381_v56, %s5157_s21  ;;  %v2356_v17 = vadd.f32 -1.4531521, %v2324_v41  ;;  %8781 = vst [vmem:[#allocation96_spill] sm:$0xff] %v7150_v50  ;;  %v2327_v40 = vmul.f32 1.0614054, %v7142_v10  ;;  %5098 = vpow2.f32 %v6933_v48  ;;  %v2370_v53 = vmul.f32 %v6997_v35, %v7044_v62 }
 0x3ce   : > { %8780 = vst [vmem:[#allocation95_spill] sm:$0xff] %v7148_v63  ;;  %v2357_v3 = vadd.f32 -1.4531521, %v2325_v60  ;;  %v7156_v21 = vpop.eup %5080  ;;  %v2328_v56 = vmul.f32 1.0614054, %v7150_v50  ;;  %5100 = vpow2.f32 %v6935_v57  ;;  %v2371_v46 = vmul.f32 %v7003_v49, %v7051_v47 }
 0x3cf   : > { %8782 = vst [vmem:[#allocation97_spill] sm:$0xff] %v7156_v21  ;;  %v2358_v18 = vadd.f32 -1.4531521, %v2326_v6  ;;  %v7162_v42 = vpop.eup %5082  ;;  %v2329_v41 = vmul.f32 1.0614054, %v7156_v21  ;;  %5102 = vpow2.f32 %v6938_v29  ;;  %v2372_v62 = vmul.f32 %v7008_v30, %v7058_v0 }
 0x3d0   : > { %8783 = vst [vmem:[#allocation98_spill] sm:$0xff] %v7162_v42  ;;  %v2359_v48 = vadd.f32 -1.4531521, %v2327_v40  ;;  %v7168_v60 = vpop.eup %5084  ;;  %5104 = vpow2.f32 %v6940_v45  ;;  %v2360_v57 = vadd.f32 -1.4531521, %v2328_v56  ;;  %v2373_v47 = vmul.f32 %v7013_v5, %v7060_v4 }
 0x3d1   : > { %8784 = vst [vmem:[#allocation99_spill] sm:$0xff] %v7168_v60  ;;  %3543 = vrot.lane.b32.xlu1 %v7134_v1, %s5156_s20  ;;  %3929 = vrot.lane.b32.xlu0 %v7134_v1, %s5158_s22  ;;  %v2374_v29 = vmul.f32 %v7017_v59, %v7067_v19  ;;  %v7179_v6 = vpop.eup %5086  ;;  %5106 = vpow2.f32 %v6943_v36  ;;  %v2361_v0 = vadd.f32 -1.4531521, %v2329_v41  ;;  %v2375_v40 = vmul.f32 %v7021_v11, %v7069_v20  ;;  %v8799_v1 = vld [vmem:[#allocation74_spill] sm:$0xff] }
 0x3d2   : > { %8785 = vst [vmem:[#allocation100_spill] sm:$0xff] %v7179_v6  ;;  %v2376_v45 = vmul.f32 %v7029_v8, %v7075_v22  ;;  %v7186_v60 = vpop.eup %5088  ;;  %5108 = vpow2.f32 %v6945_v51  ;;  %v2377_v4 = vmul.f32 %v7035_v55, %v7077_v14  ;;  %v2378_v19 = vmul.f32 %v7039_v9, %v7083_v13 }
 0x3d3   : > { %8786 = vst [vmem:[#allocation101_spill] sm:$0xff] %v7186_v60  ;;  %v2379_v36 = vmul.f32 %v7046_v25, %v7085_v38  ;;  %v7195_v56 = vpop.eup %5090  ;;  %5110 = vpow2.f32 %v6949_v31  ;;  %v2380_v20 = vmul.f32 %v7053_v33, %v7091_v2  ;;  %v2381_v22 = vmul.f32 %v7062_v28, %v7093_v23 }
 0x3d4   : > { %8787 = vst [vmem:[#allocation102_spill] sm:$0xff] %v7195_v56  ;;  %v2382_v51 = vmul.f32 %v7071_v37, %v7099_v39  ;;  %v7204_v14 = vpop.eup %5092  ;;  %5112 = vpow2.f32 %v6951_v12  ;;  %v2383_v13 = vmul.f32 %v7079_v7, %v7108_v27  ;;  %v2384_v31 = vmul.f32 %v7087_v15, %v7117_v43  ;;  %v8790_v12 = vld [vmem:[#allocation71_spill] sm:$0xff] }
 0x3d5   : > { %8788 = vst [vmem:[#allocation103_spill] sm:$0xff] %v7204_v14  ;;  %3672 = vrot.lane.b32.xlu1 %v7148_v63, %s5159_s30  ;;  %v2385_v38 = vmul.f32 %v7095_v26, %v7127_v34  ;;  %4058 = vrot.lane.b32.xlu0 %v7148_v63, %s5160_s9  ;;  %v7217_v2 = vpop.eup %5094  ;;  %5114 = vpow2.f32 %v6955_v32  ;;  %v2386_v23 = vmul.f32 %v8790_v12, %v2354_v61  ;;  %v8792_v43 = vld [vmem:[#allocation67_spill] sm:$0xff]  ;;  %v2404_v42 = vadd.f32 1.4214138, %v2372_v62 }
 0x3d6   : > { %8789 = vst [vmem:[#allocation104_spill] sm:$0xff] %v7217_v2  ;;  %v2387_v39 = vmul.f32 %v7113_v24, %v2355_v54  ;;  %v2388_v27 = vmul.f32 %v7123_v52, %v2356_v17  ;;  %v7223_v41 = vpop.eup %5096  ;;  %5116 = vpow2.f32 %v8792_v43  ;;  %v2389_v34 = vmul.f32 %v7132_v16, %v2357_v3  ;;  %v8794_v2 = vld [vmem:[#allocation79_spill] sm:$0xff]  ;;  %v8795_v54 = vld [vmem:[#allocation9_spill] sm:$0xff]  ;;  %v8798_v43 = vld [vmem:[#allocation72_spill] sm:$0xff] }
 0x3d7   : > { %8791 = vst [vmem:[#allocation105_spill] sm:$0xff] %v7223_v41  ;;  %v2390_v14 = vmul.f32 %v7138_v58, %v2358_v18  ;;  %v2391_v56 = vmul.f32 %v7142_v10, %v2359_v48  ;;  %v7229_v60 = vpop.eup %5098  ;;  %5118 = vpow2.f32 %v8794_v2  ;;  %v2392_v32 = vmul.f32 %v7150_v50, %v2360_v57  ;;  %v8797_v41 = vld [vmem:[#allocation80_spill] sm:$0xff]  ;;  %v8819_v58 = vld [vmem:[#allocation85_spill] sm:$0xff] }
 0x3d8   : > { %8793 = vst [vmem:[#allocation67_spill] sm:$0xff] %v7229_v60  ;;  %v2393_v61 = vmul.f32 %v7156_v21, %v2361_v0  ;;  %v2398_v17 = vadd.f32 1.4214138, %v8795_v54  ;;  %v7235_v6 = vpop.eup %5100  ;;  %5120 = vpow2.f32 %v8797_v41  ;;  %v2399_v3 = vadd.f32 1.4214138, %v8798_v43  ;;  %v8801_v60 = vld [vmem:[#allocation32_spill] sm:$0xff] }
 0x3d9   : > { %8796 = vst [vmem:[#allocation79_spill] sm:$0xff] %v7235_v6  ;;  %v2400_v18 = vadd.f32 1.4214138, %v8799_v1  ;;  %v2401_v48 = vadd.f32 1.4214138, %v7130_v44  ;;  %v7241_v63 = vpop.eup %5102  ;;  %5122 = vpow2.f32 %v8801_v60  ;;  %v8803_v54 = vld [vmem:[#allocation82_spill] sm:$0xff] }
 0x3da   : > { %8800 = vst [vmem:[#allocation9_spill] sm:$0xff] %v7241_v63  ;;  %v2402_v2 = vadd.f32 1.4214138, %v2370_v53  ;;  %v2403_v57 = vadd.f32 1.4214138, %v2371_v46  ;;  %v7244_v0 = vpop.eup %5104  ;;  %5124 = vpow2.f32 %v8803_v54  ;;  %v8805_v43 = vld [vmem:[#allocation33_spill] sm:$0xff] }
 0x3db   : > { %8802 = vst [vmem:[#allocation80_spill] sm:$0xff] %v7244_v0  ;;  %v2405_v6 = vadd.f32 1.4214138, %v2373_v47  ;;  %v2406_v21 = vadd.f32 1.4214138, %v2374_v29  ;;  %v7247_v50 = vpop.eup %5106  ;;  %5126 = vpow2.f32 %v8805_v43  ;;  %v8807_v60 = vld [vmem:[#allocation84_spill] sm:$0xff] }
 0x3dc   : > { %v2407_v41 = vadd.f32 1.4214138, %v2375_v40  ;;  %8804 = vst [vmem:[#allocation72_spill] sm:$0xff] %v7247_v50  ;;  %v2408_v1 = vadd.f32 1.4214138, %v2376_v45  ;;  %v7250_v63 = vpop.eup %5108  ;;  %5128 = vpow2.f32 %v8807_v60  ;;  %v8809_v54 = vld [vmem:[#allocation86_spill] sm:$0xff] }
 0x3dd   : > { %v2409_v44 = vadd.f32 1.4214138, %v2377_v4  ;;  %v2410_v10 = vadd.f32 1.4214138, %v2378_v19  ;;  %8806 = vst [vmem:[#allocation74_spill] sm:$0xff] %v7250_v63  ;;  %v7253_v0 = vpop.eup %5110  ;;  %5130 = vpow2.f32 %v8809_v54  ;;  %v8811_v43 = vld [vmem:[#allocation87_spill] sm:$0xff] }
 0x3de   : > { %v2411_v53 = vadd.f32 1.4214138, %v2379_v36  ;;  %v2412_v46 = vadd.f32 1.4214138, %v2380_v20  ;;  %v2413_v62 = vadd.f32 1.4214138, %v2381_v22  ;;  %v7256_v50 = vpop.eup %5112  ;;  %5132 = vpow2.f32 %v8811_v43 }
 0x3df   : > { %8808 = vst [vmem:[#allocation32_spill] sm:$0xff] %v7253_v0  ;;  %v2414_v47 = vadd.f32 1.4214138, %v2382_v51  ;;  %v2415_v29 = vadd.f32 1.4214138, %v2383_v13  ;;  %8810 = vst [vmem:[#allocation82_spill] sm:$0xff] %v7256_v50  ;;  %v7259_v63 = vpop.eup %5114 }
 0x3e0   : > { %v2416_v40 = vadd.f32 1.4214138, %v2384_v31  ;;  %v2417_v45 = vadd.f32 1.4214138, %v2385_v38  ;;  %v2418_v4 = vadd.f32 1.4214138, %v2386_v23  ;;  %v7262_v0 = vpop.eup %5116 }
 0x3e1   : > { %v2419_v19 = vadd.f32 1.4214138, %v2387_v39  ;;  %8812 = vst [vmem:[#allocation33_spill] sm:$0xff] %v7259_v63  ;;  %v8813_v60 = vld [vmem:[#allocation89_spill] sm:$0xff]  ;;  %v2420_v36 = vadd.f32 1.4214138, %v2388_v27  ;;  %v7265_v50 = vpop.eup %5118  ;;  %v2432_v63 = vmul.f32 %v8819_v58, %v2400_v18  ;;  %v2439_v18 = vmul.f32 %v7021_v11, %v2407_v41 }
 0x3e2   : > { %5134 = vpow2.f32 %v8813_v60  ;;  %v2421_v20 = vadd.f32 1.4214138, %v2389_v34  ;;  %v2422_v22 = vadd.f32 1.4214138, %v2390_v14  ;;  %8814 = vst [vmem:[#allocation84_spill] sm:$0xff] %v7262_v0  ;;  %v8815_v54 = vld [vmem:[#allocation90_spill] sm:$0xff]  ;;  %v7271_v27 = vpop.eup %5120  ;;  %v2434_v14 = vmul.f32 %v6997_v35, %v2402_v2 }
 0x3e3   : > { %5136 = vpow2.f32 %v8815_v54  ;;  %v2423_v51 = vadd.f32 1.4214138, %v2391_v56  ;;  %v2424_v13 = vadd.f32 1.4214138, %v2392_v32  ;;  %v2425_v31 = vadd.f32 1.4214138, %v2393_v61  ;;  %v7277_v61 = vpop.eup %5122 }
 0x3e4   : > { %8816 = vst [vmem:[#allocation86_spill] sm:$0xff] %v7265_v50  ;;  %v8817_v43 = vld [vmem:[#allocation81_spill] sm:$0xff]  ;;  %v8818_v23 = vld [vmem:[#allocation83_spill] sm:$0xff]  ;;  %v8820_v16 = vld [vmem:[#allocation88_spill] sm:$0xff]  ;;  %v2435_v34 = vmul.f32 %v7003_v49, %v2403_v57  ;;  %v2436_v56 = vmul.f32 %v7008_v30, %v2404_v42  ;;  %v2437_v32 = vmul.f32 %v7013_v5, %v2405_v6  ;;  %v7281_v50 = vpop.eup %5124  ;;  %v2441_v2 = vmul.f32 %v7035_v55, %v2409_v44 }
 0x3e5   : > { %v2430_v38 = vmul.f32 %v8817_v43, %v2398_v17  ;;  %v2431_v39 = vmul.f32 %v8818_v23, %v2399_v3  ;;  %v2433_v60 = vmul.f32 %v8820_v16, %v2401_v48  ;;  %8821 = vst [vmem:[#allocation87_spill] sm:$0xff] %v7271_v27  ;;  %8822 = vst [vmem:[#allocation89_spill] sm:$0xff] %v7277_v61  ;;  %v7287_v27 = vpop.eup %5126  ;;  %v3028_v61 = vld [vmem:[#allocation4 + $0x18] sm:$0xff] }
 0x3e6   : > { %v2438_v3 = vmul.f32 %v7017_v59, %v2406_v21  ;;  %8823 = vst [vmem:[#allocation90_spill] sm:$0xff] %v7281_v50  ;;  %v2440_v48 = vmul.f32 %v7029_v8, %v2408_v1  ;;  %v2442_v57 = vmul.f32 %v7039_v9, %v2410_v10  ;;  %v2443_v42 = vmul.f32 %v7046_v25, %v2411_v53 }
 0x3e7   : > { %v2462_v54 = vadd.f32 -0.28449672, %v2430_v38  ;;  %v2463_v17 = vadd.f32 -0.28449672, %v2431_v39  ;;  %8824 = vst [vmem:[#allocation81_spill] sm:$0xff] %v7287_v27  ;;  %v2444_v21 = vmul.f32 %v7053_v33, %v2412_v46  ;;  %v2445_v41 = vmul.f32 %v7062_v28, %v2413_v62  ;;  %v7293_v39 = vpop.eup %5128  ;;  %v3029_v62 = vld [vmem:[#allocation4 + $0x20] sm:$0xff] }
 0x3e8   : > { %8825 = vst [vmem:[#allocation83_spill] sm:$0xff] %v7293_v39  ;;  %v2446_v1 = vmul.f32 %v7071_v37, %v2414_v47  ;;  %v2447_v44 = vmul.f32 %v7079_v7, %v2415_v29  ;;  %v2448_v10 = vmul.f32 %v7087_v15, %v2416_v40  ;;  %v2449_v53 = vmul.f32 %v7095_v26, %v2417_v45  ;;  %v7299_v50 = vpop.eup %5130  ;;  %v8828_v39 = vld [vmem:[#allocation34_spill] sm:$0xff]  ;;  %v8829_v47 = vld [vmem:[#allocation35_spill] sm:$0xff]  ;;  %v8831_v26 = vld [vmem:[#allocation93_spill] sm:$0xff] }
 0x3e9   : > { %v2494_v6 = vmul.f32 %v8817_v43, %v2462_v54  ;;  %v2495_v38 = vmul.f32 %v8818_v23, %v2463_v17  ;;  %8826 = vst [vmem:[#allocation85_spill] sm:$0xff] %v7299_v50  ;;  %v2450_v17 = vmul.f32 %v8790_v12, %v2418_v4  ;;  %v2451_v46 = vmul.f32 %v7113_v24, %v2419_v19  ;;  %v7303_v0 = vpop.eup %5132  ;;  %v8830_v40 = vld [vmem:[#allocation91_spill] sm:$0xff]  ;;  %v8834_v24 = vld [vmem:[#allocation96_spill] sm:$0xff]  ;;  %v8835_v12 = vld [vmem:[#allocation97_spill] sm:$0xff] }
 0x3ea   : > { %8827 = vst [vmem:[#allocation88_spill] sm:$0xff] %v7303_v0  ;;  %vm2782_vm4 = vcmp.ge.f32.partialorder %v8828_v39, 0.0  ;;  %vm2783_vm5 = vcmp.ge.f32.partialorder %v8829_v47, 0.0  ;;  %v2452_v29 = vmul.f32 %v7123_v52, %v2420_v36  ;;  %v2453_v45 = vmul.f32 %v8830_v40, %v2421_v20  ;;  %v8837_v40 = vld [vmem:[#allocation98_spill] sm:$0xff] }
 0x3eb   : > { %v2526_v27 = vadd.f32 0.2548296, %v2494_v6  ;;  %v2527_v54 = vadd.f32 0.2548296, %v2495_v38  ;;  %v2454_v50 = vmul.f32 %v8831_v26, %v2422_v22  ;;  %v8832_v6 = vld [vmem:[#allocation94_spill] sm:$0xff]  ;;  %v2456_v0 = vmul.f32 %v8834_v24, %v2424_v13  ;;  %v8838_v26 = vld [vmem:[#allocation99_spill] sm:$0xff] }
 0x3ec   : > { %v2455_v38 = vmul.f32 %v8832_v6, %v2423_v51  ;;  %v7311_v15 = vpop.eup %5134  ;;  %v2457_v7 = vmul.f32 %v8835_v12, %v2425_v31  ;;  %v2464_v28 = vadd.f32 -0.28449672, %v2432_v63  ;;  %v2465_v36 = vadd.f32 -0.28449672, %v2433_v60 }
 0x3ed   : > { %8833 = vst [vmem:[#allocation34_spill] sm:$0xff] %v7311_v15  ;;  %v2558_v4 = vmul.f32 %v8817_v43, %v2526_v27  ;;  %v2559_v19 = vmul.f32 %v8818_v23, %v2527_v54  ;;  %v7317_v37 = vpop.eup %5136  ;;  %v2466_v52 = vadd.f32 -0.28449672, %v2434_v14  ;;  %v3059_v20 = vpack.c.bf16 %v3029_v62, %v3028_v61 }
 0x3ee   : > { %8836 = vst [vmem:[#allocation35_spill] sm:$0xff] %v7317_v37  ;;  %v2467_v6 = vadd.f32 -0.28449672, %v2435_v34  ;;  %v2468_v15 = vadd.f32 -0.28449672, %v2436_v56  ;;  %v2496_v23 = vmul.f32 %v8819_v58, %v2464_v28  ;;  %v2497_v62 = vmul.f32 %v8820_v16, %v2465_v36 }
 0x3ef   : > { %v2718_v22 = vmul.f32 %v8837_v40, %v2558_v4  ;;  %v2719_v51 = vmul.f32 %v8838_v26, %v2559_v19  ;;  %v2469_v33 = vadd.f32 -0.28449672, %v2437_v32  ;;  %v2470_v43 = vadd.f32 -0.28449672, %v2438_v3  ;;  %3075 = vst.msk [vmem:[#allocation5 + $0x8] sm:$0xff] %vm8600_vm12, %v3059_v20 }
 0x3f0   : > { %v2471_v27 = vadd.f32 -0.28449672, %v2439_v18  ;;  %v2472_v54 = vadd.f32 -0.28449672, %v2440_v48  ;;  %v2473_v63 = vadd.f32 -0.28449672, %v2441_v2  ;;  %v2498_v28 = vmul.f32 %v6997_v35, %v2466_v52 }
 0x3f1   : > { %v2750_v13 = vsub.f32 1.0, %v2718_v22  ;;  %v2751_v31 = vsub.f32 1.0, %v2719_v51  ;;  %v2474_v60 = vadd.f32 -0.28449672, %v2442_v57  ;;  %v2475_v14 = vadd.f32 -0.28449672, %v2443_v42 }
 0x3f2   : > { %v2476_v61 = vadd.f32 -0.28449672, %v2444_v21  ;;  %v2477_v34 = vadd.f32 -0.28449672, %v2445_v41  ;;  %v2478_v56 = vadd.f32 -0.28449672, %v2446_v1  ;;  %v2500_v51 = vmul.f32 %v7008_v30, %v2468_v15 }
 0x3f3   : > { %v2814_v40 = vsub.f32 0.0, %v2750_v13  ;;  %v2815_v26 = vsub.f32 0.0, %v2751_v31  ;;  %v2479_v32 = vadd.f32 -0.28449672, %v2447_v44  ;;  %v2480_v3 = vadd.f32 -0.28449672, %v2448_v10 }
 0x3f4   : > { %v2481_v18 = vadd.f32 -0.28449672, %v2449_v53  ;;  %v2482_v2 = vadd.f32 -0.28449672, %v2450_v17  ;;  %v2483_v57 = vadd.f32 -0.28449672, %v2451_v46  ;;  %v2499_v44 = vmul.f32 %v7003_v49, %v2467_v6 }
 0x3f5   : > { %v2846_v4 = vsel %vm2782_vm4, %v2750_v13, %v2814_v40  ;;  %v2847_v48 = vsel %vm2783_vm5, %v2751_v31, %v2815_v26  ;;  %v2484_v19 = vadd.f32 -0.28449672, %v2452_v29  ;;  %v2485_v36 = vadd.f32 -0.28449672, %v2453_v45  ;;  %v8839_v10 = vld [vmem:[#allocation10_spill] sm:$0xff]  ;;  %v8840_v52 = vld [vmem:[#allocation11_spill] sm:$0xff] }
 0x3f6   : > { %v2878_v42 = vadd.f32 1.0, %v2846_v4  ;;  %v2879_v21 = vadd.f32 1.0, %v2847_v48  ;;  %v2486_v20 = vadd.f32 -0.28449672, %v2454_v50  ;;  %v2487_v41 = vadd.f32 -0.28449672, %v2455_v38 }
 0x3f7   : > { %v2488_v1 = vadd.f32 -0.28449672, %v2456_v0  ;;  %v2489_v39 = vadd.f32 -0.28449672, %v2457_v7  ;;  %v2501_v47 = vmul.f32 %v7013_v5, %v2469_v33  ;;  %v2502_v17 = vmul.f32 %v7017_v59, %v2470_v43  ;;  %v8841_v45 = vld [vmem:[#allocation76_spill] sm:$0xff]  ;;  %v8842_v6 = vld [vmem:[#allocation77_spill] sm:$0xff] }
 0x3f8   : > { %v2910_v53 = vmul.f32 %v2878_v42, %v8839_v10  ;;  %v2911_v22 = vmul.f32 %v2879_v21, %v8840_v52  ;;  %v2503_v46 = vmul.f32 %v7021_v11, %v2471_v27  ;;  %v2504_v29 = vmul.f32 %v7029_v8, %v2472_v54  ;;  %v8843_v38 = vld [vmem:[#allocation78_spill] sm:$0xff]  ;;  %v8844_v13 = vld [vmem:[#allocation69_spill] sm:$0xff]  ;;  %v8845_v31 = vld [vmem:[#allocation8_spill] sm:$0xff] }
 0x3f9   : > { %v2505_v50 = vmul.f32 %v7035_v55, %v2473_v63  ;;  %v2506_v0 = vmul.f32 %v7039_v9, %v2474_v60  ;;  %v2507_v7 = vmul.f32 %v7046_v25, %v2475_v14  ;;  %v2508_v15 = vmul.f32 %v8841_v45, %v2476_v61  ;;  %v8846_v40 = vld [vmem:[#allocation70_spill] sm:$0xff]  ;;  %v8847_v4 = vld [vmem:[#allocation71_spill] sm:$0xff]  ;;  %v8848_v42 = vld [vmem:[#allocation73_spill] sm:$0xff] }
 0x3fa   : > { %2998 = vst.msk [vmem:[#allocation4 + $0x49] sm:$0xff] %vm8600_vm12, %v2910_v53  ;;  %2999 = vst.msk [vmem:[#allocation4 + $0x51] sm:$0xff] %vm8600_vm12, %v2911_v22  ;;  %v2509_v33 = vmul.f32 %v8842_v6, %v2477_v34  ;;  %v2510_v43 = vmul.f32 %v8843_v38, %v2478_v56  ;;  %v2511_v27 = vmul.f32 %v8844_v13, %v2479_v32  ;;  %v8849_v21 = vld [vmem:[#allocation75_spill] sm:$0xff]  ;;  %v3030_v10 = vld [vmem:[#allocation4 + $0x30] sm:$0xff]  ;;  %v2528_v37 = vadd.f32 0.2548296, %v2496_v23 }
 0x3fb   : > { %v2512_v54 = vmul.f32 %v8845_v31, %v2480_v3  ;;  %v2513_v26 = vmul.f32 %v8846_v40, %v2481_v18  ;;  %v2514_v48 = vmul.f32 %v8847_v4, %v2482_v2  ;;  %v2515_v63 = vmul.f32 %v8848_v42, %v2483_v57  ;;  %v3031_v14 = vld [vmem:[#allocation4 + $0x38] sm:$0xff]  ;;  %v8851_v52 = vld [vmem:[#allocation93_spill] sm:$0xff]  ;;  %v8852_v22 = vld [vmem:[#allocation94_spill] sm:$0xff] }
 0x3fc   : > { %v2516_v60 = vmul.f32 %v8849_v21, %v2484_v19  ;;  %v8850_v53 = vld [vmem:[#allocation91_spill] sm:$0xff]  ;;  %v2518_v34 = vmul.f32 %v8851_v52, %v2486_v20  ;;  %v2519_v56 = vmul.f32 %v8852_v22, %v2487_v41  ;;  %v2520_v32 = vmul.f32 %v8834_v24, %v2488_v1 }
 0x3fd   : > { %v2517_v61 = vmul.f32 %v8850_v53, %v2485_v36  ;;  %v2521_v3 = vmul.f32 %v8835_v12, %v2489_v39  ;;  %v2529_v18 = vadd.f32 0.2548296, %v2497_v62  ;;  %v2530_v40 = vadd.f32 0.2548296, %v2498_v28  ;;  %v3157_v62 = vpop.permute.xlu1 %3156 }
 0x3fe   : > { %v2531_v2 = vadd.f32 0.2548296, %v2499_v44  ;;  %v2532_v4 = vadd.f32 0.2548296, %v2500_v51  ;;  %v2533_v57 = vadd.f32 0.2548296, %v2501_v47  ;;  %v3060_v42 = vpack.c.bf16 %v3031_v14, %v3030_v10 }
 0x3ff   : > { %v2534_v19 = vadd.f32 0.2548296, %v2502_v17  ;;  %v2535_v21 = vadd.f32 0.2548296, %v2503_v46  ;;  %v2536_v31 = vadd.f32 0.2548296, %v2504_v29  ;;  %v2560_v36 = vmul.f32 %v8819_v58, %v2528_v37 }
 0x400   : > { %v2537_v41 = vadd.f32 0.2548296, %v2505_v50  ;;  %v2561_v1 = vmul.f32 %v8820_v16, %v2529_v18  ;;  %v2562_v39 = vmul.f32 %v6997_v35, %v2530_v40  ;;  %v2563_v23 = vmul.f32 %v7003_v49, %v2531_v2  ;;  %3076 = vst.msk [vmem:[#allocation5 + $0x10] sm:$0xff] %vm8600_vm12, %v3060_v42  ;;  %v8860_v2 = vld [vmem:[#allocation93_spill] sm:$0xff] }
 0x401   : > { %v3738_v53 = vld [vmem:[#allocation4 + $0x48] sm:$0xff]  ;;  %v3739_v20 = vld [vmem:[#allocation4 + $0x50] sm:$0xff]  ;;  %v2538_v17 = vadd.f32 0.2548296, %v2506_v0  ;;  %v2564_v58 = vmul.f32 %v7008_v30, %v2532_v4  ;;  %v2565_v37 = vmul.f32 %v7013_v5, %v2533_v57  ;;  %3204 = vst.msk [vmem:[#allocation5 + $0x8] sm:$0xff] %vm8599_vm14, %v3157_v62  ;;  %v2566_v42 = vmul.f32 %v7017_v59, %v2534_v19  ;;  %v3286_v10 = vpop.permute.xlu1 %3285 }
 0x402   : > { %v3996_v52 = vld [vmem:[#allocation4 + $0x4a] sm:$0xff]  ;;  %v3769_v28 = vpack.c.bf16 %v3739_v20, %v3738_v53  ;;  %v3997_v44 = vld [vmem:[#allocation4 + $0x52] sm:$0xff]  ;;  %v2539_v35 = vadd.f32 0.2548296, %v2507_v7  ;;  %v2540_v49 = vadd.f32 0.2548296, %v2508_v15  ;;  %v2567_v4 = vmul.f32 %v7021_v11, %v2535_v21 }
 0x403   : > { %v3867_v51 = vld [vmem:[#allocation4 + $0x49] sm:$0xff]  ;;  %v3868_v47 = vld [vmem:[#allocation4 + $0x51] sm:$0xff]  ;;  %v7364_v46 = vpack.c.bf16 %v3997_v44, %v3996_v52  ;;  %v2541_v29 = vadd.f32 0.2548296, %v2509_v33  ;;  %v2542_v50 = vadd.f32 0.2548296, %v2510_v43  ;;  %v2568_v15 = vmul.f32 %v7029_v8, %v2536_v31 }
 0x404   : > { %v7366_v16 = vpack.c.bf16 %v3868_v47, %v3867_v51  ;;  %3802 = vrot.lane.b32.xlu1 %v3769_v28, %s5157_s21  ;;  %v2543_v40 = vadd.f32 0.2548296, %v2511_v27  ;;  %v2544_v30 = vadd.f32 0.2548296, %v2512_v54  ;;  %v2545_v5 = vadd.f32 0.2548296, %v2513_v26 }
 0x405   : > { %4060 = vrot.lane.b32.xlu0 %v7364_v46, %s5160_s9  ;;  %v2546_v0 = vadd.f32 0.2548296, %v2514_v48  ;;  %v2547_v14 = vadd.f32 0.2548296, %v2515_v63  ;;  %v2548_v53 = vadd.f32 0.2548296, %v2516_v60  ;;  %v2569_v59 = vmul.f32 %v7035_v55, %v2537_v41 }
 0x406   : > { %v2549_v7 = vadd.f32 0.2548296, %v2517_v61  ;;  %3333 = vst.msk [vmem:[#allocation5 + $0x8] sm:$0xff] %vm8598_vm15, %v3286_v10  ;;  %v2550_v33 = vadd.f32 0.2548296, %v2518_v34  ;;  %v2570_v26 = vmul.f32 %v7039_v9, %v2538_v17  ;;  %v2571_v11 = vmul.f32 %v7046_v25, %v2539_v35  ;;  %v8853_v63 = vld [vmem:[#allocation95_spill] sm:$0xff] }
 0x407   : > { %v2551_v43 = vadd.f32 0.2548296, %v2519_v56  ;;  %v2552_v27 = vadd.f32 0.2548296, %v2520_v32  ;;  %v2553_v54 = vadd.f32 0.2548296, %v2521_v3  ;;  %v2572_v48 = vmul.f32 %v8841_v45, %v2540_v49 }
 0x408   : > { %3931 = vrot.lane.b32.xlu1 %v7366_v16, %s5158_s22  ;;  %v2573_v8 = vmul.f32 %v8842_v6, %v2541_v29  ;;  %v2574_v31 = vmul.f32 %v8843_v38, %v2542_v50  ;;  %v2575_v21 = vmul.f32 %v8844_v13, %v2543_v40  ;;  %v8854_v55 = vld [vmem:[#allocation8_spill] sm:$0xff]  ;;  %v8855_v61 = vld [vmem:[#allocation70_spill] sm:$0xff]  ;;  %v8856_v34 = vld [vmem:[#allocation71_spill] sm:$0xff]  ;;  %v2582_v57 = vmul.f32 %v8860_v2, %v2550_v33 }
 0x409   : > { %3287 = vrot.lane.b32.xlu0 %v8853_v63, %s5152_s10  ;;  %v2576_v60 = vmul.f32 %v8854_v55, %v2544_v30  ;;  %v2577_v52 = vmul.f32 %v8855_v61, %v2545_v5  ;;  %v2578_v56 = vmul.f32 %v8856_v34, %v2546_v0  ;;  %v8857_v9 = vld [vmem:[#allocation73_spill] sm:$0xff]  ;;  %v8858_v25 = vld [vmem:[#allocation75_spill] sm:$0xff]  ;;  %v2583_v6 = vmul.f32 %v8852_v22, %v2551_v43  ;;  %v8861_v13 = vld [vmem:[#allocation92_spill] sm:$0xff] }
 0x40a   : > { %v2579_v32 = vmul.f32 %v8857_v9, %v2547_v14  ;;  %v2580_v3 = vmul.f32 %v8858_v25, %v2548_v53  ;;  %v8859_v45 = vld [vmem:[#allocation91_spill] sm:$0xff]  ;;  %v2584_v38 = vmul.f32 %v8834_v24, %v2552_v27  ;;  %v2585_v19 = vmul.f32 %v8835_v12, %v2553_v54  ;;  %v8862_v20 = vld [vmem:[#allocation100_spill] sm:$0xff]  ;;  %v8863_v62 = vld [vmem:[#allocation101_spill] sm:$0xff] }
 0x40b   : > { %v2581_v18 = vmul.f32 %v8859_v45, %v2549_v7  ;;  %v7399_v41 = vmul.f32 %v8862_v20, %v2560_v36  ;;  %v7402_v44 = vmul.f32 %v8863_v62, %v2561_v1  ;;  %v8864_v51 = vld [vmem:[#allocation102_spill] sm:$0xff]  ;;  %v8865_v17 = vld [vmem:[#allocation103_spill] sm:$0xff]  ;;  %v8866_v24 = vld [vmem:[#allocation104_spill] sm:$0xff] }
 0x40c   : > { %3158 = vrot.lane.b32.xlu1 %v8861_v13, %s5150_s8  ;;  %v7405_v47 = vmul.f32 %v8864_v51, %v2562_v39  ;;  %v7409_v22 = vmul.f32 %v8865_v17, %v2563_v23  ;;  %v7412_v35 = vmul.f32 %v8866_v24, %v2564_v58  ;;  %v8867_v49 = vld [vmem:[#allocation105_spill] sm:$0xff]  ;;  %v8868_v12 = vld [vmem:[#allocation67_spill] sm:$0xff]  ;;  %v5003_v1 = vld [vmem:[%s8493_s4] sm:$0xff]  }
 0x40d   : > { %3416 = vrot.lane.b32.xlu0 %v3769_v28, %s5154_s14  ;;  %v7415_v29 = vmul.f32 %v8867_v49, %v2565_v37  ;;  %v7418_v36 = vmul.f32 %v8868_v12, %v2566_v42  ;;  %v8869_v39 = vld [vmem:[#allocation79_spill] sm:$0xff]  ;;  %v8870_v28 = vld [vmem:[#allocation9_spill] sm:$0xff]  ;;  %v8871_v23 = vld [vmem:[#allocation80_spill] sm:$0xff]  ;;  %4935 = vmatprep.subr.bf16.mxu1 %v5003_v1  ;;  %v8601_v45 = vsub.f32 1.0, %v7399_v41 }
 0x40e   : > { %v7424_v50 = vmul.f32 %v8869_v39, %v2567_v4  ;;  %v7427_v40 = vmul.f32 %v8870_v28, %v2568_v15  ;;  %v7430_v30 = vmul.f32 %v8871_v23, %v2569_v59  ;;  %v8872_v58 = vld [vmem:[#allocation72_spill] sm:$0xff]  ;;  %v8873_v37 = vld [vmem:[#allocation74_spill] sm:$0xff]  ;;  %v8878_v4 = vld [vmem:[#allocation33_spill] sm:$0xff]  ;;  %4936 = vmatpush3.bf16.msra.mxu1 %v5003_v1  ;;  %v8604_v2 = vsub.f32 1.0, %v7409_v22 }
 0x40f   : > { %v7433_v5 = vmul.f32 %v8872_v58, %v2570_v26  ;;  %v7436_v0 = vmul.f32 %v8873_v37, %v2571_v11  ;;  %v8874_v42 = vld [vmem:[#allocation32_spill] sm:$0xff]  ;;  %v8876_v14 = vld [vmem:[#allocation82_spill] sm:$0xff]  ;;  %v7445_v7 = vmul.f32 %v8878_v4, %v2574_v31  ;;  %v8883_v59 = vld [vmem:[#allocation87_spill] sm:$0xff] }
 0x410   : > { %v7439_v10 = vmul.f32 %v8874_v42, %v2572_v48  ;;  %v7442_v53 = vmul.f32 %v8876_v14, %v2573_v8  ;;  %v8880_v15 = vld [vmem:[#allocation84_spill] sm:$0xff]  ;;  %v8882_v43 = vld [vmem:[#allocation86_spill] sm:$0xff]  ;;  %v7454_v54 = vmul.f32 %v8883_v59, %v2577_v52  ;;  %v8885_v26 = vld [vmem:[#allocation89_spill] sm:$0xff]  ;;  %3160 = vrot.lane.b32.xlu1 %v7366_v16, %s5150_s8  ;;  %v8608_v13 = vsub.f32 1.0, %v7424_v50 }
 0x411   : > { %8879 = vst [vmem:[#allocation98_spill] sm:$0xff] %v7445_v7  ;;  %v7448_v33 = vmul.f32 %v8880_v15, %v2575_v21  ;;  %v7451_v27 = vmul.f32 %v8882_v43, %v2576_v60  ;;  %v7457_v11 = vmul.f32 %v8885_v26, %v2578_v56  ;;  %v8887_v48 = vld [vmem:[#allocation90_spill] sm:$0xff]  ;;  %v8889_v8 = vld [vmem:[#allocation81_spill] sm:$0xff]  ;;  %v8890_v21 = vld [vmem:[#allocation83_spill] sm:$0xff]  ;;  %3545 = vrot.lane.b32.xlu0 %v7366_v16, %s5156_s20  ;;  %v8603_v16 = vsub.f32 1.0, %v7405_v47 }
 0x412   : > { %8875 = vst [vmem:[#allocation96_spill] sm:$0xff] %v7439_v10  ;;  %8877 = vst [vmem:[#allocation97_spill] sm:$0xff] %v7442_v53  ;;  %v7462_v63 = vmul.f32 %v8887_v48, %v2579_v32  ;;  %v7465_v31 = vmul.f32 %v8889_v8, %v2580_v3  ;;  %v7468_v55 = vmul.f32 %v8890_v21, %v2581_v18  ;;  %v8891_v60 = vld [vmem:[#allocation85_spill] sm:$0xff]  ;;  %v5004_v52 = vld [vmem:[%s8493_s4 + $0x8] sm:$0xff]   ;;  %v8602_v18 = vsub.f32 1.0, %v7402_v44 }
 0x413   : > { %8881 = vst [vmem:[#allocation99_spill] sm:$0xff] %v7448_v33  ;;  %8884 = vst [vmem:[#allocation10_spill] sm:$0xff] %v7454_v54  ;;  %v7471_v61 = vmul.f32 %v8891_v60, %v2582_v57  ;;  %v8892_v34 = vld [vmem:[#allocation88_spill] sm:$0xff]  ;;  %v8893_v9 = vld [vmem:[#allocation34_spill] sm:$0xff]  ;;  %v8605_v57 = vsub.f32 1.0, %v7412_v35  ;;  %4937 = vmatprep.subr.bf16.mxu1 %v5004_v52  ;;  %v8610_v20 = vsub.f32 1.0, %v7430_v30 }
 0x414   : > { %8886 = vst [vmem:[#allocation11_spill] sm:$0xff] %v7457_v11  ;;  %8888 = vst [vmem:[#allocation76_spill] sm:$0xff] %v7462_v63  ;;  %v7479_v56 = vmul.f32 %v8892_v34, %v2583_v6  ;;  %v7482_v32 = vmul.f32 %v8893_v9, %v2584_v38  ;;  %v8894_v25 = vld [vmem:[#allocation35_spill] sm:$0xff]  ;;  %v8606_v6 = vsub.f32 1.0, %v7415_v29  ;;  %v8607_v38 = vsub.f32 1.0, %v7418_v36  ;;  %3289 = vrot.lane.b32.xlu1 %v7364_v46, %s5152_s10  ;;  %v5005_v24 = vld [vmem:[%s8493_s4 + $0x10] sm:$0xff]  }
 0x415   : > { %v7485_v3 = vmul.f32 %v8894_v25, %v2585_v19  ;;  %v8609_v19 = vsub.f32 1.0, %v7427_v40  ;;  %v8611_v62 = vsub.f32 1.0, %v7433_v5  ;;  %3674 = vrot.lane.b32.xlu0 %v7364_v46, %s5159_s30  ;;  %v8895_v49 = vld [vmem:[#allocation36_spill] sm:$0xff]  ;;  %4938 = vmatpush3.bf16.msra.mxu1 %v5004_v52  ;;  %v8896_v23 = vld [vmem:[#allocation37_spill] sm:$0xff]  ;;  %v8897_v58 = vld [vmem:[#allocation38_spill] sm:$0xff]  ;;  %v2816_v14 = vsub.f32 0.0, %v8601_v45 }
 0x416   : > { %vm2784_vm6 = vcmp.ge.f32.partialorder %v8895_v49, 0.0  ;;  %vm2785_vm7 = vcmp.ge.f32.partialorder %v8896_v23, 0.0  ;;  %vm2786_vm8 = vcmp.ge.f32.partialorder %v8897_v58, 0.0  ;;  %v8898_v46 = vld [vmem:[#allocation39_spill] sm:$0xff]  ;;  %v8899_v37 = vld [vmem:[#allocation40_spill] sm:$0xff]  ;;  %4939 = vmatprep.subr.bf16.mxu1 %v5005_v24  ;;  %v8900_v43 = vld [vmem:[#allocation41_spill] sm:$0xff] }
 0x417   : > { %vm2787_vm9 = vcmp.ge.f32.partialorder %v8898_v46, 0.0  ;;  %vm2788_vm10 = vcmp.ge.f32.partialorder %v8899_v37, 0.0  ;;  %vm2789_vm11 = vcmp.ge.f32.partialorder %v8900_v43, 0.0  ;;  %v8901_v59 = vld [vmem:[#allocation42_spill] sm:$0xff]  ;;  %v8902_v26 = vld [vmem:[#allocation43_spill] sm:$0xff]  ;;  %v8903_v48 = vld [vmem:[#allocation44_spill] sm:$0xff] }
 0x418   : > { %vm2790_vm13 = vcmp.ge.f32.partialorder %v8901_v59, 0.0  ;;  %vm2791_vm0 = vcmp.ge.f32.partialorder %v8902_v26, 0.0  ;;  %vm2792_vm1 = vcmp.ge.f32.partialorder %v8903_v48, 0.0  ;;  %v8904_v34 = vld [vmem:[#allocation45_spill] sm:$0xff]  ;;  %v8905_v9 = vld [vmem:[#allocation46_spill] sm:$0xff]  ;;  %v8906_v25 = vld [vmem:[#allocation48_spill] sm:$0xff] }
 0x419   : > { %vm2793_vm2 = vcmp.ge.f32.partialorder %v8904_v34, 0.0  ;;  %vm2794_vm3 = vcmp.ge.f32.partialorder %v8905_v9, 0.0  ;;  %vm2795_vm4 = vcmp.ge.f32.partialorder %v8906_v25, 0.0  ;;  %v2817_v21 = vsub.f32 0.0, %v8602_v18  ;;  %v5006_v52 = vld [vmem:[%s8493_s4 + $0x18] sm:$0xff]   ;;  %4940 = vmatpush3.bf16.msra.mxu1 %v5005_v24  ;;  %v8917_v12 = vld [vmem:[#allocation62_spill] sm:$0xff] }
 0x41a   : > { %v2818_v60 = vsub.f32 0.0, %v8603_v16  ;;  %v2819_v45 = vsub.f32 0.0, %v8604_v2  ;;  %v2820_v18 = vsub.f32 0.0, %v8605_v57  ;;  %v2821_v16 = vsub.f32 0.0, %v8606_v6  ;;  %4941 = vmatprep.subr.bf16.mxu1 %v5006_v52  ;;  %v8918_v17 = vld [vmem:[#allocation63_spill] sm:$0xff]  ;;  %v8919_v51 = vld [vmem:[#allocation65_spill] sm:$0xff] }
 0x41b   : > { %v2822_v39 = vsub.f32 0.0, %v8607_v38  ;;  %v2823_v2 = vsub.f32 0.0, %v8608_v13  ;;  %v2824_v57 = vsub.f32 0.0, %v8609_v19  ;;  %v2825_v6 = vsub.f32 0.0, %v8610_v20  ;;  %v8924_v8 = vld [vmem:[#allocation66_spill] sm:$0xff]  ;;  %v8949_v37 = vld [vmem:[#allocation96_spill] sm:$0xff] }
 0x41c   : > { %v2826_v24 = vsub.f32 0.0, %v8611_v62  ;;  %vm2806_vm14 = vcmp.ge.f32.partialorder %v8917_v12, 0.0  ;;  %vm2807_vm12 = vcmp.ge.f32.partialorder %v8918_v17, 0.0  ;;  %vm2808_vm5 = vcmp.ge.f32.partialorder %v8919_v51, 0.0  ;;  %v8953_v43 = vld [vmem:[#allocation97_spill] sm:$0xff]  ;;  %v8955_v59 = vld [vmem:[#allocation51_spill] sm:$0xff] }
 0x41d   : > { %v8920_v13 = vsub.f32 1.0, %v7436_v0  ;;  %v8921_v19 = vsub.f32 1.0, %v7439_v10  ;;  %v8922_v20 = vsub.f32 1.0, %v7442_v53  ;;  %v8923_v62 = vsub.f32 1.0, %v7445_v7  ;;  %4942 = vmatpush3.bf16.msra.mxu1 %v5006_v52  ;;  %v8957_v26 = vld [vmem:[#allocation98_spill] sm:$0xff]  ;;  %v8959_v48 = vld [vmem:[#allocation52_spill] sm:$0xff] }
 0x41e   : > { %vm2809_vm15 = vcmp.ge.f32.partialorder %v8924_v8, 0.0  ;;  %v8925_v12 = vsub.f32 1.0, %v7448_v33  ;;  %v8926_v17 = vsub.f32 1.0, %v7451_v27  ;;  %v8927_v15 = vsub.f32 1.0, %v7454_v54  ;;  %v8963_v34 = vld [vmem:[#allocation54_spill] sm:$0xff] }
 0x41f   : > { %v2827_v1 = vsub.f32 0.0, %v8920_v13  ;;  %v2828_v4 = vsub.f32 0.0, %v8921_v19  ;;  %v2829_v28 = vsub.f32 0.0, %v8922_v20  ;;  %v2830_v42 = vsub.f32 0.0, %v8923_v62 }
 0x420   : > { %v2831_v38 = vsub.f32 0.0, %v8925_v12  ;;  %v2832_v51 = vsub.f32 0.0, %v8926_v17  ;;  %v2833_v13 = vsub.f32 0.0, %v8927_v15  ;;  %v8928_v10 = vsub.f32 1.0, %v7457_v11 }
 0x421   : > { %v8929_v53 = vsub.f32 1.0, %v7462_v63  ;;  %v8930_v7 = vsub.f32 1.0, %v7465_v31  ;;  %v8931_v8 = vsub.f32 1.0, %v7468_v55  ;;  %v8932_v12 = vsub.f32 1.0, %v7471_v61 }
 0x422   : > { %v2834_v19 = vsub.f32 0.0, %v8928_v10  ;;  %v8933_v17 = vsub.f32 1.0, %v7479_v56  ;;  %v8934_v15 = vsub.f32 1.0, %v7482_v32  ;;  %v8935_v10 = vsub.f32 1.0, %v7485_v3 }
 0x423   : > { %v2835_v20 = vsub.f32 0.0, %v8929_v53  ;;  %v2836_v62 = vsub.f32 0.0, %v8930_v7  ;;  %v2837_v25 = vsub.f32 0.0, %v8931_v8  ;;  %v2838_v33 = vsub.f32 0.0, %v8932_v12 }
 0x424   : > { %v2839_v54 = vsub.f32 0.0, %v8933_v17  ;;  %v2840_v11 = vsub.f32 0.0, %v8934_v15  ;;  %v2841_v63 = vsub.f32 0.0, %v8935_v10  ;;  %v8936_v53 = vsub.f32 1.0, %v7399_v41 }
 0x425   : > { %v8937_v8 = vsub.f32 1.0, %v7402_v44  ;;  %v8938_v52 = vsub.f32 1.0, %v7405_v47  ;;  %v8939_v15 = vsub.f32 1.0, %v7409_v22  ;;  %v8940_v41 = vsub.f32 1.0, %v7412_v35 }
 0x426   : > { %v2848_v7 = vsel %vm2784_vm6, %v8936_v53, %v2816_v14  ;;  %v8941_v44 = vsub.f32 1.0, %v7415_v29  ;;  %v8942_v47 = vsub.f32 1.0, %v7418_v36  ;;  %v8943_v22 = vsub.f32 1.0, %v7424_v50  ;;  %v8951_v14 = vld [vmem:[#allocation49_spill] sm:$0xff]  ;;  %v8968_v53 = vld [vmem:[#allocation10_spill] sm:$0xff] }
 0x427   : > { %v2849_v12 = vsel %vm2785_vm7, %v8937_v8, %v2817_v21  ;;  %v2850_v17 = vsel %vm2786_vm8, %v8938_v52, %v2818_v60  ;;  %v2851_v10 = vsel %vm2787_vm9, %v8939_v15, %v2819_v45  ;;  %v2852_v49 = vsel %vm2788_vm10, %v8940_v41, %v2820_v18  ;;  %v8961_v60 = vld [vmem:[#allocation99_spill] sm:$0xff]  ;;  %v8970_v52 = vld [vmem:[#allocation57_spill] sm:$0xff] }
 0x428   : > { %v2853_v23 = vsel %vm2789_vm11, %v8941_v44, %v2821_v16  ;;  %v2854_v58 = vsel %vm2790_vm13, %v8942_v47, %v2822_v39  ;;  %v2855_v45 = vsel %vm2791_vm0, %v8943_v22, %v2823_v2  ;;  %v8944_v35 = vsub.f32 1.0, %v7427_v40  ;;  %v8972_v15 = vld [vmem:[#allocation11_spill] sm:$0xff]  ;;  %v8974_v44 = vld [vmem:[#allocation58_spill] sm:$0xff]  ;;  %v8976_v47 = vld [vmem:[#allocation76_spill] sm:$0xff] }
 0x429   : > { %v8945_v29 = vsub.f32 1.0, %v7430_v30  ;;  %v8946_v36 = vsub.f32 1.0, %v7433_v5  ;;  %v8947_v50 = vsub.f32 1.0, %v7436_v0  ;;  %v8950_v40 = vsub.f32 1.0, %v8949_v37 }
 0x42a   : > { %v2856_v18 = vsel %vm2792_vm1, %v8944_v35, %v2824_v57  ;;  %vm8952_vm6 = vcmp.ge.f32.partialorder %v8951_v14, 0.0  ;;  %v8954_v30 = vsub.f32 1.0, %v8953_v43  ;;  %vm8956_vm7 = vcmp.ge.f32.partialorder %v8955_v59, 0.0  ;;  %v8978_v35 = vld [vmem:[#allocation59_spill] sm:$0xff]  ;;  %v9013_v14 = vld [vmem:[#allocation26_spill] sm:$0xff] }
 0x42b   : > { %v2857_v16 = vsel %vm2793_vm2, %v8945_v29, %v2825_v6  ;;  %v2858_v39 = vsel %vm2794_vm3, %v8946_v36, %v2826_v24  ;;  %v2859_v2 = vsel %vm2795_vm4, %v8947_v50, %v2827_v1  ;;  %v2860_v57 = vsel %vm8952_vm6, %v8950_v40, %v2828_v4  ;;  %v8966_v24 = vld [vmem:[#allocation55_spill] sm:$0xff]  ;;  %v8981_v29 = vld [vmem:[#allocation60_spill] sm:$0xff]  ;;  %v8984_v50 = vld [vmem:[#allocation61_spill] sm:$0xff] }
 0x42c   : > { %v2861_v6 = vsel %vm8956_vm7, %v8954_v30, %v2829_v28  ;;  %v8958_v5 = vsub.f32 1.0, %v8957_v26  ;;  %vm8960_vm8 = vcmp.ge.f32.partialorder %v8959_v48, 0.0  ;;  %v8962_v0 = vsub.f32 1.0, %v8961_v60  ;;  %v7705_v60 = vpop.permute.xlu0 %3412  ;;  %v9020_v30 = vld [vmem:[#allocation29_spill] sm:$0xff] }
 0x42d   : > { %vm8964_vm9 = vcmp.ge.f32.partialorder %v8963_v34, 0.0  ;;  %v8965_v9 = vsub.f32 1.0, %v7451_v27  ;;  %vm8967_vm10 = vcmp.ge.f32.partialorder %v8966_v24, 0.0  ;;  %v8969_v8 = vsub.f32 1.0, %v8968_v53 }
 0x42e   : > { %v2862_v21 = vsel %vm8960_vm8, %v8958_v5, %v2830_v42  ;;  %v2863_v1 = vsel %vm8964_vm9, %v8962_v0, %v2831_v38  ;;  %vm8971_vm11 = vcmp.ge.f32.partialorder %v8970_v52, 0.0  ;;  %v8973_v41 = vsub.f32 1.0, %v8972_v15  ;;  %v8994_v15 = vld [vmem:[#allocation12_spill] sm:$0xff] }
 0x42f   : > { %v2864_v4 = vsel %vm8967_vm10, %v8965_v9, %v2832_v51  ;;  %v2865_v28 = vsel %vm8971_vm11, %v8969_v8, %v2833_v13  ;;  %vm8975_vm13 = vcmp.ge.f32.partialorder %v8974_v44, 0.0  ;;  %v8977_v22 = vsub.f32 1.0, %v8976_v47  ;;  %v9001_v44 = vld [vmem:[#allocation18_spill] sm:$0xff]  ;;  %v9002_v47 = vld [vmem:[#allocation19_spill] sm:$0xff] }
 0x430   : > { %v2866_v42 = vsel %vm8975_vm13, %v8973_v41, %v2834_v19  ;;  %vm8979_vm0 = vcmp.ge.f32.partialorder %v8978_v35, 0.0  ;;  %v8980_v27 = vsub.f32 1.0, %v7465_v31  ;;  %vm8982_vm1 = vcmp.ge.f32.partialorder %v8981_v29, 0.0  ;;  %v9003_v35 = vld [vmem:[#allocation20_spill] sm:$0xff] }
 0x431   : > { %v2867_v38 = vsel %vm8979_vm0, %v8977_v22, %v2835_v20  ;;  %v8983_v36 = vsub.f32 1.0, %v7468_v55  ;;  %vm8985_vm2 = vcmp.ge.f32.partialorder %v8984_v50, 0.0  ;;  %v8986_v46 = vsub.f32 1.0, %v7471_v61  ;;  %v9007_v50 = vld [vmem:[#allocation23_spill] sm:$0xff] }
 0x432   : > { %v2868_v51 = vsel %vm8982_vm1, %v8980_v27, %v2836_v62  ;;  %v8988_v40 = vsub.f32 1.0, %v7479_v56  ;;  %v8990_v31 = vsub.f32 1.0, %v7482_v32  ;;  %v8992_v55 = vsub.f32 1.0, %v7485_v3  ;;  %v9005_v27 = vld [vmem:[#allocation21_spill] sm:$0xff] }
 0x433   : > { %v2869_v13 = vsel %vm8985_vm2, %v8983_v36, %v2837_v25  ;;  %v2870_v19 = vsel %vm2806_vm14, %v8986_v46, %v2838_v33  ;;  %v2880_v59 = vadd.f32 1.0, %v2848_v7  ;;  %v2881_v61 = vadd.f32 1.0, %v2849_v12  ;;  %v9008_v46 = vld [vmem:[#allocation24_spill] sm:$0xff] }
 0x434   : > { %v2871_v20 = vsel %vm2807_vm12, %v8988_v40, %v2839_v54  ;;  %v2872_v62 = vsel %vm2808_vm5, %v8990_v31, %v2840_v11  ;;  %v2873_v25 = vsel %vm2809_vm15, %v8992_v55, %v2841_v63  ;;  %v2882_v26 = vadd.f32 1.0, %v2850_v17  ;;  %v9014_v31 = vld [vmem:[#allocation27_spill] sm:$0xff] }
 0x435   : > { %v2883_v5 = vadd.f32 1.0, %v2851_v10  ;;  %v2884_v33 = vadd.f32 1.0, %v2852_v49  ;;  %v2885_v48 = vadd.f32 1.0, %v2853_v23  ;;  %v2886_v56 = vadd.f32 1.0, %v2854_v58 }
 0x436   : > { %v2887_v54 = vadd.f32 1.0, %v2855_v45  ;;  %v2888_v0 = vadd.f32 1.0, %v2856_v18  ;;  %v2889_v32 = vadd.f32 1.0, %v2857_v16  ;;  %v2890_v34 = vadd.f32 1.0, %v2858_v39  ;;  %v8995_v18 = vld [vmem:[#allocation13_spill] sm:$0xff]  ;;  %v8996_v39 = vld [vmem:[#allocation14_spill] sm:$0xff] }
 0x437   : > { %v2891_v9 = vadd.f32 1.0, %v2859_v2  ;;  %v2892_v11 = vadd.f32 1.0, %v2860_v57  ;;  %v2893_v24 = vadd.f32 1.0, %v2861_v6  ;;  %v2894_v3 = vadd.f32 1.0, %v2862_v21  ;;  %v8997_v57 = vld [vmem:[#allocation15_spill] sm:$0xff]  ;;  %v8998_v21 = vld [vmem:[#allocation16_spill] sm:$0xff] }
 0x438   : > { %v2895_v53 = vadd.f32 1.0, %v2863_v1  ;;  %v2896_v8 = vadd.f32 1.0, %v2864_v4  ;;  %v2897_v63 = vadd.f32 1.0, %v2865_v28  ;;  %v2898_v7 = vadd.f32 1.0, %v2866_v42  ;;  %v3542_v4 = vpop.permute.xlu0 %3541  ;;  %v9000_v28 = vld [vmem:[#allocation17_spill] sm:$0xff] }
 0x439   : > { %v2899_v12 = vadd.f32 1.0, %v2867_v38  ;;  %v2900_v17 = vadd.f32 1.0, %v2868_v51  ;;  %v2901_v10 = vadd.f32 1.0, %v2869_v13  ;;  %v2902_v49 = vadd.f32 1.0, %v2870_v19  ;;  %v9006_v51 = vld [vmem:[#allocation22_spill] sm:$0xff]  ;;  %v9012_v19 = vld [vmem:[#allocation25_spill] sm:$0xff] }
 0x43a   : > { %v2903_v23 = vadd.f32 1.0, %v2871_v20  ;;  %v2904_v58 = vadd.f32 1.0, %v2872_v62  ;;  %v2905_v52 = vadd.f32 1.0, %v2873_v25  ;;  %v2912_v45 = vmul.f32 %v2880_v59, %v8994_v15  ;;  %v9015_v62 = vld [vmem:[#allocation28_spill] sm:$0xff]  ;;  %v9021_v59 = vld [vmem:[#allocation30_spill] sm:$0xff] }
 0x43b   : > { %v2913_v16 = vmul.f32 %v2881_v61, %v8995_v18  ;;  %v2914_v2 = vmul.f32 %v2882_v26, %v8996_v39  ;;  %v2915_v6 = vmul.f32 %v2883_v5, %v8997_v57  ;;  %v2916_v1 = vmul.f32 %v2884_v33, %v8998_v21  ;;  %v9022_v26 = vld [vmem:[#allocation31_spill] sm:$0xff] }
 0x43c   : > { %vm8999_vm12 = vcmask 64512   ;;  %v2917_v41 = vmul.f32 %v2885_v48, %v9000_v28  ;;  %v2918_v42 = vmul.f32 %v2886_v56, %v9001_v44  ;;  %v2919_v22 = vmul.f32 %v2887_v54, %v9002_v47  ;;  %v9023_v33 = vld [vmem:[#allocation47_spill] sm:$0xff]  ;;  %v9028_v56 = vld [vmem:[#allocation50_spill] sm:$0xff] }
 0x43d   : > { %3000 = vst.msk [vmem:[#allocation4 + $0x61] sm:$0xff] %vm8999_vm12, %v2912_v45  ;;  %v2920_v38 = vmul.f32 %v2888_v0, %v9003_v35  ;;  %vm9004_vm14 = vmmov %vm8999_vm12  ;;  %v2921_v29 = vmul.f32 %v2889_v32, %v9005_v27  ;;  %v2922_v36 = vmul.f32 %v2890_v34, %v9006_v51  ;;  %v2923_v13 = vmul.f32 %v2891_v9, %v9007_v50  ;;  %v9029_v0 = vld [vmem:[#allocation53_spill] sm:$0xff]  ;;  %v9030_v34 = vld [vmem:[#allocation56_spill] sm:$0xff] }
 0x43e   : > { %3001 = vst.msk [vmem:[#allocation4 + $0x69] sm:$0xff] %vm9004_vm14, %v2913_v16  ;;  %v2924_v37 = vmul.f32 %v2892_v11, %v9008_v46  ;;  %vm9009_vm15 = vmmov %vm8999_vm12  ;;  %v2925_v40 = vmul.f32 %v2893_v24, %v9012_v19  ;;  %v2926_v20 = vmul.f32 %v2894_v3, %v9013_v14  ;;  %v2927_v43 = vmul.f32 %v2895_v53, %v9014_v31  ;;  %v9031_v11 = vld [vmem:[#allocation64_spill] sm:$0xff]  ;;  %v5007_v3 = vld [vmem:[%s8493_s4 + $0x20] ss:$0 sps:$4 sm:$0xff]  }
 0x43f   : > { %3002 = vst.msk [vmem:[#allocation4 + $0x79] sm:$0xff] %vm9009_vm15, %v2914_v2  ;;  %vm9010_vm3 = vmmov %vm8999_vm12  ;;  %v2928_v55 = vmul.f32 %v2896_v8, %v9015_v62  ;;  %v2929_v25 = vmul.f32 %v2897_v63, %v9020_v30  ;;  %v2930_v61 = vmul.f32 %v2898_v7, %v9021_v59  ;;  %v2931_v5 = vmul.f32 %v2899_v12, %v9022_v26  ;;  %v3032_v53 = vld [vmem:[#allocation4 + $0x48] sm:$0xff]  ;;  %v3033_v8 = vld [vmem:[#allocation4 + $0x50] sm:$0xff]  ;;  %v3671_v12 = vpop.permute.xlu0 %3670  ;;  %v3415_v50 = vpop.permute.xlu1 %3414 }
 0x440   : > { %3003 = vst.msk [vmem:[#allocation4 + $0x81] sm:$0xff] %vm9010_vm3, %v2915_v6  ;;  %vm9011_vm4 = vmmov %vm9010_vm3  ;;  %v2932_v48 = vmul.f32 %v2900_v17, %v9023_v33  ;;  %v2933_v54 = vmul.f32 %v2901_v10, %v9028_v56  ;;  %v2934_v32 = vmul.f32 %v2902_v49, %v9029_v0  ;;  %v2935_v9 = vmul.f32 %v2903_v23, %v9030_v34  ;;  %v9036_v63 = vld [vmem:[#allocation68_spill] sm:$0xff] }
 0x441   : > { %3004 = vst.msk [vmem:[#allocation4 + $0x91] sm:$0xff] %vm9011_vm4, %v2916_v1  ;;  %vm9016_vm5 = vmmov %vm9010_vm3  ;;  %v2936_v24 = vmul.f32 %v2904_v58, %v9031_v11  ;;  %v2937_v7 = vmul.f32 %v2905_v52, %v9036_v63  ;;  %v3061_v10 = vpack.c.bf16 %v3033_v8, %v3032_v53 }
 0x442   : > { %3005 = vst.msk [vmem:[#allocation4 + $0x99] sm:$0xff] %vm9016_vm5, %v2917_v41  ;;  %vm9017_vm6 = vmmov %vm9010_vm3  ;;  %vm3460_vm5 = vcmask 261312  }
 0x443   : > { %3006 = vst.msk [vmem:[#allocation4 + $0xa9] sm:$0xff] %vm9017_vm6, %v2918_v42  ;;  %vm9018_vm7 = vmmov %vm9010_vm3  ;;  %vm3589_vm6 = vcmask 326912  }
 0x444   : > { %3007 = vst.msk [vmem:[#allocation4 + $0xb1] sm:$0xff] %vm9018_vm7, %v2919_v22  ;;  %vm9019_vm8 = vmmov %vm9010_vm3  ;;  %vm3718_vm7 = vcmask 392512   ;;  %v3354_v17 = vld [vmem:[#allocation4 + $0x60] sm:$0xff] }
 0x445   : > { %3008 = vst.msk [vmem:[#allocation4 + $0xc1] sm:$0xff] %vm9019_vm8, %v2920_v38  ;;  %vm9024_vm9 = vmmov %vm9010_vm3  ;;  %v3355_v49 = vld [vmem:[#allocation4 + $0x68] sm:$0xff] }
 0x446   : > { %3009 = vst.msk [vmem:[#allocation4 + $0xc9] sm:$0xff] %vm9024_vm9, %v2921_v29  ;;  %vm9025_vm10 = vmmov %vm9010_vm3  ;;  %v3383_v58 = vpack.c.bf16 %v3355_v49, %v3354_v17  ;;  %v3742_v52 = vld [vmem:[#allocation4 + $0x78] sm:$0xff]  ;;  %v3483_v45 = vld [vmem:[#allocation4 + $0x61] sm:$0xff] }
 0x447   : > { %3010 = vst.msk [vmem:[#allocation4 + $0xd9] sm:$0xff] %vm9025_vm10, %v2922_v36  ;;  %vm9026_vm11 = vmmov %vm9010_vm3  ;;  %v3743_v15 = vld [vmem:[#allocation4 + $0x80] sm:$0xff] }
 0x448   : > { %3011 = vst.msk [vmem:[#allocation4 + $0xe1] sm:$0xff] %vm9026_vm11, %v2923_v13  ;;  %vm9027_vm13 = vmmov %vm9010_vm3  ;;  %v7767_v18 = vpack.c.bf16 %v3743_v15, %v3742_v52  ;;  %3418 = vrot.lane.b32.xlu1 %v3383_v58, %s5154_s14  ;;  %3804 = vrot.lane.b32.xlu0 %v3383_v58, %s5157_s21  ;;  %v3358_v16 = vld [vmem:[#allocation4 + $0x90] sm:$0xff]  ;;  %v3612_v1 = vld [vmem:[#allocation4 + $0x62] sm:$0xff]  ;;  %v3801_v13 = vpop.permute.xlu0 %3800 }
 0x449   : > { %3012 = vst.msk [vmem:[#allocation4 + $0xf1] sm:$0xff] %vm9027_vm13, %v2924_v37  ;;  %vm9032_vm0 = vmmov %vm9010_vm3  ;;  %v3359_v39 = vld [vmem:[#allocation4 + $0x98] sm:$0xff]  ;;  %v4001_v27 = vld [vmem:[#allocation4 + $0x82] sm:$0xff] }
 0x44a   : > { %3013 = vst.msk [vmem:[#allocation4 + $0xf9] sm:$0xff] %vm9032_vm0, %v2925_v40  ;;  %vm9033_vm1 = vmmov %vm9032_vm0  ;;  %v7772_v2 = vpack.c.bf16 %v3359_v39, %v3358_v16  ;;  %v3746_v6 = vld [vmem:[#allocation4 + $0xa8] sm:$0xff]  ;;  %v4000_v38 = vld [vmem:[#allocation4 + $0x7a] sm:$0xff] }
 0x44b   : > { %3014 = vst.msk [vmem:[#allocation4 + $0x109] sm:$0xff] %vm9033_vm1, %v2926_v20  ;;  %vm9034_vm2 = vmmov %vm9032_vm0  ;;  %v3747_v21 = vld [vmem:[#allocation4 + $0xb0] sm:$0xff]  ;;  %v4029_v37 = vpack.c.bf16 %v4001_v27, %v4000_v38  ;;  %v3871_v14 = vld [vmem:[#allocation4 + $0x79] sm:$0xff] }
 0x44c   : > { %3015 = vst.msk [vmem:[#allocation4 + $0x111] sm:$0xff] %vm9034_vm2, %v2927_v43  ;;  %vm9035_vm12 = vmmov %vm9032_vm0  ;;  %v7778_v28 = vpack.c.bf16 %v3747_v21, %v3746_v6  ;;  %v3362_v41 = vld [vmem:[#allocation4 + $0xc0] sm:$0xff]  ;;  %v3930_v30 = vpop.permute.xlu0 %3929  ;;  %v3616_v8 = vld [vmem:[#allocation4 + $0x92] sm:$0xff] }
 0x44d   : > { %3016 = vst.msk [vmem:[#allocation4 + $0x121] sm:$0xff] %vm9035_vm12, %v2928_v55  ;;  %vm9037_vm14 = vmmov %vm9032_vm0  ;;  %v3363_v44 = vld [vmem:[#allocation4 + $0xc8] sm:$0xff]  ;;  %v3544_v55 = vpop.permute.xlu1 %3543  ;;  %v3617_v63 = vld [vmem:[#allocation4 + $0x9a] sm:$0xff] }
 0x44e   : > { %3017 = vst.msk [vmem:[#allocation4 + $0x129] sm:$0xff] %vm9037_vm14, %v2929_v25  ;;  %vm9038_vm15 = vmmov %vm9032_vm0  ;;  %v7786_v42 = vpack.c.bf16 %v3363_v44, %v3362_v41  ;;  %v3750_v22 = vld [vmem:[#allocation4 + $0xd8] sm:$0xff]  ;;  %v3872_v20 = vld [vmem:[#allocation4 + $0x81] sm:$0xff] }
 0x44f   : > { %3018 = vst.msk [vmem:[#allocation4 + $0x139] sm:$0xff] %vm9038_vm15, %v2930_v61  ;;  %vm9039_vm3 = vmmov %vm9032_vm0  ;;  %v3751_v35 = vld [vmem:[#allocation4 + $0xe0] sm:$0xff]  ;;  %v3900_v59 = vpack.c.bf16 %v3872_v20, %v3871_v14  ;;  %v4005_v17 = vld [vmem:[#allocation4 + $0xb2] sm:$0xff] }
 0x450   : > { %3019 = vst.msk [vmem:[#allocation4 + $0x141] sm:$0xff] %vm9039_vm3, %v2931_v5  ;;  %vm9040_vm4 = vmmov %vm9032_vm0  ;;  %v7790_v29 = vpack.c.bf16 %v3751_v35, %v3750_v22  ;;  %vm3848_vm3 = vcmask 458112   ;;  %v3366_v51 = vld [vmem:[#allocation4 + $0xf0] sm:$0xff]  ;;  %v3879_v22 = vld [vmem:[#allocation4 + $0xd9] sm:$0xff] }
 0x451   : > { %3020 = vst.msk [vmem:[#allocation4 + $0x151] sm:$0xff] %vm9040_vm4, %v2932_v48  ;;  %vm9041_vm8 = vmmov %vm9032_vm0  ;;  %v3367_v36 = vld [vmem:[#allocation4 + $0xf8] sm:$0xff]  ;;  %v3673_v56 = vpop.permute.xlu1 %3672  ;;  %v3875_v49 = vld [vmem:[#allocation4 + $0xa9] sm:$0xff] }
 0x452   : > { %3021 = vst.msk [vmem:[#allocation4 + $0x159] sm:$0xff] %vm9041_vm8, %v2933_v54  ;;  %vm9042_vm9 = vmmov %vm9032_vm0  ;;  %v7796_v46 = vpack.c.bf16 %v3367_v36, %v3366_v51  ;;  %v3754_v19 = vld [vmem:[#allocation4 + $0x108] sm:$0xff]  ;;  %v4059_v54 = vpop.permute.xlu0 %4058  ;;  %v3495_v36 = vld [vmem:[#allocation4 + $0xf1] sm:$0xff] }
 0x453   : > { %3022 = vst.msk [vmem:[#allocation4 + $0x169] sm:$0xff] %vm9042_vm9, %v2934_v32  ;;  %vm9043_vm10 = vmmov %vm9032_vm0  ;;  %v3755_v40 = vld [vmem:[#allocation4 + $0x110] sm:$0xff]  ;;  %vm3977_vm9 = vcmask 523712   ;;  %v3880_v35 = vld [vmem:[#allocation4 + $0xe1] sm:$0xff] }
 0x454   : > { %3023 = vst.msk [vmem:[#allocation4 + $0x171] sm:$0xff] %vm9043_vm10, %v2935_v9  ;;  %vm9044_vm11 = vmmov %vm9032_vm0  ;;  %v7802_v31 = vpack.c.bf16 %v3755_v40, %v3754_v19  ;;  %v3370_v43 = vld [vmem:[#allocation4 + $0x120] sm:$0xff]  ;;  %v3904_v27 = vpack.c.bf16 %v3880_v35, %v3879_v22  ;;  %v4012_v40 = vld [vmem:[#allocation4 + $0x10a] sm:$0xff] }
 0x455   : > { %3024 = vst.msk [vmem:[#allocation4 + $0x181] sm:$0xff] %vm9044_vm11, %v2936_v24  ;;  %vm9045_vm13 = vmmov %vm9032_vm0  ;;  %vm4224_vm0 = vcmask 1043456   ;;  %v3371_v62 = vld [vmem:[#allocation4 + $0x128] sm:$0xff]  ;;  %v3487_v24 = vld [vmem:[#allocation4 + $0x91] sm:$0xff] }
 0x456   : > { %3461 = vst.msk [vmem:[#allocation5] sm:$0xff] %vm3460_vm5, %v7705_v60  ;;  %4978 = vmatprep.subr.msk.bf16.mxu1 %vm4224_vm0, %v5007_v3  ;;  %v4226_v23 = vsel %vm4224_vm0, %v5007_v3, 0  ;;  %v3484_v60 = vld [vmem:[#allocation4 + $0x69] sm:$0xff]  ;;  %vm9046_vm2 = vmmov %vm9033_vm1  ;;  %v7809_v25 = vpack.c.bf16 %v3371_v62, %v3370_v43  ;;  %v3758_v61 = vld [vmem:[#allocation4 + $0x138] sm:$0xff] }
 0x457   : > { %3025 = vst.msk [vmem:[#allocation4 + $0x189] sm:$0xff] %vm9045_vm13, %v2937_v7  ;;  %4944 = vmatpush3.bf16.msra.mxu1 %v4226_v23  ;;  %vm9047_vm12 = vmmov %vm9033_vm1  ;;  %v7776_v57 = vpack.c.bf16 %v3484_v60, %v3483_v45  ;;  %v3759_v26 = vld [vmem:[#allocation4 + $0x140] sm:$0xff]  ;;  %vm4106_vm13 = vcmask 589312   ;;  %v3643_v7 = vpack.c.bf16 %v3617_v63, %v3616_v8  ;;  %v3876_v23 = vld [vmem:[#allocation4 + $0xb1] sm:$0xff] }
 0x458   : > { %3590 = vst.msk [vmem:[#allocation5] sm:$0xff] %vm3589_vm6, %v3542_v4  ;;  %v3613_v4 = vld [vmem:[#allocation4 + $0x6a] sm:$0xff]  ;;  %vm9048_vm14 = vmmov %vm9033_vm1  ;;  %v7815_v5 = vpack.c.bf16 %v3759_v26, %v3758_v61  ;;  %v3488_v3 = vld [vmem:[#allocation4 + $0x99] sm:$0xff] }
 0x459   : > { %3719 = vst.msk [vmem:[#allocation5] sm:$0xff] %vm3718_vm7, %v3671_v12  ;;  %3547 = vrot.lane.b32.xlu1 %v7776_v57, %s5156_s20  ;;  %3933 = vrot.lane.b32.xlu0 %v7776_v57, %s5158_s22  ;;  %vm9049_vm15 = vmmov %vm9033_vm1  ;;  %v3641_v47 = vpack.c.bf16 %v3613_v4, %v3612_v1  ;;  %v3374_v33 = vld [vmem:[#allocation4 + $0x150] sm:$0xff]  ;;  %v3375_v48 = vld [vmem:[#allocation4 + $0x158] sm:$0xff]  ;;  %v3514_v53 = vpack.c.bf16 %v3488_v3, %v3487_v24 }
 0x45a   : > { %3077 = vst.msk [vmem:[#allocation5 + $0x18] sm:$0xff] %vm9033_vm1, %v3061_v10  ;;  %vm9050_vm4 = vmmov %vm9033_vm1  ;;  %v7821_v0 = vpack.c.bf16 %v3375_v48, %v3374_v33  ;;  %v3762_v32 = vld [vmem:[#allocation4 + $0x168] sm:$0xff]  ;;  %v4008_v4 = vld [vmem:[#allocation4 + $0xda] sm:$0xff] }
 0x45b   : > { %3078 = vst.msk [vmem:[#allocation5 + $0x20] sm:$0xff] %vm9046_vm2, %v3383_v58  ;;  %vm9051_vm8 = vmmov %vm9033_vm1  ;;  %v3763_v34 = vld [vmem:[#allocation4 + $0x170] sm:$0xff]  ;;  %v3902_v58 = vpack.c.bf16 %v3876_v23, %v3875_v49  ;;  %v3491_v45 = vld [vmem:[#allocation4 + $0xc1] sm:$0xff] }
 0x45c   : > { %3079 = vst.msk [vmem:[#allocation5 + $0x28] sm:$0xff] %vm9047_vm12, %v7767_v18  ;;  %vm9052_vm10 = vmmov %vm9033_vm1  ;;  %v7827_v9 = vpack.c.bf16 %v3763_v34, %v3762_v32  ;;  %v4004_v12 = vld [vmem:[#allocation4 + $0xaa] sm:$0xff]  ;;  %v3625_v19 = vld [vmem:[#allocation4 + $0xfa] sm:$0xff] }
 0x45d   : > { %3080 = vst.msk [vmem:[#allocation5 + $0x30] sm:$0xff] %vm9048_vm14, %v7772_v2  ;;  %3676 = vrot.lane.b32.xlu1 %v3641_v47, %s5159_s30  ;;  %4062 = vrot.lane.b32.xlu0 %v3641_v47, %s5160_s9  ;;  %vm9053_vm11 = vmmov %vm9033_vm1  ;;  %vm4175_vm14 = vcmask 588800   ;;  %v4031_v10 = vpack.c.bf16 %v4005_v17, %v4004_v12  ;;  %v3492_v60 = vld [vmem:[#allocation4 + $0xc9] sm:$0xff]  ;;  %v4013_v14 = vld [vmem:[#allocation4 + $0x112] sm:$0xff] }
 0x45e   : > { %3081 = vst.msk [vmem:[#allocation5 + $0x38] sm:$0xff] %vm9049_vm15, %v7778_v28  ;;  %vm9054_vm0 = vmmov %vm9033_vm1  ;;  %v3516_v16 = vpack.c.bf16 %v3492_v60, %v3491_v45  ;;  %vm9058_vm15 = vcmask 130112   ;;  %v4035_v20 = vpack.c.bf16 %v4013_v14, %v4012_v40  ;;  %v3883_v43 = vld [vmem:[#allocation4 + $0x109] sm:$0xff]  ;;  %v3884_v62 = vld [vmem:[#allocation4 + $0x111] sm:$0xff] }
 0x45f   : > { %3082 = vst.msk [vmem:[#allocation5 + $0x40] sm:$0xff] %vm9050_vm4, %v7786_v42  ;;  %vm9055_vm1 = vmmov %vm9054_vm0  ;;  %vm9059_vm4 = vcmask 195712   ;;  %v3628_v3 = vld [vmem:[#allocation4 + $0x122] sm:$0xff]  ;;  %v3633_v22 = vld [vmem:[#allocation4 + $0x15a] sm:$0xff] }
 0x460   : > { %3083 = vst.msk [vmem:[#allocation5 + $0x48] sm:$0xff] %vm9051_vm8, %v7790_v29  ;;  %vm9056_vm2 = vmmov %vm9054_vm0  ;;  %v4017_v12 = vld [vmem:[#allocation4 + $0x142] sm:$0xff] }
 0x461   : > { %3462 = vst.msk [vmem:[#allocation5 + $0x8] sm:$0xff] %vm3460_vm5, %v3415_v50  ;;  %3806 = vrot.lane.b32.xlu1 %v7767_v18, %s5157_s21  ;;  %4064 = vrot.lane.b32.xlu0 %v4029_v37, %s5160_s9  ;;  %vm9057_vm12 = vmmov %vm9054_vm0  ;;  %v3496_v50 = vld [vmem:[#allocation4 + $0xf9] sm:$0xff] }
 0x462   : > { %3849 = vst.msk [vmem:[#allocation5] sm:$0xff] %vm3848_vm3, %v3801_v13  ;;  %vm9060_vm8 = vmmov %vm9058_vm15  ;;  %v3518_v13 = vpack.c.bf16 %v3496_v50, %v3495_v36 }
 0x463   : > { %3084 = vst.msk [vmem:[#allocation5 + $0x50] sm:$0xff] %vm9052_vm10, %v7796_v46  ;;  %vm9061_vm10 = vmmov %vm9059_vm4 }
 0x464   : > { %3085 = vst.msk [vmem:[#allocation5 + $0x58] sm:$0xff] %vm9053_vm11, %v7802_v31  ;;  %vm9062_vm11 = vmmov %vm9060_vm8 }
 0x465   : > { %3591 = vst.msk [vmem:[#allocation5 + $0x8] sm:$0xff] %vm3589_vm6, %v3544_v55  ;;  %3935 = vrot.lane.b32.xlu1 %v3900_v59, %s5158_s22  ;;  %3291 = vrot.lane.b32.xlu0 %v3641_v47, %s5152_s10 }
 0x466   : > { %3978 = vst.msk [vmem:[#allocation5] sm:$0xff] %vm3977_vm9, %v3930_v30 }
 0x467   : > { %3086 = vst.msk [vmem:[#allocation5 + $0x60] sm:$0xff] %vm9054_vm0, %v7809_v25  ;;  %vm9063_vm0 = vmmov %vm9059_vm4 }
 0x468   : > { %3087 = vst.msk [vmem:[#allocation5 + $0x68] sm:$0xff] %vm9055_vm1, %v7815_v5  ;;  %vm9064_vm1 = vmmov %vm9060_vm8 }
 0x469   : > { %3720 = vst.msk [vmem:[#allocation5 + $0x8] sm:$0xff] %vm3718_vm7, %v3673_v56  ;;  %3162 = vrot.lane.b32.xlu1 %v7776_v57, %s5150_s8  ;;  %3420 = vrot.lane.b32.xlu0 %v7767_v18, %s5154_s14  ;;  %v3621_v57 = vld [vmem:[#allocation4 + $0xca] sm:$0xff]  ;;  %v3499_v56 = vld [vmem:[#allocation4 + $0x121] sm:$0xff] }
 0x46a   : > { %4107 = vst.msk [vmem:[#allocation5] sm:$0xff] %vm4106_vm13, %v4059_v54  ;;  %v3500_v54 = vld [vmem:[#allocation4 + $0x129] sm:$0xff] }
 0x46b   : > { %3088 = vst.msk [vmem:[#allocation5 + $0x70] sm:$0xff] %vm9056_vm2, %v7821_v0  ;;  %v3520_v34 = vpack.c.bf16 %v3500_v54, %v3499_v56  ;;  %vm9065_vm2 = vmmov %vm9063_vm0  ;;  %v3508_v56 = vld [vmem:[#allocation4 + $0x189] sm:$0xff] }
 0x46c   : > { %3089 = vst.msk [vmem:[#allocation5 + $0x78] sm:$0xff] %vm9057_vm12, %v7827_v9  ;;  %vm9066_vm12 = vmmov %vm9064_vm1 }
 0x46d   : > { %3164 = vrot.lane.b32.xlu1 %v3900_v59, %s5150_s8  ;;  %3549 = vrot.lane.b32.xlu0 %v3900_v59, %s5156_s20 }
 0x471   : > { %v4123_v11 = vld [vmem:[#allocation5] sm:$0xff]  ;;  %3293 = vrot.lane.b32.xlu1 %v4029_v37, %s5152_s10  ;;  %3678 = vrot.lane.b32.xlu0 %v4029_v37, %s5159_s30 }
 0x472   : > { %4945 = vmatprep.mubr.msk.bf16.mxu1 %vm4175_vm14, %v4123_v11  ;;  %v3624_v37 = vld [vmem:[#allocation4 + $0xf2] sm:$0xff] }
 0x475   : > { %3422 = vrot.lane.b32.xlu1 %v7772_v2, %s5154_s14  ;;  %3808 = vrot.lane.b32.xlu0 %v7772_v2, %s5157_s21  ;;  %v3620_v2 = vld [vmem:[#allocation4 + $0xc2] sm:$0xff] }
 0x476   : > { %v3803_v52 = vpop.permute.xlu1 %3802  ;;  %v3645_v21 = vpack.c.bf16 %v3621_v57, %v3620_v2 }
 0x477   : > { %3850 = vst.msk [vmem:[#allocation5 + $0x8] sm:$0xff] %vm3848_vm3, %v3803_v52  ;;  %v4061_v15 = vpop.permute.xlu0 %4060  ;;  %v3888_v52 = vld [vmem:[#allocation4 + $0x141] sm:$0xff] }
 0x479   : > { %3551 = vrot.lane.b32.xlu1 %v3514_v53, %s5156_s20  ;;  %3937 = vrot.lane.b32.xlu0 %v3514_v53, %s5158_s22 }
 0x47a   : > { %v3932_v18 = vpop.permute.xlu1 %3931 }
 0x47b   : > { %3979 = vst.msk [vmem:[#allocation5 + $0x8] sm:$0xff] %vm3977_vm9, %v3932_v18  ;;  %v3288_v39 = vpop.permute.xlu0 %3287 }
 0x47c   : > { %4108 = vst.msk [vmem:[#allocation5 + $0x8] sm:$0xff] %vm4106_vm13, %v4061_v15 }
 0x47d   : > { %3680 = vrot.lane.b32.xlu1 %v3643_v7, %s5159_s30  ;;  %4066 = vrot.lane.b32.xlu0 %v3643_v7, %s5160_s9 }
 0x47e   : > { %v3159_v6 = vpop.permute.xlu1 %3158 }
 0x47f   : > { %3205 = vst.msk [vmem:[#allocation5 + $0x10] sm:$0xff] %vm9058_vm15, %v3159_v6  ;;  %v3417_v1 = vpop.permute.xlu0 %3416  ;;  %vm9067_vm15 = vmmov %vm9063_vm0 }
 0x480   : > { %3334 = vst.msk [vmem:[#allocation5 + $0x10] sm:$0xff] %vm9059_vm4, %v3288_v39  ;;  %vm9068_vm4 = vmmov %vm9064_vm1 }
 0x481   : > { %3810 = vrot.lane.b32.xlu1 %v7778_v28, %s5157_s21  ;;  %4068 = vrot.lane.b32.xlu0 %v4031_v10, %s5160_s9  ;;  %3463 = vst.msk [vmem:[#allocation5 + $0x10] sm:$0xff] %vm3460_vm5, %v3417_v1  ;;  %v3503_v1 = vld [vmem:[#allocation4 + $0x151] sm:$0xff] }
 0x482   : > { %v3161_v41 = vpop.permute.xlu1 %3160 }
 0x483   : > { %3206 = vst.msk [vmem:[#allocation5 + $0x18] sm:$0xff] %vm9060_vm8, %v3161_v41  ;;  %v3546_v47 = vpop.permute.xlu0 %3545  ;;  %vm9069_vm8 = vmmov %vm9063_vm0 }
 0x484   : > { %3592 = vst.msk [vmem:[#allocation5 + $0x10] sm:$0xff] %vm3589_vm6, %v3546_v47  ;;  %v3632_v47 = vld [vmem:[#allocation4 + $0x152] sm:$0xff] }
 0x485   : > { %3939 = vrot.lane.b32.xlu1 %v3902_v58, %s5158_s22  ;;  %3295 = vrot.lane.b32.xlu0 %v3643_v7, %s5152_s10 }
 0x486   : > { %v3290_v38 = vpop.permute.xlu1 %3289 }
 0x487   : > { %3335 = vst.msk [vmem:[#allocation5 + $0x18] sm:$0xff] %vm9061_vm10, %v3290_v38  ;;  %v3675_v51 = vpop.permute.xlu0 %3674  ;;  %v3651_v38 = vpack.c.bf16 %v3633_v22, %v3632_v47  ;;  %vm9070_vm10 = vmmov %vm9064_vm1 }
 0x488   : > { %3721 = vst.msk [vmem:[#allocation5 + $0x10] sm:$0xff] %vm3718_vm7, %v3675_v51  ;;  %v4021_v51 = vld [vmem:[#allocation4 + $0x172] sm:$0xff] }
 0x489   : > { %3166 = vrot.lane.b32.xlu1 %v3514_v53, %s5150_s8  ;;  %3424 = vrot.lane.b32.xlu0 %v7778_v28, %s5154_s14  ;;  %v4009_v28 = vld [vmem:[#allocation4 + $0xe2] sm:$0xff]  ;;  %v3629_v53 = vld [vmem:[#allocation4 + $0x12a] sm:$0xff] }
 0x48a   : > { %v4033_v44 = vpack.c.bf16 %v4009_v28, %v4008_v4  ;;  %v3649_v63 = vpack.c.bf16 %v3629_v53, %v3628_v3  ;;  %v3504_v4 = vld [vmem:[#allocation4 + $0x159] sm:$0xff]  ;;  %v3637_v3 = vld [vmem:[#allocation4 + $0x18a] sm:$0xff] }
 0x48b   : > { %v3522_v41 = vpack.c.bf16 %v3504_v4, %v3503_v1  ;;  %v4024_v53 = vld [vmem:[#allocation4 + $0x19a] sm:$0xff] }
 0x48d   : > { %3168 = vrot.lane.b32.xlu1 %v3902_v58, %s5150_s8  ;;  %3553 = vrot.lane.b32.xlu0 %v3902_v58, %s5156_s20  ;;  %v3887_v58 = vld [vmem:[#allocation4 + $0x139] sm:$0xff] }
 0x48e   : > { %v3908_v45 = vpack.c.bf16 %v3888_v52, %v3887_v58 }
 0x491   : > { %3297 = vrot.lane.b32.xlu1 %v4031_v10, %s5152_s10  ;;  %3682 = vrot.lane.b32.xlu0 %v4031_v10, %s5159_s30 }
 0x495   : > { %3426 = vrot.lane.b32.xlu1 %v7786_v42, %s5154_s14  ;;  %3812 = vrot.lane.b32.xlu0 %v7786_v42, %s5157_s21  ;;  %v4124_v42 = vld [vmem:[#allocation5 + $0x8] sm:$0xff] }
 0x496   : > { %4946 = vmatmul.mubr.msk.bf16.vlgmr.msra.gmra.mrb[0].mxu1 %vm4175_vm14, %v4124_v42 }
 0x499   : > { %3555 = vrot.lane.b32.xlu1 %v3516_v16, %s5156_s20  ;;  %3941 = vrot.lane.b32.xlu0 %v3516_v16, %s5158_s22 }
 0x49d   : > { %3684 = vrot.lane.b32.xlu1 %v3645_v21, %s5159_s30  ;;  %4070 = vrot.lane.b32.xlu0 %v3645_v21, %s5160_s9 }
 0x4a1   : > { %3814 = vrot.lane.b32.xlu1 %v7790_v29, %s5157_s21  ;;  %4072 = vrot.lane.b32.xlu0 %v4033_v44, %s5160_s9 }
 0x4a5   : > { %3943 = vrot.lane.b32.xlu1 %v3904_v27, %s5158_s22  ;;  %3299 = vrot.lane.b32.xlu0 %v3645_v21, %s5152_s10 }
 0x4a9   : > { %3170 = vrot.lane.b32.xlu1 %v3516_v16, %s5150_s8  ;;  %3428 = vrot.lane.b32.xlu0 %v7790_v29, %s5154_s14  ;;  %v3647_v29 = vpack.c.bf16 %v3625_v19, %v3624_v37  ;;  %v3891_v19 = vld [vmem:[#allocation4 + $0x169] sm:$0xff] }
 0x4ad   : > { %3172 = vrot.lane.b32.xlu1 %v3904_v27, %s5150_s8  ;;  %3557 = vrot.lane.b32.xlu0 %v3904_v27, %s5156_s20 }
 0x4b1   : > { %3301 = vrot.lane.b32.xlu1 %v4033_v44, %s5152_s10  ;;  %3686 = vrot.lane.b32.xlu0 %v4033_v44, %s5159_s30 }
 0x4b5   : > { %3430 = vrot.lane.b32.xlu1 %v7796_v46, %s5154_s14  ;;  %3816 = vrot.lane.b32.xlu0 %v7796_v46, %s5157_s21  ;;  %v3906_v46 = vpack.c.bf16 %v3884_v62, %v3883_v43 }
 0x4b9   : > { %3559 = vrot.lane.b32.xlu1 %v3518_v13, %s5156_s20  ;;  %3945 = vrot.lane.b32.xlu0 %v3518_v13, %s5158_s22 }
 0x4ba   : > { %v3419_v55 = vpop.permute.xlu1 %3418  ;;  %v3805_v30 = vpop.permute.xlu0 %3804 }
 0x4bb   : > { %3464 = vst.msk [vmem:[#allocation5 + $0x18] sm:$0xff] %vm3460_vm5, %v3419_v55 }
 0x4bc   : > { %3851 = vst.msk [vmem:[#allocation5 + $0x10] sm:$0xff] %vm3848_vm3, %v3805_v30 }
 0x4bd   : > { %3688 = vrot.lane.b32.xlu1 %v3647_v29, %s5159_s30  ;;  %4074 = vrot.lane.b32.xlu0 %v3647_v29, %s5160_s9 }
 0x4c1   : > { %3818 = vrot.lane.b32.xlu1 %v7802_v31, %s5157_s21  ;;  %4076 = vrot.lane.b32.xlu0 %v4035_v20, %s5160_s9 }
 0x4c5   : > { %3947 = vrot.lane.b32.xlu1 %v3906_v46, %s5158_s22  ;;  %3303 = vrot.lane.b32.xlu0 %v3647_v29, %s5152_s10  ;;  %v3892_v29 = vld [vmem:[#allocation4 + $0x171] sm:$0xff] }
 0x4c6   : > { %v3910_v14 = vpack.c.bf16 %v3892_v29, %v3891_v19 }
 0x4c9   : > { %3174 = vrot.lane.b32.xlu1 %v3518_v13, %s5150_s8  ;;  %3432 = vrot.lane.b32.xlu0 %v7802_v31, %s5154_s14 }
 0x4cb   : > { %v3548_v59 = vpop.permute.xlu1 %3547  ;;  %v3934_v61 = vpop.permute.xlu0 %3933 }
 0x4cc   : > { %3593 = vst.msk [vmem:[#allocation5 + $0x18] sm:$0xff] %vm3589_vm6, %v3548_v59 }
 0x4cd   : > { %3980 = vst.msk [vmem:[#allocation5 + $0x10] sm:$0xff] %vm3977_vm9, %v3934_v61  ;;  %3176 = vrot.lane.b32.xlu1 %v3906_v46, %s5150_s8  ;;  %3561 = vrot.lane.b32.xlu0 %v3906_v46, %s5156_s20  ;;  %v3378_v61 = vld [vmem:[#allocation4 + $0x180] sm:$0xff] }
 0x4cf   : > { %v3677_v26 = vpop.permute.xlu1 %3676  ;;  %v4063_v33 = vpop.permute.xlu0 %4062 }
 0x4d0   : > { %3722 = vst.msk [vmem:[#allocation5 + $0x18] sm:$0xff] %vm3718_vm7, %v3677_v26  ;;  %v3379_v26 = vld [vmem:[#allocation4 + $0x188] sm:$0xff] }
 0x4d1   : > { %4109 = vst.msk [vmem:[#allocation5 + $0x10] sm:$0xff] %vm4106_vm13, %v4063_v33  ;;  %3305 = vrot.lane.b32.xlu1 %v4035_v20, %s5152_s10  ;;  %3690 = vrot.lane.b32.xlu0 %v4035_v20, %s5159_s30  ;;  %v3395_v33 = vpack.c.bf16 %v3379_v26, %v3378_v61 }
 0x4d3   : > { %v3807_v31 = vpop.permute.xlu1 %3806  ;;  %v4065_v48 = vpop.permute.xlu0 %4064 }
 0x4d4   : > { %3852 = vst.msk [vmem:[#allocation5 + $0x18] sm:$0xff] %vm3848_vm3, %v3807_v31 }
 0x4d5   : > { %3434 = vrot.lane.b32.xlu1 %v7809_v25, %s5154_s14  ;;  %3820 = vrot.lane.b32.xlu0 %v7809_v25, %s5157_s21  ;;  %v4016_v25 = vld [vmem:[#allocation4 + $0x13a] sm:$0xff] }
 0x4d6   : > { %v4037_v23 = vpack.c.bf16 %v4017_v12, %v4016_v25 }
 0x4d7   : > { %v3936_v32 = vpop.permute.xlu1 %3935  ;;  %v3292_v11 = vpop.permute.xlu0 %3291 }
 0x4d8   : > { %v4125_v24 = vld [vmem:[#allocation5 + $0x10] sm:$0xff]  ;;  %3981 = vst.msk [vmem:[#allocation5 + $0x18] sm:$0xff] %vm3977_vm9, %v3936_v32 }
 0x4d9   : > { %4949 = vmatprep.mubr.msk.bf16.mxu1 %vm4175_vm14, %v4125_v24  ;;  %4110 = vst.msk [vmem:[#allocation5 + $0x18] sm:$0xff] %vm4106_vm13, %v4065_v48  ;;  %3563 = vrot.lane.b32.xlu1 %v3520_v34, %s5156_s20  ;;  %v3507_v48 = vld [vmem:[#allocation4 + $0x181] sm:$0xff] }
 0x4da   : > { %3949 = vrot.lane.b32.xlu0 %v3520_v34, %s5158_s22  ;;  %v3524_v32 = vpack.c.bf16 %v3508_v56, %v3507_v48  ;;  %v3636_v24 = vld [vmem:[#allocation4 + $0x182] sm:$0xff] }
 0x4db   : > { %v3163_v8 = vpop.permute.xlu1 %3162  ;;  %v3421_v7 = vpop.permute.xlu0 %3420 }
 0x4dc   : > { %3207 = vst.msk [vmem:[#allocation5 + $0x20] sm:$0xff] %vm9062_vm11, %v3163_v8  ;;  %v4025_v8 = vld [vmem:[#allocation4 + $0x1a2] sm:$0xff]  ;;  %vm9071_vm11 = vmmov %vm9063_vm0 }
 0x4dd   : > { %3336 = vst.msk [vmem:[#allocation5 + $0x20] sm:$0xff] %vm9063_vm0, %v3292_v11  ;;  %3692 = vrot.lane.b32.xlu1 %v3649_v63, %s5159_s30  ;;  %v4041_v12 = vpack.c.bf16 %v4025_v8, %v4024_v53  ;;  %vm9072_vm0 = vmmov %vm9064_vm1 }
 0x4de   : > { %4078 = vrot.lane.b32.xlu0 %v3649_v63, %s5160_s9  ;;  %3465 = vst.msk [vmem:[#allocation5 + $0x20] sm:$0xff] %vm3460_vm5, %v3421_v7  ;;  %v3653_v7 = vpack.c.bf16 %v3637_v3, %v3636_v24 }
 0x4df   : > { %v3165_v17 = vpop.permute.xlu1 %3164  ;;  %v3550_v10 = vpop.permute.xlu0 %3549 }
 0x4e0   : > { %3208 = vst.msk [vmem:[#allocation5 + $0x28] sm:$0xff] %vm9064_vm1, %v3165_v17  ;;  %v4126_v49 = vld [vmem:[#allocation5 + $0x18] sm:$0xff]  ;;  %vm9073_vm1 = vmmov %vm9065_vm2 }
 0x4e1   : > { %3594 = vst.msk [vmem:[#allocation5 + $0x20] sm:$0xff] %vm3589_vm6, %v3550_v10  ;;  %3822 = vrot.lane.b32.xlu1 %v7815_v5, %s5157_s21  ;;  %4950 = vmatmul.mubr.msk.bf16.gmra.mrb[4].mxu1 %vm4175_vm14, %v4126_v49 }
 0x4e2   : > { %4080 = vrot.lane.b32.xlu0 %v4037_v23, %s5160_s9 }
 0x4e3   : > { %v3294_v15 = vpop.permute.xlu1 %3293  ;;  %v3679_v60 = vpop.permute.xlu0 %3678 }
 0x4e4   : > { %3337 = vst.msk [vmem:[#allocation5 + $0x28] sm:$0xff] %vm9065_vm2, %v3294_v15  ;;  %vm9074_vm2 = vmmov %vm9072_vm0 }
 0x4e5   : > { %3723 = vst.msk [vmem:[#allocation5 + $0x20] sm:$0xff] %vm3718_vm7, %v3679_v60  ;;  %3951 = vrot.lane.b32.xlu1 %v3908_v45, %s5158_s22 }
 0x4e6   : > { %3307 = vrot.lane.b32.xlu0 %v3649_v63, %s5152_s10 }
 0x4e7   : > { %v3423_v18 = vpop.permute.xlu1 %3422  ;;  %v3809_v16 = vpop.permute.xlu0 %3808 }
 0x4e8   : > { %3466 = vst.msk [vmem:[#allocation5 + $0x28] sm:$0xff] %vm3460_vm5, %v3423_v18 }
 0x4e9   : > { %3853 = vst.msk [vmem:[#allocation5 + $0x20] sm:$0xff] %vm3848_vm3, %v3809_v16  ;;  %3178 = vrot.lane.b32.xlu1 %v3520_v34, %s5150_s8 }
 0x4ea   : > { %3436 = vrot.lane.b32.xlu0 %v7815_v5, %s5154_s14 }
 0x4eb   : > { %v3552_v39 = vpop.permute.xlu1 %3551  ;;  %v3938_v2 = vpop.permute.xlu0 %3937 }
 0x4ec   : > { %3595 = vst.msk [vmem:[#allocation5 + $0x28] sm:$0xff] %vm3589_vm6, %v3552_v39 }
 0x4ed   : > { %3982 = vst.msk [vmem:[#allocation5 + $0x20] sm:$0xff] %vm3977_vm9, %v3938_v2  ;;  %3180 = vrot.lane.b32.xlu1 %v3908_v45, %s5150_s8 }
 0x4ee   : > { %3565 = vrot.lane.b32.xlu0 %v3908_v45, %s5156_s20 }
 0x4ef   : > { %v3681_v57 = vpop.permute.xlu1 %3680  ;;  %v4067_v6 = vpop.permute.xlu0 %4066 }
 0x4f0   : > { %3724 = vst.msk [vmem:[#allocation5 + $0x28] sm:$0xff] %vm3718_vm7, %v3681_v57 }
 0x4f1   : > { %4111 = vst.msk [vmem:[#allocation5 + $0x20] sm:$0xff] %vm4106_vm13, %v4067_v6  ;;  %3309 = vrot.lane.b32.xlu1 %v4037_v23, %s5152_s10 }
 0x4f2   : > { %3694 = vrot.lane.b32.xlu0 %v4037_v23, %s5159_s30 }
 0x4f3   : > { %v3811_v5 = vpop.permute.xlu1 %3810  ;;  %v4069_v21 = vpop.permute.xlu0 %4068 }
 0x4f4   : > { %3854 = vst.msk [vmem:[#allocation5 + $0x28] sm:$0xff] %vm3848_vm3, %v3811_v5 }
 0x4f5   : > { %3438 = vrot.lane.b32.xlu1 %v7821_v0, %s5154_s14 }
 0x4f6   : > { %3824 = vrot.lane.b32.xlu0 %v7821_v0, %s5157_s21  ;;  %v4020_v0 = vld [vmem:[#allocation4 + $0x16a] sm:$0xff] }
 0x4f7   : > { %v3940_v28 = vpop.permute.xlu1 %3939  ;;  %v3296_v44 = vpop.permute.xlu0 %3295  ;;  %v4039_v37 = vpack.c.bf16 %v4021_v51, %v4020_v0 }
 0x4f8   : > { %v4127_v42 = vld [vmem:[#allocation5 + $0x20] sm:$0xff]  ;;  %3983 = vst.msk [vmem:[#allocation5 + $0x28] sm:$0xff] %vm3977_vm9, %v3940_v28 }
 0x4f9   : > { %4953 = vmatprep.mubr.msk.bf16.mxu1 %vm4175_vm14, %v4127_v42  ;;  %4112 = vst.msk [vmem:[#allocation5 + $0x28] sm:$0xff] %vm4106_vm13, %v4069_v21  ;;  %3567 = vrot.lane.b32.xlu1 %v3522_v41, %s5156_s20 }
 0x4fa   : > { %3953 = vrot.lane.b32.xlu0 %v3522_v41, %s5158_s22 }
 0x4fb   : > { %v3167_v35 = vpop.permute.xlu1 %3166  ;;  %v3425_v27 = vpop.permute.xlu0 %3424 }
 0x4fc   : > { %3209 = vst.msk [vmem:[#allocation5 + $0x30] sm:$0xff] %vm9066_vm12, %v3167_v35  ;;  %vm9075_vm12 = vmmov %vm9073_vm1 }
 0x4fd   : > { %3338 = vst.msk [vmem:[#allocation5 + $0x30] sm:$0xff] %vm9067_vm15, %v3296_v44  ;;  %3696 = vrot.lane.b32.xlu1 %v3651_v38, %s5159_s30  ;;  %vm9076_vm15 = vmmov %vm9072_vm0 }
 0x4fe   : > { %3467 = vst.msk [vmem:[#allocation5 + $0x30] sm:$0xff] %vm3460_vm5, %v3425_v27  ;;  %4082 = vrot.lane.b32.xlu0 %v3651_v38, %s5160_s9 }
 0x4ff   : > { %v3169_v36 = vpop.permute.xlu1 %3168  ;;  %v3554_v50 = vpop.permute.xlu0 %3553 }
 0x500   : > { %3210 = vst.msk [vmem:[#allocation5 + $0x38] sm:$0xff] %vm9068_vm4, %v3169_v36  ;;  %v4128_v13 = vld [vmem:[#allocation5 + $0x28] sm:$0xff]  ;;  %vm9077_vm4 = vmmov %vm9073_vm1 }
 0x501   : > { %3596 = vst.msk [vmem:[#allocation5 + $0x30] sm:$0xff] %vm3589_vm6, %v3554_v50  ;;  %3826 = vrot.lane.b32.xlu1 %v7827_v9, %s5157_s21  ;;  %4954 = vmatmul.mubr.msk.bf16.gmra.mrb[8].mxu1 %vm4175_vm14, %v4128_v13 }
 0x502   : > { %4084 = vrot.lane.b32.xlu0 %v4039_v37, %s5160_s9 }
 0x503   : > { %v3298_v40 = vpop.permute.xlu1 %3297  ;;  %v3683_v20 = vpop.permute.xlu0 %3682 }
 0x504   : > { %3339 = vst.msk [vmem:[#allocation5 + $0x38] sm:$0xff] %vm9069_vm8, %v3298_v40  ;;  %vm9078_vm8 = vmmov %vm9072_vm0 }
 0x505   : > { %3725 = vst.msk [vmem:[#allocation5 + $0x30] sm:$0xff] %vm3718_vm7, %v3683_v20  ;;  %3955 = vrot.lane.b32.xlu1 %v3910_v14, %s5158_s22 }
 0x506   : > { %3311 = vrot.lane.b32.xlu0 %v3651_v38, %s5152_s10 }
 0x507   : > { %v3427_v43 = vpop.permute.xlu1 %3426  ;;  %v3813_v62 = vpop.permute.xlu0 %3812 }
 0x508   : > { %3468 = vst.msk [vmem:[#allocation5 + $0x38] sm:$0xff] %vm3460_vm5, %v3427_v43 }
 0x509   : > { %3855 = vst.msk [vmem:[#allocation5 + $0x30] sm:$0xff] %vm3848_vm3, %v3813_v62  ;;  %3182 = vrot.lane.b32.xlu1 %v3522_v41, %s5150_s8 }
 0x50a   : > { %3440 = vrot.lane.b32.xlu0 %v7827_v9, %s5154_s14 }
 0x50b   : > { %v3556_v46 = vpop.permute.xlu1 %3555  ;;  %v3942_v55 = vpop.permute.xlu0 %3941 }
 0x50c   : > { %3597 = vst.msk [vmem:[#allocation5 + $0x38] sm:$0xff] %vm3589_vm6, %v3556_v46 }
 0x50d   : > { %3984 = vst.msk [vmem:[#allocation5 + $0x30] sm:$0xff] %vm3977_vm9, %v3942_v55  ;;  %3184 = vrot.lane.b32.xlu1 %v3910_v14, %s5150_s8 }
 0x50e   : > { %3569 = vrot.lane.b32.xlu0 %v3910_v14, %s5156_s20 }
 0x50f   : > { %v3685_v30 = vpop.permute.xlu1 %3684  ;;  %v4071_v59 = vpop.permute.xlu0 %4070 }
 0x510   : > { %3726 = vst.msk [vmem:[#allocation5 + $0x38] sm:$0xff] %vm3718_vm7, %v3685_v30 }
 0x511   : > { %4113 = vst.msk [vmem:[#allocation5 + $0x30] sm:$0xff] %vm4106_vm13, %v4071_v59  ;;  %3313 = vrot.lane.b32.xlu1 %v4039_v37, %s5152_s10 }
 0x512   : > { %3698 = vrot.lane.b32.xlu0 %v4039_v37, %s5159_s30 }
 0x513   : > { %v3815_v9 = vpop.permute.xlu1 %3814  ;;  %v4073_v31 = vpop.permute.xlu0 %4072 }
 0x514   : > { %3856 = vst.msk [vmem:[#allocation5 + $0x38] sm:$0xff] %vm3848_vm3, %v3815_v9 }
 0x515   : > { %3442 = vrot.lane.b32.xlu1 %v3395_v33, %s5154_s14 }
 0x516   : > { %3828 = vrot.lane.b32.xlu0 %v3395_v33, %s5157_s21 }
 0x517   : > { %v3944_v54 = vpop.permute.xlu1 %3943  ;;  %v3300_v34 = vpop.permute.xlu0 %3299 }
 0x518   : > { %v4129_v11 = vld [vmem:[#allocation5 + $0x30] sm:$0xff]  ;;  %3985 = vst.msk [vmem:[#allocation5 + $0x38] sm:$0xff] %vm3977_vm9, %v3944_v54 }
 0x519   : > { %4957 = vmatprep.mubr.msk.bf16.mxu1 %vm4175_vm14, %v4129_v11  ;;  %4114 = vst.msk [vmem:[#allocation5 + $0x38] sm:$0xff] %vm4106_vm13, %v4073_v31  ;;  %3571 = vrot.lane.b32.xlu1 %v3524_v32, %s5156_s20 }
 0x51a   : > { %3957 = vrot.lane.b32.xlu0 %v3524_v32, %s5158_s22 }
 0x51b   : > { %v3171_v63 = vpop.permute.xlu1 %3170  ;;  %v3429_v25 = vpop.permute.xlu0 %3428 }
 0x51c   : > { %3211 = vst.msk [vmem:[#allocation5 + $0x40] sm:$0xff] %vm9070_vm10, %v3171_v63  ;;  %vm9079_vm10 = vmmov %vm9073_vm1 }
 0x51d   : > { %3340 = vst.msk [vmem:[#allocation5 + $0x40] sm:$0xff] %vm9071_vm11, %v3300_v34  ;;  %3700 = vrot.lane.b32.xlu1 %v3653_v7, %s5159_s30  ;;  %vm9080_vm11 = vmmov %vm9072_vm0 }
 0x51e   : > { %3469 = vst.msk [vmem:[#allocation5 + $0x40] sm:$0xff] %vm3460_vm5, %v3429_v25  ;;  %4086 = vrot.lane.b32.xlu0 %v3653_v7, %s5160_s9 }
 0x51f   : > { %v3173_v17 = vpop.permute.xlu1 %3172  ;;  %v3558_v10 = vpop.permute.xlu0 %3557 }
 0x520   : > { %3212 = vst.msk [vmem:[#allocation5 + $0x48] sm:$0xff] %vm9072_vm0, %v3173_v17  ;;  %v4130_v49 = vld [vmem:[#allocation5 + $0x38] sm:$0xff]  ;;  %vm9081_vm0 = vmmov %vm9073_vm1 }
 0x521   : > { %3598 = vst.msk [vmem:[#allocation5 + $0x40] sm:$0xff] %vm3589_vm6, %v3558_v10  ;;  %4958 = vmatmul.mubr.msk.bf16.gmra.mrb[12].mxu1 %vm4175_vm14, %v4130_v49  ;;  %4088 = vrot.lane.b32.xlu1 %v4041_v12, %s5160_s9 }
 0x523   : > { %v3302_v23 = vpop.permute.xlu1 %3301  ;;  %v3687_v58 = vpop.permute.xlu0 %3686 }
 0x524   : > { %3341 = vst.msk [vmem:[#allocation5 + $0x48] sm:$0xff] %vm9073_vm1, %v3302_v23  ;;  %vm9082_vm1 = vcmask 64512  }
 0x525   : > { %3727 = vst.msk [vmem:[#allocation5 + $0x40] sm:$0xff] %vm3718_vm7, %v3687_v58 }
 0x527   : > { %v3431_v52 = vpop.permute.xlu1 %3430  ;;  %v3817_v15 = vpop.permute.xlu0 %3816 }
 0x528   : > { %3470 = vst.msk [vmem:[#allocation5 + $0x48] sm:$0xff] %vm3460_vm5, %v3431_v52 }
 0x529   : > { %3857 = vst.msk [vmem:[#allocation5 + $0x40] sm:$0xff] %vm3848_vm3, %v3817_v15 }
 0x52b   : > { %v3560_v45 = vpop.permute.xlu1 %3559  ;;  %v3946_v60 = vpop.permute.xlu0 %3945 }
 0x52c   : > { %3599 = vst.msk [vmem:[#allocation5 + $0x48] sm:$0xff] %vm3589_vm6, %v3560_v45 }
 0x52d   : > { %3986 = vst.msk [vmem:[#allocation5 + $0x40] sm:$0xff] %vm3977_vm9, %v3946_v60 }
 0x52f   : > { %v3689_v18 = vpop.permute.xlu1 %3688  ;;  %v4075_v16 = vpop.permute.xlu0 %4074 }
 0x530   : > { %3728 = vst.msk [vmem:[#allocation5 + $0x48] sm:$0xff] %vm3718_vm7, %v3689_v18 }
 0x531   : > { %4115 = vst.msk [vmem:[#allocation5 + $0x40] sm:$0xff] %vm4106_vm13, %v4075_v16 }
 0x533   : > { %v3819_v39 = vpop.permute.xlu1 %3818  ;;  %v4077_v2 = vpop.permute.xlu0 %4076 }
 0x534   : > { %3858 = vst.msk [vmem:[#allocation5 + $0x48] sm:$0xff] %vm3848_vm3, %v3819_v39 }
 0x537   : > { %v3948_v57 = vpop.permute.xlu1 %3947  ;;  %v3304_v6 = vpop.permute.xlu0 %3303 }
 0x538   : > { %v4131_v5 = vld [vmem:[#allocation5 + $0x40] sm:$0xff]  ;;  %3987 = vst.msk [vmem:[#allocation5 + $0x48] sm:$0xff] %vm3977_vm9, %v3948_v57 }
 0x539   : > { %4961 = vmatprep.mubr.msk.bf16.mxu1 %vm4175_vm14, %v4131_v5  ;;  %4116 = vst.msk [vmem:[#allocation5 + $0x48] sm:$0xff] %vm4106_vm13, %v4077_v2 }
 0x53b   : > { %v3175_v21 = vpop.permute.xlu1 %3174  ;;  %v3433_v1 = vpop.permute.xlu0 %3432 }
 0x53c   : > { %3213 = vst.msk [vmem:[#allocation5 + $0x50] sm:$0xff] %vm9074_vm2, %v3175_v21  ;;  %vm9083_vm2 = vmmov %vm9082_vm1 }
 0x53d   : > { %3342 = vst.msk [vmem:[#allocation5 + $0x50] sm:$0xff] %vm9075_vm12, %v3304_v6  ;;  %vm9084_vm12 = vmmov %vm9082_vm1 }
 0x53e   : > { %3471 = vst.msk [vmem:[#allocation5 + $0x50] sm:$0xff] %vm3460_vm5, %v3433_v1 }
 0x53f   : > { %v3177_v4 = vpop.permute.xlu1 %3176  ;;  %v3562_v28 = vpop.permute.xlu0 %3561 }
 0x540   : > { %3214 = vst.msk [vmem:[#allocation5 + $0x58] sm:$0xff] %vm9076_vm15, %v3177_v4  ;;  %v4132_v41 = vld [vmem:[#allocation5 + $0x48] sm:$0xff]  ;;  %vm9085_vm15 = vmmov %vm9082_vm1 }
 0x541   : > { %3600 = vst.msk [vmem:[#allocation5 + $0x50] sm:$0xff] %vm3589_vm6, %v3562_v28  ;;  %4962 = vmatmul.mubr.msk.bf16.gmra.mrb[16].mxu1 %vm4175_vm14, %v4132_v41 }
 0x543   : > { %v3306_v44 = vpop.permute.xlu1 %3305  ;;  %v3691_v42 = vpop.permute.xlu0 %3690 }
 0x544   : > { %3343 = vst.msk [vmem:[#allocation5 + $0x58] sm:$0xff] %vm9077_vm4, %v3306_v44  ;;  %vm9086_vm4 = vmmov %vm9082_vm1 }
 0x545   : > { %3729 = vst.msk [vmem:[#allocation5 + $0x50] sm:$0xff] %vm3718_vm7, %v3691_v42 }
 0x547   : > { %v3435_v47 = vpop.permute.xlu1 %3434  ;;  %v3821_v22 = vpop.permute.xlu0 %3820 }
 0x548   : > { %3472 = vst.msk [vmem:[#allocation5 + $0x58] sm:$0xff] %vm3460_vm5, %v3435_v47  ;;  %v9091_v47 = vld [vmem:[#allocation6_spill] sm:$0xff] }
 0x549   : > { %3859 = vst.msk [vmem:[#allocation5 + $0x50] sm:$0xff] %vm3848_vm3, %v3821_v22  ;;  %v9092_v22 = vld [vmem:[#allocation7_spill] sm:$0xff] }
 0x54b   : > { %v3564_v35 = vpop.permute.xlu1 %3563 }
 0x54c   : > { %v3950_v38 = vpop.permute.xlu0 %3949  ;;  %3601 = vst.msk [vmem:[#allocation5 + $0x58] sm:$0xff] %vm3589_vm6, %v3564_v35 }
 0x54d   : > { %3988 = vst.msk [vmem:[#allocation5 + $0x50] sm:$0xff] %vm3977_vm9, %v3950_v38 }
 0x54f   : > { %v3693_v27 = vpop.permute.xlu1 %3692 }
 0x550   : > { %v4079_v0 = vpop.permute.xlu0 %4078  ;;  %3730 = vst.msk [vmem:[#allocation5 + $0x58] sm:$0xff] %vm3718_vm7, %v3693_v27 }
 0x551   : > { %4117 = vst.msk [vmem:[#allocation5 + $0x50] sm:$0xff] %vm4106_vm13, %v4079_v0 }
 0x553   : > { %v3823_v51 = vpop.permute.xlu1 %3822 }
 0x554   : > { %3860 = vst.msk [vmem:[#allocation5 + $0x58] sm:$0xff] %vm3848_vm3, %v3823_v51  ;;  %v4081_v36 = vpop.permute.xlu0 %4080 }
 0x557   : > { %v3952_v50 = vpop.permute.xlu1 %3951 }
 0x558   : > { %v4133_v13 = vld [vmem:[#allocation5 + $0x50] sm:$0xff]  ;;  %3989 = vst.msk [vmem:[#allocation5 + $0x58] sm:$0xff] %vm3977_vm9, %v3952_v50  ;;  %v3308_v37 = vpop.permute.xlu0 %3307 }
 0x559   : > { %4965 = vmatprep.mubr.msk.bf16.mxu1 %vm4175_vm14, %v4133_v13  ;;  %4118 = vst.msk [vmem:[#allocation5 + $0x58] sm:$0xff] %vm4106_vm13, %v4081_v36 }
 0x55b   : > { %v3179_v19 = vpop.permute.xlu1 %3178 }
 0x55c   : > { %3215 = vst.msk [vmem:[#allocation5 + $0x60] sm:$0xff] %vm9078_vm8, %v3179_v19  ;;  %v3437_v29 = vpop.permute.xlu0 %3436  ;;  %vm9087_vm8 = vmmov %vm9082_vm1 }
 0x55d   : > { %3344 = vst.msk [vmem:[#allocation5 + $0x60] sm:$0xff] %vm9079_vm10, %v3308_v37  ;;  %vm9088_vm10 = vmmov %vm9082_vm1 }
 0x55e   : > { %3473 = vst.msk [vmem:[#allocation5 + $0x60] sm:$0xff] %vm3460_vm5, %v3437_v29 }
 0x55f   : > { %v3181_v40 = vpop.permute.xlu1 %3180 }
 0x560   : > { %3216 = vst.msk [vmem:[#allocation5 + $0x68] sm:$0xff] %vm9080_vm11, %v3181_v40  ;;  %v4134_v14 = vld [vmem:[#allocation5 + $0x58] sm:$0xff]  ;;  %v3566_v20 = vpop.permute.xlu0 %3565 }
 0x561   : > { %4966 = vmatmul.mubr.msk.bf16.gmra.mrb[20].mxu1 %vm4175_vm14, %v4134_v14  ;;  %3602 = vst.msk [vmem:[#allocation5 + $0x60] sm:$0xff] %vm3589_vm6, %v3566_v20 }
 0x563   : > { %v3310_v43 = vpop.permute.xlu1 %3309 }
 0x564   : > { %3345 = vst.msk [vmem:[#allocation5 + $0x68] sm:$0xff] %vm9081_vm0, %v3310_v43  ;;  %v3695_v62 = vpop.permute.xlu0 %3694 }
 0x565   : > { %3731 = vst.msk [vmem:[#allocation5 + $0x60] sm:$0xff] %vm3718_vm7, %v3695_v62 }
 0x567   : > { %v3439_v46 = vpop.permute.xlu1 %3438 }
 0x568   : > { %3474 = vst.msk [vmem:[#allocation5 + $0x68] sm:$0xff] %vm3460_vm5, %v3439_v46  ;;  %v3825_v55 = vpop.permute.xlu0 %3824 }
 0x569   : > { %3861 = vst.msk [vmem:[#allocation5 + $0x60] sm:$0xff] %vm3848_vm3, %v3825_v55  ;;  %v8056_v33 = vpop.f32.mrb[0].mxu1 }
 0x56a   : > { %v8059_v48 = vpop.f32.mrb[1].mxu1  ;;  %v4462_v11 = vmul.f32 %v8056_v33, %v8056_v33  ;;  %v4394_v25 = vsel %vm9084_vm12, %v8056_v33, 0.0  ;;  %vm9090_vm12 = vmmov %vm9081_vm0 }
 0x56b   : > { %v3568_v30 = vpop.permute.xlu1 %3567  ;;  %v4460_v56 = vmul.f32 %v8059_v48, %v8059_v48  ;;  %v8063_v54 = vpop.f32.mrb[2].mxu1  ;;  %v4391_v24 = vsel %vm9082_vm1, %v8059_v48, 0.0 }
 0x56c   : > { %3603 = vst.msk [vmem:[#allocation5 + $0x68] sm:$0xff] %vm3589_vm6, %v3568_v30  ;;  %v3954_v59 = vpop.permute.xlu0 %3953  ;;  %v8065_v32 = vpop.f32.mrb[3].mxu1  ;;  %v4463_v17 = vmul.f32 %v8063_v54, %v8063_v54  ;;  %v4495_v52 = vsel %vm9087_vm8, %v4462_v11, 0.0  ;;  %v4396_v15 = vsel %vm9088_vm10, %v8063_v54, 0.0  ;;  %vm9102_vm8 = vmmov %vm9082_vm1 }
 0x56d   : > { %3990 = vst.msk [vmem:[#allocation5 + $0x60] sm:$0xff] %vm3977_vm9, %v3954_v59  ;;  %v4392_v3 = vsel %vm9083_vm2, %v8065_v32, 0.0  ;;  %v4461_v53 = vmul.f32 %v8065_v32, %v8065_v32  ;;  %v4492_v12 = vsel %vm9085_vm15, %v4460_v56, 0.0  ;;  %vm9089_vm2 = vmmov %vm9080_vm11 }
 0x56e   : > { %v4393_v7 = vadd.f32 %v4392_v3, %v4391_v24  ;;  %v4497_v16 = vsel %vm9082_vm1, %v4463_v17, 0.0  ;;  %vm9100_vm15 = vmmov %vm9082_vm1 }
 0x56f   : > { %v3697_v61 = vpop.permute.xlu1 %3696  ;;  %v4493_v10 = vsel %vm9086_vm4, %v4461_v53, 0.0  ;;  %vm9101_vm4 = vmmov %vm9082_vm1 }
 0x570   : > { %3732 = vst.msk [vmem:[#allocation5 + $0x68] sm:$0xff] %vm3718_vm7, %v3697_v61  ;;  %v4083_v26 = vpop.permute.xlu0 %4082  ;;  %v4395_v49 = vadd.f32 %v4394_v25, %v4393_v7  ;;  %v4494_v23 = vadd.f32 %v4493_v10, %v4492_v12  ;;  %vm9103_vm10 = vmmov %vm9082_vm1 }
 0x571   : > { %4119 = vst.msk [vmem:[#allocation5 + $0x60] sm:$0xff] %vm4106_vm13, %v4083_v26 }
 0x572   : > { %v4496_v60 = vadd.f32 %v4495_v52, %v4494_v23  ;;  %v4397_v18 = vadd.f32 %v4396_v15, %v4395_v49 }
 0x573   : > { %v3827_v9 = vpop.permute.xlu1 %3826 }
 0x574   : > { %3862 = vst.msk [vmem:[#allocation5 + $0x68] sm:$0xff] %vm3848_vm3, %v3827_v9  ;;  %v4085_v31 = vpop.permute.xlu0 %4084  ;;  %v4498_v39 = vadd.f32 %v4497_v16, %v4496_v60 }
 0x577   : > { %v3956_v34 = vpop.permute.xlu1 %3955 }
 0x578   : > { %3991 = vst.msk [vmem:[#allocation5 + $0x68] sm:$0xff] %vm3977_vm9, %v3956_v34  ;;  %v3312_v8 = vpop.permute.xlu0 %3311  ;;  %v4135_v63 = vld [vmem:[#allocation5 + $0x60] sm:$0xff] }
 0x579   : > { %4120 = vst.msk [vmem:[#allocation5 + $0x68] sm:$0xff] %vm4106_vm13, %v4085_v31  ;;  %4969 = vmatprep.mubr.msk.bf16.mxu1 %vm4175_vm14, %v4135_v63 }
 0x57b   : > { %v3183_v58 = vpop.permute.xlu1 %3182 }
 0x57c   : > { %3217 = vst.msk [vmem:[#allocation5 + $0x70] sm:$0xff] %vm9080_vm11, %v3183_v58  ;;  %v3441_v45 = vpop.permute.xlu0 %3440  ;;  %vm9104_vm11 = vmmov %vm9082_vm1 }
 0x57d   : > { %3346 = vst.msk [vmem:[#allocation5 + $0x70] sm:$0xff] %vm9081_vm0, %v3312_v8  ;;  %vm9105_vm0 = vmmov %vm9082_vm1 }
 0x57e   : > { %3475 = vst.msk [vmem:[#allocation5 + $0x70] sm:$0xff] %vm3460_vm5, %v3441_v45 }
 0x57f   : > { %v3185_v2 = vpop.permute.xlu1 %3184 }
 0x580   : > { %3218 = vst.msk [vmem:[#allocation5 + $0x78] sm:$0xff] %vm9089_vm2, %v3185_v2  ;;  %v4136_v57 = vld [vmem:[#allocation5 + $0x68] sm:$0xff]  ;;  %v3570_v6 = vpop.permute.xlu0 %3569  ;;  %vm9107_vm2 = vmmov %vm9105_vm0 }
 0x581   : > { %4970 = vmatmul.mubr.msk.bf16.gmra.mrb[24].mxu1 %vm4175_vm14, %v4136_v57  ;;  %3604 = vst.msk [vmem:[#allocation5 + $0x70] sm:$0xff] %vm3589_vm6, %v3570_v6 }
 0x583   : > { %v3314_v5 = vpop.permute.xlu1 %3313 }
 0x584   : > { %3347 = vst.msk [vmem:[#allocation5 + $0x78] sm:$0xff] %vm9090_vm12, %v3314_v5  ;;  %v3699_v21 = vpop.permute.xlu0 %3698  ;;  %vm9108_vm12 = vmmov %vm9105_vm0 }
 0x585   : > { %3733 = vst.msk [vmem:[#allocation5 + $0x70] sm:$0xff] %vm3718_vm7, %v3699_v21 }
 0x587   : > { %v3443_v1 = vpop.permute.xlu1 %3442 }
 0x588   : > { %3476 = vst.msk [vmem:[#allocation5 + $0x78] sm:$0xff] %vm3460_vm5, %v3443_v1  ;;  %v3829_v4 = vpop.permute.xlu0 %3828  ;;  %vm9093_vm5 = vmmov %vm9082_vm1 }
 0x589   : > { %3863 = vst.msk [vmem:[#allocation5 + $0x70] sm:$0xff] %vm3848_vm3, %v3829_v4 }
 0x58b   : > { %v3572_v28 = vpop.permute.xlu1 %3571 }
 0x58c   : > { %3605 = vst.msk [vmem:[#allocation5 + $0x78] sm:$0xff] %vm3589_vm6, %v3572_v28  ;;  %v3958_v41 = vpop.permute.xlu0 %3957  ;;  %vm9094_vm6 = vmmov %vm9082_vm1 }
 0x58d   : > { %3992 = vst.msk [vmem:[#allocation5 + $0x70] sm:$0xff] %vm3977_vm9, %v3958_v41 }
 0x58f   : > { %v3701_v44 = vpop.permute.xlu1 %3700 }
 0x590   : > { %3734 = vst.msk [vmem:[#allocation5 + $0x78] sm:$0xff] %vm3718_vm7, %v3701_v44  ;;  %v4087_v42 = vpop.permute.xlu0 %4086  ;;  %vm9095_vm7 = vmmov %vm9082_vm1 }
 0x591   : > { %3864 = vst.msk [vmem:[#allocation5 + $0x78] sm:$0xff] %vm3848_vm3, %v9091_v47  ;;  %vm9096_vm3 = vmmov %vm9082_vm1 }
 0x592   : > { %4121 = vst.msk [vmem:[#allocation5 + $0x70] sm:$0xff] %vm4106_vm13, %v4087_v42 }
 0x593   : > { %3993 = vst.msk [vmem:[#allocation5 + $0x78] sm:$0xff] %vm3977_vm9, %v9092_v22  ;;  %v4089_v35 = vpop.permute.xlu1 %4088  ;;  %vm9097_vm9 = vmmov %vm9082_vm1 }
 0x594   : > { %4122 = vst.msk [vmem:[#allocation5 + $0x78] sm:$0xff] %vm4106_vm13, %v4089_v35  ;;  %vm9098_vm13 = vmmov %vm9082_vm1 }
 0x599   : > { %v4137_v38 = vld [vmem:[#allocation5 + $0x70] sm:$0xff] }
 0x59a   : > { %4973 = vmatprep.mubr.msk.bf16.mxu1 %vm4175_vm14, %v4137_v38 }
 0x59b   : > { %v4138_v27 = vld [vmem:[#allocation5 + $0x78] sm:$0xff] }
 0x59c   : > { %4974 = vmatmul.mubr.msk.bf16.gmra.mrb[28].mxu1 %vm4175_vm14, %v4138_v27  ;;  %vm9099_vm14 = vmmov %vm9082_vm1 }
 0x59d   : > { %vm9106_vm1 = vmmov %vm9105_vm0 }
 0x5b4   : > { %v8109_v0 = vpop.f32.mrb[4].mxu1 }
 0x5b5   : > { %v8111_v51 = vpop.f32.mrb[5].mxu1  ;;  %v4466_v29 = vmul.f32 %v8109_v0, %v8109_v0  ;;  %v4402_v46 = vsel %vm9096_vm3, %v8109_v0, 0.0  ;;  %vm9112_vm3 = vmmov %vm9105_vm0 }
 0x5b6   : > { %v4398_v36 = vsel %vm9093_vm5, %v8111_v51, 0.0  ;;  %v4464_v50 = vmul.f32 %v8111_v51, %v8111_v51  ;;  %v8117_v13 = vpop.f32.mrb[6].mxu1  ;;  %vm9109_vm5 = vmmov %vm9105_vm0 }
 0x5b7   : > { %v4399_v37 = vadd.f32 %v4398_v36, %v4397_v18  ;;  %v8119_v19 = vpop.f32.mrb[7].mxu1  ;;  %v4467_v55 = vmul.f32 %v8117_v13, %v8117_v13  ;;  %v4503_v26 = vsel %vm9098_vm13, %v4466_v29, 0.0  ;;  %v4404_v9 = vsel %vm9099_vm14, %v8117_v13, 0.0  ;;  %vm9114_vm13 = vmmov %vm9105_vm0 }
 0x5b8   : > { %v4499_v40 = vsel %vm9094_vm6, %v4464_v50, 0.0  ;;  %v4400_v14 = vsel %vm9095_vm7, %v8119_v19, 0.0  ;;  %v4465_v20 = vmul.f32 %v8119_v19, %v8119_v19  ;;  %vm9110_vm6 = vmmov %vm9105_vm0 }
 0x5b9   : > { %v4500_v43 = vadd.f32 %v4499_v40, %v4498_v39  ;;  %v4401_v62 = vadd.f32 %v4400_v14, %v4399_v37  ;;  %v4505_v34 = vsel %vm9100_vm15, %v4467_v55, 0.0  ;;  %vm9111_vm7 = vmmov %vm9105_vm0 }
 0x5ba   : > { %v4501_v30 = vsel %vm9097_vm9, %v4465_v20, 0.0  ;;  %vm9113_vm9 = vmmov %vm9105_vm0 }
 0x5bb   : > { %v4403_v59 = vadd.f32 %v4402_v46, %v4401_v62  ;;  %v4502_v61 = vadd.f32 %v4501_v30, %v4500_v43  ;;  %vm9115_vm14 = vmmov %vm9105_vm0 }
 0x5bc   : > { %vm9116_vm15 = vmmov %vm9105_vm0 }
 0x5bd   : > { %v4504_v31 = vadd.f32 %v4503_v26, %v4502_v61  ;;  %v4405_v56 = vadd.f32 %v4404_v9, %v4403_v59 }
 0x5bf   : > { %v4506_v11 = vadd.f32 %v4505_v34, %v4504_v31 }
 0x5d4   : > { %v8137_v24 = vpop.f32.mrb[8].mxu1 }
 0x5d5   : > { %v8139_v3 = vpop.f32.mrb[9].mxu1  ;;  %v4470_v12 = vmul.f32 %v8137_v24, %v8137_v24  ;;  %v4410_v52 = vsel %vm9104_vm11, %v8137_v24, 0.0  ;;  %vm9120_vm11 = vmmov %vm9105_vm0 }
 0x5d6   : > { %v4406_v53 = vsel %vm9101_vm4, %v8139_v3, 0.0  ;;  %v4468_v8 = vmul.f32 %v8139_v3, %v8139_v3  ;;  %v8145_v63 = vpop.f32.mrb[10].mxu1  ;;  %vm9117_vm4 = vmmov %vm9105_vm0 }
 0x5d7   : > { %v4407_v7 = vadd.f32 %v4406_v53, %v4405_v56  ;;  %v8147_v25 = vpop.f32.mrb[11].mxu1  ;;  %v4471_v15 = vmul.f32 %v8145_v63, %v8145_v63  ;;  %v4511_v16 = vsel %vm9106_vm1, %v4470_v12, 0.0  ;;  %v4412_v39 = vsel %vm9107_vm2, %v8145_v63, 0.0  ;;  %vm9121_vm1 = vmmov %vm9105_vm0 }
 0x5d8   : > { %v4507_v17 = vsel %vm9102_vm8, %v4468_v8, 0.0  ;;  %v4408_v10 = vsel %vm9103_vm10, %v8147_v25, 0.0  ;;  %v4469_v49 = vmul.f32 %v8147_v25, %v8147_v25  ;;  %vm9118_vm8 = vmmov %vm9105_vm0 }
 0x5d9   : > { %v4508_v23 = vadd.f32 %v4507_v17, %v4506_v11  ;;  %v4409_v58 = vadd.f32 %v4408_v10, %v4407_v7  ;;  %v4513_v6 = vsel %vm9108_vm12, %v4471_v15, 0.0  ;;  %vm9119_vm10 = vmmov %vm9105_vm0 }
 0x5da   : > { %v4509_v45 = vsel %vm9105_vm0, %v4469_v49, 0.0  ;;  %vm9122_vm2 = vmmov %vm9105_vm0 }
 0x5db   : > { %v4411_v60 = vadd.f32 %v4410_v52, %v4409_v58  ;;  %v4510_v18 = vadd.f32 %v4509_v45, %v4508_v23  ;;  %vm9123_vm12 = vmmov %vm9105_vm0 }
 0x5dd   : > { %v4512_v2 = vadd.f32 %v4511_v16, %v4510_v18  ;;  %v4413_v57 = vadd.f32 %v4412_v39, %v4411_v60 }
 0x5df   : > { %v4514_v5 = vadd.f32 %v4513_v6, %v4512_v2 }
 0x5f4   : > { %v8165_v21 = vpop.f32.mrb[12].mxu1 }
 0x5f5   : > { %v8167_v1 = vpop.f32.mrb[13].mxu1  ;;  %v4474_v47 = vmul.f32 %v8165_v21, %v8165_v21  ;;  %v4418_v50 = vsel %vm9112_vm3, %v8165_v21, 0.0  ;;  %vm9127_vm3 = vmmov %vm9105_vm0 }
 0x5f6   : > { %v4414_v4 = vsel %vm9109_vm5, %v8167_v1, 0.0  ;;  %v4472_v28 = vmul.f32 %v8167_v1, %v8167_v1  ;;  %v8173_v41 = vpop.f32.mrb[14].mxu1  ;;  %vm9124_vm5 = vmmov %vm9105_vm0 }
 0x5f7   : > { %v4415_v44 = vadd.f32 %v4414_v4, %v4413_v57  ;;  %v8175_v42 = vpop.f32.mrb[15].mxu1  ;;  %v4475_v37 = vmul.f32 %v8173_v41, %v8173_v41  ;;  %v4519_v20 = vsel %vm9114_vm13, %v4474_v47, 0.0  ;;  %v4420_v43 = vsel %vm9115_vm14, %v8173_v41, 0.0  ;;  %vm9129_vm13 = vmmov %vm9105_vm0 }
 0x5f8   : > { %v4515_v22 = vsel %vm9110_vm6, %v4472_v28, 0.0  ;;  %v4416_v35 = vsel %vm9111_vm7, %v8175_v42, 0.0  ;;  %v4473_v38 = vmul.f32 %v8175_v42, %v8175_v42  ;;  %vm9125_vm6 = vmmov %vm9105_vm0 }
 0x5f9   : > { %v4516_v27 = vadd.f32 %v4515_v22, %v4514_v5  ;;  %v4417_v36 = vadd.f32 %v4416_v35, %v4415_v44  ;;  %v4521_v55 = vsel %vm9116_vm15, %v4475_v37, 0.0  ;;  %vm9126_vm7 = vmmov %vm9105_vm0 }
 0x5fa   : > { %v4517_v29 = vsel %vm9113_vm9, %v4473_v38, 0.0  ;;  %vm9128_vm9 = vmmov %vm9105_vm0 }
 0x5fb   : > { %v4419_v40 = vadd.f32 %v4418_v50, %v4417_v36  ;;  %v4518_v14 = vadd.f32 %v4517_v29, %v4516_v27  ;;  %vm9130_vm14 = vmmov %vm9105_vm0 }
 0x5fc   : > { %vm9131_vm15 = vmmov %vm9105_vm0 }
 0x5fd   : > { %v4520_v62 = vadd.f32 %v4519_v20, %v4518_v14  ;;  %v4421_v46 = vadd.f32 %v4420_v43, %v4419_v40 }
 0x5ff   : > { %v4522_v30 = vadd.f32 %v4521_v55, %v4520_v62 }
 0x614   : > { %v8193_v59 = vpop.f32.mrb[16].mxu1 }
 0x615   : > { %v8195_v61 = vpop.f32.mrb[17].mxu1  ;;  %v4478_v11 = vmul.f32 %v8193_v59, %v8193_v59  ;;  %v4426_v10 = vsel %vm9120_vm11, %v8193_v59, 0.0  ;;  %vm9135_vm11 = vmmov %vm9105_vm0 }
 0x616   : > { %v4422_v26 = vsel %vm9117_vm4, %v8195_v61, 0.0  ;;  %v4476_v9 = vmul.f32 %v8195_v61, %v8195_v61  ;;  %v8201_v31 = vpop.f32.mrb[18].mxu1  ;;  %vm9132_vm4 = vmmov %vm9105_vm0 }
 0x617   : > { %v4423_v56 = vadd.f32 %v4422_v26, %v4421_v46  ;;  %v8203_v34 = vpop.f32.mrb[19].mxu1  ;;  %v4479_v49 = vmul.f32 %v8201_v31, %v8201_v31  ;;  %v4527_v15 = vsel %vm9121_vm1, %v4478_v11, 0.0  ;;  %v4428_v45 = vsel %vm9122_vm2, %v8201_v31, 0.0  ;;  %vm9136_vm1 = vmmov %vm9105_vm0 }
 0x618   : > { %v4523_v53 = vsel %vm9118_vm8, %v4476_v9, 0.0  ;;  %v4424_v8 = vsel %vm9119_vm10, %v8203_v34, 0.0  ;;  %v4477_v7 = vmul.f32 %v8203_v34, %v8203_v34  ;;  %vm9133_vm8 = vmmov %vm9105_vm0 }
 0x619   : > { %v4524_v12 = vadd.f32 %v4523_v53, %v4522_v30  ;;  %v4425_v17 = vadd.f32 %v4424_v8, %v4423_v56  ;;  %v4529_v16 = vsel %vm9123_vm12, %v4479_v49, 0.0  ;;  %vm9134_vm10 = vmmov %vm9105_vm0 }
 0x61a   : > { %v4525_v23 = vsel %vm9105_vm0, %v4477_v7, 0.0  ;;  %vm9137_vm2 = vmmov %vm9105_vm0 }
 0x61b   : > { %v4427_v58 = vadd.f32 %v4426_v10, %v4425_v17  ;;  %v4526_v52 = vadd.f32 %v4525_v23, %v4524_v12  ;;  %vm9138_vm12 = vmmov %vm9105_vm0 }
 0x61d   : > { %v4528_v60 = vadd.f32 %v4527_v15, %v4526_v52  ;;  %v4429_v18 = vadd.f32 %v4428_v45, %v4427_v58 }
 0x61f   : > { %v4530_v39 = vadd.f32 %v4529_v16, %v4528_v60 }
 0x634   : > { %v8221_v2 = vpop.f32.mrb[20].mxu1 }
 0x635   : > { %v8223_v57 = vpop.f32.mrb[21].mxu1  ;;  %v4482_v47 = vmul.f32 %v8221_v2, %v8221_v2  ;;  %v4434_v50 = vsel %vm9127_vm3, %v8221_v2, 0.0  ;;  %vm9142_vm3 = vmmov %vm9105_vm0 }
 0x636   : > { %v4430_v6 = vsel %vm9124_vm5, %v8223_v57, 0.0  ;;  %v4480_v5 = vmul.f32 %v8223_v57, %v8223_v57  ;;  %v8229_v4 = vpop.f32.mrb[22].mxu1  ;;  %vm9139_vm5 = vmmov %vm9105_vm0 }
 0x637   : > { %v4431_v28 = vadd.f32 %v4430_v6, %v4429_v18  ;;  %v8231_v44 = vpop.f32.mrb[23].mxu1  ;;  %v4483_v37 = vmul.f32 %v8229_v4, %v8229_v4  ;;  %v4535_v20 = vsel %vm9129_vm13, %v4482_v47, 0.0  ;;  %v4436_v43 = vsel %vm9130_vm14, %v8229_v4, 0.0  ;;  %vm9144_vm13 = vmmov %vm9105_vm0 }
 0x638   : > { %v4531_v22 = vsel %vm9125_vm6, %v4480_v5, 0.0  ;;  %v4432_v35 = vsel %vm9126_vm7, %v8231_v44, 0.0  ;;  %v4481_v38 = vmul.f32 %v8231_v44, %v8231_v44  ;;  %vm9140_vm6 = vmmov %vm9105_vm0 }
 0x639   : > { %v4532_v27 = vadd.f32 %v4531_v22, %v4530_v39  ;;  %v4433_v36 = vadd.f32 %v4432_v35, %v4431_v28  ;;  %v4537_v55 = vsel %vm9131_vm15, %v4483_v37, 0.0  ;;  %vm9141_vm7 = vmmov %vm9105_vm0 }
 0x63a   : > { %v4533_v29 = vsel %vm9128_vm9, %v4481_v38, 0.0  ;;  %vm9143_vm9 = vmmov %vm9105_vm0 }
 0x63b   : > { %v4435_v40 = vadd.f32 %v4434_v50, %v4433_v36  ;;  %v4534_v14 = vadd.f32 %v4533_v29, %v4532_v27  ;;  %vm9145_vm14 = vmmov %vm9105_vm0 }
 0x63c   : > { %vm9146_vm15 = vmmov %vm9105_vm0 }
 0x63d   : > { %v4536_v62 = vadd.f32 %v4535_v20, %v4534_v14  ;;  %v4437_v46 = vadd.f32 %v4436_v43, %v4435_v40 }
 0x63f   : > { %v4538_v30 = vadd.f32 %v4537_v55, %v4536_v62 }
 0x654   : > { %v8249_v26 = vpop.f32.mrb[24].mxu1 }
 0x655   : > { %v8251_v9 = vpop.f32.mrb[25].mxu1  ;;  %v4486_v12 = vmul.f32 %v8249_v26, %v8249_v26  ;;  %v4442_v52 = vsel %vm9135_vm11, %v8249_v26, 0.0  ;;  %vm9150_vm11 = vmmov %vm9105_vm0 }
 0x656   : > { %v4438_v56 = vsel %vm9132_vm4, %v8251_v9, 0.0  ;;  %v4484_v11 = vmul.f32 %v8251_v9, %v8251_v9  ;;  %v8257_v53 = vpop.f32.mrb[26].mxu1  ;;  %vm9147_vm4 = vmmov %vm9105_vm0 }
 0x657   : > { %v4439_v8 = vadd.f32 %v4438_v56, %v4437_v46  ;;  %v8259_v7 = vpop.f32.mrb[27].mxu1  ;;  %v4487_v15 = vmul.f32 %v8257_v53, %v8257_v53  ;;  %v4543_v16 = vsel %vm9136_vm1, %v4486_v12, 0.0  ;;  %v4444_v39 = vsel %vm9137_vm2, %v8257_v53, 0.0  ;;  %vm9151_vm1 = vmmov %vm9105_vm0 }
 0x658   : > { %v4539_v17 = vsel %vm9133_vm8, %v4484_v11, 0.0  ;;  %v4440_v10 = vsel %vm9134_vm10, %v8259_v7, 0.0  ;;  %v4485_v49 = vmul.f32 %v8259_v7, %v8259_v7  ;;  %vm9148_vm8 = vmmov %vm9105_vm0 }
 0x659   : > { %v4540_v23 = vadd.f32 %v4539_v17, %v4538_v30  ;;  %v4441_v58 = vadd.f32 %v4440_v10, %v4439_v8  ;;  %v4545_v28 = vsel %vm9138_vm12, %v4487_v15, 0.0  ;;  %vm9149_vm10 = vmmov %vm9105_vm0 }
 0x65a   : > { %v4541_v45 = vsel %vm9105_vm0, %v4485_v49, 0.0  ;;  %vm9152_vm2 = vmmov %vm9105_vm0 }
 0x65b   : > { %v4443_v60 = vadd.f32 %v4442_v52, %v4441_v58  ;;  %v4542_v18 = vadd.f32 %v4541_v45, %v4540_v23  ;;  %vm9153_vm12 = vmmov %vm9105_vm0 }
 0x65d   : > { %v4544_v6 = vadd.f32 %v4543_v16, %v4542_v18  ;;  %v4445_v5 = vadd.f32 %v4444_v39, %v4443_v60 }
 0x65f   : > { %v4546_v47 = vadd.f32 %v4545_v28, %v4544_v6 }
 0x66f   : > { %v8277_v22 = vpop.f32.mrb[28].mxu1 }
 0x670   : > { %v8279_v35 = vpop.f32.mrb[29].mxu1  ;;  %v4490_v29 = vmul.f32 %v8277_v22, %v8277_v22  ;;  %v4450_v46 = vsel %vm9142_vm3, %v8277_v22, 0.0  ;;  %vm9157_vm3 = vmmov %vm9105_vm0 }
 0x671   : > { %v4446_v38 = vsel %vm9139_vm5, %v8279_v35, 0.0  ;;  %v4488_v27 = vmul.f32 %v8279_v35, %v8279_v35  ;;  %v8285_v36 = vpop.f32.mrb[30].mxu1  ;;  %vm9154_vm5 = vmmov %vm9105_vm0 }
 0x672   : > { %v4447_v50 = vadd.f32 %v4446_v38, %v4445_v5  ;;  %v8287_v37 = vpop.f32.mrb[31].mxu1  ;;  %v4491_v55 = vmul.f32 %v8285_v36, %v8285_v36  ;;  %v4551_v8 = vsel %vm9144_vm13, %v4490_v29, 0.0  ;;  %v4452_v12 = vsel %vm9145_vm14, %v8285_v36, 0.0  ;;  %vm9159_vm13 = vmmov %vm9105_vm0 }
 0x673   : > { %v4547_v40 = vsel %vm9140_vm6, %v4488_v27, 0.0  ;;  %v4448_v14 = vsel %vm9141_vm7, %v8287_v37, 0.0  ;;  %v4489_v20 = vmul.f32 %v8287_v37, %v8287_v37  ;;  %vm9155_vm6 = vmmov %vm9105_vm0 }
 0x674   : > { %v4548_v43 = vadd.f32 %v4547_v40, %v4546_v47  ;;  %v4449_v62 = vadd.f32 %v4448_v14, %v4447_v50  ;;  %v4553_v49 = vsel %vm9146_vm15, %v4491_v55, 0.0  ;;  %vm9156_vm7 = vmmov %vm9105_vm0 }
 0x675   : > { %v4549_v30 = vsel %vm9143_vm9, %v4489_v20, 0.0  ;;  %vm9158_vm9 = vmmov %vm9105_vm0 }
 0x676   : > { %v4451_v56 = vadd.f32 %v4450_v46, %v4449_v62  ;;  %v4550_v11 = vadd.f32 %v4549_v30, %v4548_v43  ;;  %vm9160_vm14 = vmmov %vm9105_vm0 }
 0x677   : > { %vm9161_vm15 = vmmov %vm9105_vm0 }
 0x678   : > { %v4453_v17 = vadd.f32 %v4452_v12, %v4451_v56  ;;  %v4552_v10 = vadd.f32 %v4551_v8, %v4550_v11 }
 0x67a   : > { %v4454_v23 = vrot.slane %v4453_v17, 4  ;;  %v4554_v58 = vadd.f32 %v4553_v49, %v4552_v10 }
 0x67c   : > { %v4455_v52 = vadd.f32 %v4454_v23, %v4453_v17  ;;  %v4555_v15 = vrot.slane %v4554_v58, 4 }
 0x67e   : > { %v4456_v45 = vrot.slane %v4455_v52, 2  ;;  %v4556_v60 = vadd.f32 %v4555_v15, %v4554_v58 }
 0x680   : > { %v4457_v18 = vadd.f32 %v4456_v45, %v4455_v52  ;;  %v4557_v16 = vrot.slane %v4556_v60, 2 }
 0x682   : > { %v4458_v39 = vrot.slane %v4457_v18, 1  ;;  %v4558_v6 = vadd.f32 %v4557_v16, %v4556_v60 }
 0x684   : > { %v4459_v5 = vadd.f32 %v4458_v39, %v4457_v18  ;;  %v4559_v28 = vrot.slane %v4558_v6, 1 }
 0x686   : > { %v4561_v47 = vsel %vm9147_vm4, %v4459_v5, 0.0  ;;  %v4560_v38 = vadd.f32 %v4559_v28, %v4558_v6  ;;  %v4851_v28 = vld [vmem:[%s8494_s5] ss:$0 sm:$0xff]  ;;  %vm9162_vm4 = vmmov %vm9105_vm0 }
 0x687   : > { %4562 = vadd.xlane.f32.xlu0 %v4561_v47 }
 0x688   : > { %v4564_v27 = vsel %vm9148_vm8, %v4560_v38, 0.0  ;;  %vm9163_vm8 = vmmov %vm9105_vm0 }
 0x689   : > { %4565 = vadd.xlane.f32.xlu1 %v4564_v27 }
 0x714   : > { %v4563_v50 = vpop.xlane.xlu0 %4562 }
 0x715   : > { %v8307_v29 = vmul.f32 0.00048828125, %v4563_v50 }
 0x716   : > { %v4566_v40 = vpop.xlane.xlu1 %4565 }
 0x717   : > { %v4568_v14 = vmul.f32 0.00048828125, %v4566_v40  ;;  %v4569_v20 = vmul.f32 %v8307_v29, %v8307_v29  ;;  %v4573_v46 = vsub.f32 %v8059_v48, %v8307_v29  ;;  %v4574_v55 = vsub.f32 %v8065_v32, %v8307_v29 }
 0x718   : > { %v4575_v30 = vsub.f32 %v8056_v33, %v8307_v29  ;;  %v4576_v56 = vsub.f32 %v8063_v54, %v8307_v29  ;;  %v4577_v11 = vsub.f32 %v8111_v51, %v8307_v29  ;;  %v4578_v8 = vsub.f32 %v8119_v19, %v8307_v29 }
 0x719   : > { %v4570_v43 = vsub.f32 %v4568_v14, %v4569_v20  ;;  %v4579_v12 = vsub.f32 %v8109_v0, %v8307_v29  ;;  %v4580_v48 = vsub.f32 %v8117_v13, %v8307_v29  ;;  %v4581_v32 = vsub.f32 %v8139_v3, %v8307_v29 }
 0x71a   : > { %v4582_v33 = vsub.f32 %v8147_v25, %v8307_v29  ;;  %v4583_v54 = vsub.f32 %v8137_v24, %v8307_v29  ;;  %v4584_v51 = vsub.f32 %v8145_v63, %v8307_v29  ;;  %v4585_v19 = vsub.f32 %v8167_v1, %v8307_v29 }
 0x71b   : > { %v4571_v62 = vadd.f32 1e-05, %v4570_v43  ;;  %v4586_v0 = vsub.f32 %v8175_v42, %v8307_v29  ;;  %v4587_v13 = vsub.f32 %v8165_v21, %v8307_v29  ;;  %v4588_v3 = vsub.f32 %v8173_v41, %v8307_v29 }
 0x71c   : > { %v4589_v25 = vsub.f32 %v8195_v61, %v8307_v29  ;;  %v4590_v24 = vsub.f32 %v8203_v34, %v8307_v29  ;;  %v4591_v63 = vsub.f32 %v8193_v59, %v8307_v29  ;;  %v4592_v1 = vsub.f32 %v8201_v31, %v8307_v29 }
 0x71d   : > { %5138 = vrsqrt.f32 %v4571_v62  ;;  %v4593_v42 = vsub.f32 %v8223_v57, %v8307_v29  ;;  %v4594_v21 = vsub.f32 %v8231_v44, %v8307_v29  ;;  %v4595_v41 = vsub.f32 %v8221_v2, %v8307_v29 }
 0x71e   : > { %v4596_v61 = vsub.f32 %v8229_v4, %v8307_v29  ;;  %v4597_v34 = vsub.f32 %v8251_v9, %v8307_v29  ;;  %v4598_v59 = vsub.f32 %v8259_v7, %v8307_v29  ;;  %v4599_v31 = vsub.f32 %v8249_v26, %v8307_v29 }
 0x71f   : > { %v4600_v57 = vsub.f32 %v8257_v53, %v8307_v29  ;;  %v4601_v44 = vsub.f32 %v8279_v35, %v8307_v29  ;;  %v4602_v2 = vsub.f32 %v8287_v37, %v8307_v29  ;;  %v4603_v4 = vsub.f32 %v8277_v22, %v8307_v29 }
 0x720   : > { %v4604_v9 = vsub.f32 %v8285_v36, %v8307_v29 }
 0x727   : > { %v5139_v17 = vpop.eup %5138 }
 0x728   : > { %v4605_v7 = vmul.f32 %v5139_v17, %v4573_v46  ;;  %v4606_v10 = vmul.f32 %v5139_v17, %v4574_v55  ;;  %v4607_v49 = vmul.f32 %v5139_v17, %v4575_v30  ;;  %v4608_v26 = vmul.f32 %v5139_v17, %v4576_v56 }
 0x729   : > { %v4609_v23 = vmul.f32 %v5139_v17, %v4577_v11  ;;  %v4610_v58 = vmul.f32 %v5139_v17, %v4578_v8  ;;  %v4611_v53 = vmul.f32 %v5139_v17, %v4579_v12  ;;  %v4612_v52 = vmul.f32 %v5139_v17, %v4580_v48 }
 0x72a   : > { %v4613_v15 = vmul.f32 %v5139_v17, %v4581_v32  ;;  %v4614_v45 = vmul.f32 %v5139_v17, %v4582_v33  ;;  %v4615_v35 = vmul.f32 %v5139_v17, %v4583_v54  ;;  %v4616_v60 = vmul.f32 %v5139_v17, %v4584_v51 }
 0x72b   : > { %v4617_v18 = vmul.f32 %v5139_v17, %v4585_v19  ;;  %v4618_v37 = vmul.f32 %v5139_v17, %v4586_v0  ;;  %v4619_v16 = vmul.f32 %v5139_v17, %v4587_v13  ;;  %v4620_v39 = vmul.f32 %v5139_v17, %v4588_v3 }
 0x72c   : > { %v4621_v22 = vmul.f32 %v5139_v17, %v4589_v25  ;;  %v4622_v6 = vmul.f32 %v5139_v17, %v4590_v24  ;;  %v4623_v5 = vmul.f32 %v5139_v17, %v4591_v63  ;;  %v4624_v36 = vmul.f32 %v5139_v17, %v4592_v1 }
 0x72d   : > { %v4625_v47 = vmul.f32 %v5139_v17, %v4593_v42  ;;  %v4626_v38 = vmul.f32 %v5139_v17, %v4594_v21  ;;  %v4627_v27 = vmul.f32 %v5139_v17, %v4595_v41  ;;  %v4628_v50 = vmul.f32 %v5139_v17, %v4596_v61  ;;  %v8381_v41 = vld [vmem:[%s8495_s6] ss:$0 sm:$0xff] }
 0x72e   : > { %v4629_v29 = vmul.f32 %v5139_v17, %v4597_v34  ;;  %v4630_v40 = vmul.f32 %v5139_v17, %v4598_v59  ;;  %v4631_v14 = vmul.f32 %v5139_v17, %v4599_v31  ;;  %v4632_v20 = vmul.f32 %v5139_v17, %v4600_v57 }
 0x72f   : > { %v4633_v43 = vmul.f32 %v5139_v17, %v4601_v44  ;;  %v4634_v62 = vmul.f32 %v5139_v17, %v4602_v2  ;;  %v4635_v46 = vmul.f32 %v5139_v17, %v4603_v4  ;;  %v4636_v55 = vmul.f32 %v5139_v17, %v4604_v9 }
 0x730   : > { %v4643_v30 = vmul.f32 %v4851_v28, %v4605_v7  ;;  %v4644_v56 = vmul.f32 %v4851_v28, %v4606_v10  ;;  %v4645_v11 = vmul.f32 %v4851_v28, %v4607_v49  ;;  %v4646_v8 = vmul.f32 %v4851_v28, %v4608_v26 }
 0x731   : > { %v4647_v12 = vmul.f32 %v4851_v28, %v4609_v23  ;;  %v4648_v48 = vmul.f32 %v4851_v28, %v4610_v58  ;;  %v4649_v32 = vmul.f32 %v4851_v28, %v4611_v53  ;;  %v4650_v33 = vmul.f32 %v4851_v28, %v4612_v52 }
 0x732   : > { %v4651_v54 = vmul.f32 %v4851_v28, %v4613_v15  ;;  %v4652_v51 = vmul.f32 %v4851_v28, %v4614_v45  ;;  %v4653_v19 = vmul.f32 %v4851_v28, %v4615_v35  ;;  %v4654_v0 = vmul.f32 %v4851_v28, %v4616_v60 }
 0x733   : > { %v4655_v13 = vmul.f32 %v4851_v28, %v4617_v18  ;;  %v4656_v3 = vmul.f32 %v4851_v28, %v4618_v37  ;;  %v4657_v25 = vmul.f32 %v4851_v28, %v4619_v16  ;;  %v4658_v24 = vmul.f32 %v4851_v28, %v4620_v39 }
 0x734   : > { %v4659_v63 = vmul.f32 %v4851_v28, %v4621_v22  ;;  %v4660_v1 = vmul.f32 %v4851_v28, %v4622_v6  ;;  %v4661_v42 = vmul.f32 %v4851_v28, %v4623_v5  ;;  %v4662_v21 = vmul.f32 %v4851_v28, %v4624_v36 }
 0x735   : > { %v4663_v61 = vmul.f32 %v4851_v28, %v4625_v47  ;;  %v4664_v34 = vmul.f32 %v4851_v28, %v4626_v38  ;;  %v4665_v59 = vmul.f32 %v4851_v28, %v4627_v27  ;;  %v4666_v31 = vmul.f32 %v4851_v28, %v4628_v50 }
 0x736   : > { %v4667_v57 = vmul.f32 %v4851_v28, %v4629_v29  ;;  %v4668_v17 = vmul.f32 %v4851_v28, %v4630_v40  ;;  %v4669_v44 = vmul.f32 %v4851_v28, %v4631_v14  ;;  %v4670_v2 = vmul.f32 %v4851_v28, %v4632_v20 }
 0x737   : > { %v4671_v4 = vmul.f32 %v4851_v28, %v4633_v43  ;;  %v4672_v9 = vmul.f32 %v4851_v28, %v4634_v62  ;;  %v4673_v7 = vmul.f32 %v4851_v28, %v4635_v46  ;;  %v4674_v10 = vmul.f32 %v4851_v28, %v4636_v55 }
 0x738   : > { %v4681_v49 = vadd.f32 %v8381_v41, %v4643_v30  ;;  %v4682_v26 = vadd.f32 %v8381_v41, %v4644_v56  ;;  %v4683_v23 = vadd.f32 %v8381_v41, %v4645_v11  ;;  %v4684_v58 = vadd.f32 %v8381_v41, %v4646_v8 }
 0x739   : > { %v4685_v53 = vadd.f32 %v8381_v41, %v4647_v12  ;;  %v4686_v52 = vadd.f32 %v8381_v41, %v4648_v48  ;;  %v4687_v15 = vadd.f32 %v8381_v41, %v4649_v32  ;;  %v4688_v45 = vadd.f32 %v8381_v41, %v4650_v33 }
 0x73a   : > { %v4689_v35 = vadd.f32 %v8381_v41, %v4651_v54  ;;  %v4690_v60 = vadd.f32 %v8381_v41, %v4652_v51  ;;  %v4691_v18 = vadd.f32 %v8381_v41, %v4653_v19  ;;  %v4692_v37 = vadd.f32 %v8381_v41, %v4654_v0  ;;  %4713 = vst.msk [vmem:[%s8388_s28] sm:$0xff] %vm9149_vm10, %v4681_v49  ;;  %vm9164_vm10 = vmmov %vm9105_vm0 }
 0x73b   : > { %4714 = vst.msk [vmem:[%s8388_s28 + $0x8] sm:$0xff] %vm9150_vm11, %v4682_v26  ;;  %v4693_v16 = vadd.f32 %v8381_v41, %v4655_v13  ;;  %v4694_v39 = vadd.f32 %v8381_v41, %v4656_v3  ;;  %v4695_v22 = vadd.f32 %v8381_v41, %v4657_v25  ;;  %v4696_v6 = vadd.f32 %v8381_v41, %v4658_v24  ;;  %vm9165_vm11 = vmmov %vm9105_vm0 }
 0x73c   : > { %4715 = vst.msk [vmem:[%s8388_s28 + $0x10] sm:$0xff] %vm9105_vm0, %v4683_v23  ;;  %v4697_v5 = vadd.f32 %v8381_v41, %v4659_v63  ;;  %v4698_v36 = vadd.f32 %v8381_v41, %v4660_v1  ;;  %v4699_v28 = vadd.f32 %v8381_v41, %v4661_v42  ;;  %v4700_v47 = vadd.f32 %v8381_v41, %v4662_v21 }
 0x73d   : > { %4716 = vst.msk [vmem:[%s8388_s28 + $0x18] sm:$0xff] %vm9151_vm1, %v4684_v58  ;;  %v4701_v38 = vadd.f32 %v8381_v41, %v4663_v61  ;;  %v4702_v27 = vadd.f32 %v8381_v41, %v4664_v34  ;;  %v4703_v50 = vadd.f32 %v8381_v41, %v4665_v59  ;;  %v4704_v29 = vadd.f32 %v8381_v41, %v4666_v31  ;;  %vm9166_vm1 = vmmov %vm9105_vm0 }
 0x73e   : > { %4717 = vst.msk [vmem:[%s8388_s28 + $0x20] sm:$0xff] %vm9152_vm2, %v4685_v53  ;;  %v4705_v40 = vadd.f32 %v8381_v41, %v4667_v57  ;;  %v4706_v14 = vadd.f32 %v8381_v41, %v4668_v17  ;;  %v4707_v20 = vadd.f32 %v8381_v41, %v4669_v44  ;;  %v4708_v43 = vadd.f32 %v8381_v41, %v4670_v2  ;;  %vm9167_vm2 = vmmov %vm9105_vm0 }
 0x73f   : > { %4718 = vst.msk [vmem:[%s8388_s28 + $0x28] sm:$0xff] %vm9153_vm12, %v4686_v52  ;;  %v4709_v62 = vadd.f32 %v8381_v41, %v4671_v4  ;;  %v4710_v46 = vadd.f32 %v8381_v41, %v4672_v9  ;;  %v4711_v55 = vadd.f32 %v8381_v41, %v4673_v7  ;;  %v4712_v30 = vadd.f32 %v8381_v41, %v4674_v10  ;;  %vm9168_vm12 = vmmov %vm9105_vm0 }
 0x740   : > { %4719 = vst.msk [vmem:[%s8388_s28 + $0x30] sm:$0xff] %vm9154_vm5, %v4687_v15  ;;  %vm9169_vm5 = vmmov %vm9105_vm0 }
 0x741   : > { %4720 = vst.msk [vmem:[%s8388_s28 + $0x38] sm:$0xff] %vm9155_vm6, %v4688_v45  ;;  %vm9170_vm6 = vmmov %vm9105_vm0 }
 0x742   : > { %4721 = vst.msk [vmem:[%s8388_s28 + $0x40] sm:$0xff] %vm9156_vm7, %v4689_v35  ;;  %vm9171_vm7 = vmmov %vm9105_vm0 }
 0x743   : > { %4722 = vst.msk [vmem:[%s8388_s28 + $0x48] sm:$0xff] %vm9157_vm3, %v4690_v60  ;;  %vm9172_vm3 = vmmov %vm9105_vm0 }
 0x744   : > { %4723 = vst.msk [vmem:[%s8388_s28 + $0x50] sm:$0xff] %vm9158_vm9, %v4691_v18  ;;  %vm9173_vm9 = vmmov %vm9105_vm0 }
 0x745   : > { %4724 = vst.msk [vmem:[%s8388_s28 + $0x58] sm:$0xff] %vm9159_vm13, %v4692_v37  ;;  %vm9174_vm13 = vmmov %vm9105_vm0 }
 0x746   : > { %4725 = vst.msk [vmem:[%s8388_s28 + $0x60] sm:$0xff] %vm9160_vm14, %v4693_v16  ;;  %vm9175_vm14 = vmmov %vm9105_vm0 }
 0x747   : > { %4726 = vst.msk [vmem:[%s8388_s28 + $0x68] sm:$0xff] %vm9161_vm15, %v4694_v39  ;;  %vm9176_vm15 = vmmov %vm9105_vm0 }
 0x748   : > { %4727 = vst.msk [vmem:[%s8388_s28 + $0x70] sm:$0xff] %vm9162_vm4, %v4695_v22  ;;  %vm9177_vm4 = vmmov %vm9105_vm0 }
 0x749   : > { %4728 = vst.msk [vmem:[%s8388_s28 + $0x78] sm:$0xff] %vm9163_vm8, %v4696_v6  ;;  %vm9178_vm8 = vmmov %vm9105_vm0 }
 0x74a   : > { %4729 = vst.msk [vmem:[%s8388_s28 + $0x80] sm:$0xff] %vm9164_vm10, %v4697_v5 }
 0x74b   : > { %4730 = vst.msk [vmem:[%s8388_s28 + $0x88] sm:$0xff] %vm9165_vm11, %v4698_v36 }
 0x74c   : > { %4731 = vst.msk [vmem:[%s8388_s28 + $0x90] sm:$0xff] %vm9105_vm0, %v4699_v28 }
 0x74d   : > { %4732 = vst.msk [vmem:[%s8388_s28 + $0x98] sm:$0xff] %vm9166_vm1, %v4700_v47 }
 0x74e   : > { %4733 = vst.msk [vmem:[%s8388_s28 + $0xa0] sm:$0xff] %vm9167_vm2, %v4701_v38 }
 0x74f   : > { %4734 = vst.msk [vmem:[%s8388_s28 + $0xa8] sm:$0xff] %vm9168_vm12, %v4702_v27 }
 0x750   : > { %4735 = vst.msk [vmem:[%s8388_s28 + $0xb0] sm:$0xff] %vm9169_vm5, %v4703_v50 }
 0x751   : > { %4736 = vst.msk [vmem:[%s8388_s28 + $0xb8] sm:$0xff] %vm9170_vm6, %v4704_v29 }
 0x752   : > { %4737 = vst.msk [vmem:[%s8388_s28 + $0xc0] sm:$0xff] %vm9171_vm7, %v4705_v40 }
 0x753   : > { %4738 = vst.msk [vmem:[%s8388_s28 + $0xc8] sm:$0xff] %vm9172_vm3, %v4706_v14 }
 0x754   : > { %4739 = vst.msk [vmem:[%s8388_s28 + $0xd0] sm:$0xff] %vm9173_vm9, %v4707_v20 }
 0x755   : > { %4740 = vst.msk [vmem:[%s8388_s28 + $0xd8] sm:$0xff] %vm9174_vm13, %v4708_v43 }
 0x756   : > { %4741 = vst.msk [vmem:[%s8388_s28 + $0xe0] sm:$0xff] %vm9175_vm14, %v4709_v62 }
 0x757   : > { %4742 = vst.msk [vmem:[%s8388_s28 + $0xe8] sm:$0xff] %vm9176_vm15, %v4710_v46 }
 0x758   : > { %4743 = vst.msk [vmem:[%s8388_s28 + $0xf0] sm:$0xff] %vm9177_vm4, %v4711_v55 }
 0x759   : > { %4744 = vst.msk [vmem:[%s8388_s28 + $0xf8] sm:$0xff] %vm9178_vm8, %v4712_v30 }
 0x75a PF: > { %s17_s24 = sadd.s32 1, %s5146_s24  }
 0x75b   : > { %p14_p4 = scmp.ge.s32.totalorder %s17_s24, 6  }
 0x75d   :  { %16 = sbr.rel (!%p14_p4) target bundleno = 1 (0x1), region = 82 }

</bundles_post_ra>
